<compile_context>
chip_gen: v6e
topology: v6e:2x2x1
jax: 0.10.0
libtpu: 0.0.40
codegen_flags: <defaults>
</compile_context>

<pallas_src>
import math

import jax
import jax.numpy as jnp
from jax.experimental import pallas as pl
from jax.experimental.pallas import tpu as pltpu


_BN_EPS = 1e-5


# ----------------------------------------------------------------------------
# small in-kernel helpers
# ----------------------------------------------------------------------------
def _elu(x):
    # nn.ELU (alpha=1):  x if x > 0 else exp(x) - 1   (clamped exp arg)
    return jnp.where(x > 0, x, jnp.exp(jnp.minimum(x, 0.0)) - 1.0)


def _shift_seq(x, off):
    """y[:, i, :] = x[:, i + off, :], zero-filled outside range. x: (Bb, L, C)."""
    if off == 0:
        return x
    bb, seq, c = x.shape
    if off > 0:
        pad = jnp.zeros((bb, off, c), x.dtype)
        return jnp.concatenate([x[:, off:, :], pad], axis=1)
    pad = jnp.zeros((bb, -off, c), x.dtype)
    return jnp.concatenate([pad, x[:, :seq + off, :]], axis=1)


def _conv_block(x, w_ref, ss_ref, m, dilation, split_taps):
    """Dilated k=3 'same' Conv1d + folded (mask, bias, eval-BN) + ELU + mask.

    x: (Bb, L, Cin) bf16; w_ref: (3*Cin, Cout) bf16 tap-packed weight;
    ss_ref: (2, Cout) f32 (row0 = scale, row1 = shift); m: (Bb, 1, 1) 0/1 mask.
    Returns (Bb, L, Cout) bf16.
    """
    bb, seq, cin = x.shape
    cout = w_ref.shape[-1]
    taps = (_shift_seq(x, -dilation), x, _shift_seq(x, dilation))
    if split_taps:
        # One accumulating MXU dot per tap (K = Cin) -> no wide slab build.
        acc = jnp.dot(taps[0].reshape(bb * seq, cin), w_ref[0:cin, :],
                      preferred_element_type=jnp.float32)
        acc = acc + jnp.dot(taps[1].reshape(bb * seq, cin),
                            w_ref[cin:2 * cin, :],
                            preferred_element_type=jnp.float32)
        acc = acc + jnp.dot(taps[2].reshape(bb * seq, cin),
                            w_ref[2 * cin:3 * cin, :],
                            preferred_element_type=jnp.float32)
    else:
        # im2col: taps packed along channels -> one MXU push (bf16 slab).
        slab = jnp.concatenate(taps, axis=-1).reshape(bb * seq, 3 * cin)
        acc = jnp.dot(slab, w_ref[...], preferred_element_type=jnp.float32)
    acc = acc.reshape(bb, seq, cout)
    # mask * ELU(BN((conv + b) * mask)) == mask * ELU(conv*scale + shift)
    # exactly, because the per-sample mask is a scalar 0/1 (reference bug).
    y = _elu(acc * ss_ref[0:1, :] + ss_ref[1:2, :]) * m
    return y.astype(jnp.bfloat16)


# ----------------------------------------------------------------------------
# the fused kernel: conv stacks + attention + bn4/pool + heads, per grid step
# ----------------------------------------------------------------------------
def _fused_kernel(ab_len_ref, v_len_ref, abx_ref, vx_ref,
                  aw1_ref, as1_ref, aw2_ref, as2_ref, aw3_ref, as3_ref,
                  vw1_ref, vs1_ref, vw2_ref, vs2_ref, vw3_ref, vs3_ref,
                  attw_ref, attb_ref, ss4_ref,
                  rw1_ref, rv_ref, rb2_ref,
                  cw1_ref, cv_ref, cb2_ref,
                  out_ref):
    # Per-sample scalar masks (reference mask-indexing: whole row written
    # whenever length >= 1, so the mask is uniformly 1, or 0 if length == 0).
    ab_m = (ab_len_ref[...] >= 1).astype(jnp.float32)    # (Bb, 1, 1)
    v_m = (v_len_ref[...] >= 1).astype(jnp.float32)

    # --- dilated conv stacks (dilations 1, 2, 4); intermediates stay on-chip.
    a = _conv_block(abx_ref[...], aw1_ref, as1_ref, ab_m, 1, False)
    a = _conv_block(a, aw2_ref, as2_ref, ab_m, 2, False)
    a = _conv_block(a, aw3_ref, as3_ref, ab_m, 4, True)   # (Bb, L_ab, 256) bf16
    v = _conv_block(vx_ref[...], vw1_ref, vs1_ref, v_m, 1, False)
    v = _conv_block(v, vw2_ref, vs2_ref, v_m, 2, False)
    v = _conv_block(v, vw3_ref, vs3_ref, v_m, 4, True)    # (Bb, L_v, 256) bf16

    bb, l_ab, _ = a.shape
    l_v = v.shape[1]

    # --- attention (heads=1): 1x1-conv score vectors on the VPU/XLU.
    aw = attw_ref[0:1, :]                                 # (1, 256) f32
    vw = attw_ref[1:2, :]
    wa = jnp.sum(a * aw, axis=-1, keepdims=True)          # (Bb, L_ab, 1) f32
    wv = jnp.sum(v * vw, axis=-1)[:, None, :]             # (Bb, 1, L_v) f32
    s = wa + wv + attb_ref[...]                           # + (a_bias + v_bias)
    s = jnp.where(s > 0, s, 0.2 * s)                      # leaky_relu(0.2)

    # Bias matrix generated in-kernel from the true lengths (no HBM traffic).
    rows = jax.lax.broadcasted_iota(jnp.int32, (bb, l_ab, l_v), 1)
    cols = jax.lax.broadcasted_iota(jnp.int32, (bb, l_ab, l_v), 2)
    oob = (rows >= ab_len_ref[...]) | (cols >= v_len_ref[...])
    z = s + jnp.where(oob, jnp.float32(-1e9), jnp.float32(0.0))

    zmax = jnp.max(z, axis=-1, keepdims=True)
    e = jnp.exp(z - zmax)
    p = e * pl.reciprocal(jnp.sum(e, axis=-1, keepdims=True), approx=True)
    # dropout(p=0.15) on the attention weights is identity in eval mode
    trans = jnp.einsum("bqk,bkc->bqc", p.astype(jnp.bfloat16), v,
                       preferred_element_type=jnp.float32)  # (Bb, L_ab, 256)

    # --- concat + bn4(eval, folded) + ELU + mask + max-pool over sequence.
    cat = jnp.concatenate([a, trans.astype(jnp.bfloat16)], axis=-1)  # bf16 512
    y = _elu(cat * ss4_ref[0:1, :] + ss4_ref[1:2, :]) * ab_m         # f32
    pooled = jnp.max(y, axis=1).astype(jnp.bfloat16)                 # (Bb, 512)

    # --- regression / classification heads (Dropout(0.6) identity in eval).
    def head(w1_ref, vec_ref, b2_ref):
        h = jnp.dot(pooled, w1_ref[...],
                    preferred_element_type=jnp.float32) + vec_ref[0:1, :]
        h = _elu(h)
        # second Linear has a single output: lane-reduce on the VPU/XLU.
        return jnp.sum(h * vec_ref[1:2, :], axis=-1, keepdims=True) + b2_ref[...]

    reg = head(rw1_ref, rv_ref, rb2_ref)                  # (Bb, 1)
    cls = jax.nn.sigmoid(head(cw1_ref, cv_ref, cb2_ref))  # (Bb, 1)
    # Single lane-packed output block: one store + one DMA per grid step.
    out_ref[...] = jnp.concatenate([reg, cls], axis=-1).reshape(out_ref.shape)


# ----------------------------------------------------------------------------
# wrapper
# ----------------------------------------------------------------------------
def _weight_bytes(params):
    return sum(int(x.size) * x.dtype.itemsize for x in params.values())


def _vmem_estimate(bb, l_ab, l_v, ft, w_bytes):
    """Rough per-step VMEM high-water estimate (bytes), with headroom."""
    rows_a, rows_v = bb * l_ab, bb * l_v
    bf16_act = 2 * (rows_a + rows_v) * (3 * ft + 3 * 64 + 64 + 128 + 256 + 256)
    f32_epi = 4 * (rows_a * (256 + 512 + 512) + rows_v * 256)
    attn = 4 * 4 * bb * l_ab * l_v          # score/exp/prob f32 copies
    io = 2 * 2 * (rows_a + rows_v) * ft     # double-buffered bf16 inputs
    return bf16_act + f32_epi + attn + io + 2 * w_bytes + (4 << 20)


def _pick_block_b(batch, l_ab, l_v, ft, w_bytes):
    """Batch elements per grid step.

    Target ~256-512 MXU rows per conv matmul.  Single-TC chips (v5e/v6e) gain
    nothing from extra grid steps so we do NOT shrink bb to create them; when a
    single step would cover the whole batch but a 2-way split still keeps
    >= 256 rows per step, split once so v7x's two TensorCores both get work.
    bb is then capped by an explicit VMEM budget (safe for v7x's 64 MiB)."""
    bb = max(1, min(batch, max(1, 512 // max(l_ab, 1))))
    if bb == batch and batch % 2 == 0 and (batch // 2) * l_ab >= 256:
        bb = batch // 2
    budget = 40 << 20
    while bb > 1 and _vmem_estimate(bb, l_ab, l_v, ft, w_bytes) > budget:
        bb = max(1, bb // 2)
    return bb


def forward(params, ab_ft, v_ft, ab_len, v_len):
    B, L_ab, FT = ab_ft.shape
    L_v = v_ft.shape[1]
    p = params
    w_bytes = _weight_bytes(p)
    bb = _pick_block_b(B, L_ab, L_v, FT, w_bytes)

    # Pad batch up to a multiple of bb (padded samples have len=0 -> masked out,
    # and are sliced away below).  Never collapse bb to 1 just for divisibility.
    Bp = ((B + bb - 1) // bb) * bb
    pad = Bp - B
    ab_ft_b = ab_ft.astype(jnp.bfloat16)
    v_ft_b = v_ft.astype(jnp.bfloat16)
    ab_len_i = ab_len.astype(jnp.int32).reshape(B, 1, 1)
    v_len_i = v_len.astype(jnp.int32).reshape(B, 1, 1)
    if pad:
        ab_ft_b = jnp.pad(ab_ft_b, ((0, pad), (0, 0), (0, 0)))
        v_ft_b = jnp.pad(v_ft_b, ((0, pad), (0, 0), (0, 0)))
        ab_len_i = jnp.pad(ab_len_i, ((0, pad), (0, 0), (0, 0)))
        v_len_i = jnp.pad(v_len_i, ((0, pad), (0, 0), (0, 0)))

    operands = (
        ab_len_i, v_len_i, ab_ft_b, v_ft_b,
        p["a_w1"], p["a_ss1"], p["a_w2"], p["a_ss2"], p["a_w3"], p["a_ss3"],
        p["v_w1"], p["v_ss1"], p["v_w2"], p["v_ss2"], p["v_w3"], p["v_ss3"],
        p["att_w"], p["att_b"], p["ss4"],
        p["reg_w1"], p["reg_v"], p["reg_b2"],
        p["cls_w1"], p["cls_v"], p["cls_b2"],
    )

    def whole(arr):  # replicated parameter block (constant index -> fetched once)
        assert arr.ndim == 2
        return pl.BlockSpec(arr.shape, lambda i: (0, 0))

    in_specs = [
        pl.BlockSpec((bb, 1, 1), lambda i: (i, 0, 0)),
        pl.BlockSpec((bb, 1, 1), lambda i: (i, 0, 0)),
        pl.BlockSpec((bb, L_ab, FT), lambda i: (i, 0, 0)),
        pl.BlockSpec((bb, L_v, FT), lambda i: (i, 0, 0)),
    ] + [whole(x) for x in operands[4:]]

    vmem_limit = int(min(48 << 20,
                         max(32 << 20,
                             2 * _vmem_estimate(bb, L_ab, L_v, FT, w_bytes))))

    packed = pl.pallas_call(
        _fused_kernel,
        out_shape=jax.ShapeDtypeStruct((Bp, 1, 2), jnp.float32),
        grid=(Bp // bb,),
        in_specs=in_specs,
        out_specs=pl.BlockSpec((bb, 1, 2), lambda i: (i, 0, 0)),
        compiler_params=pltpu.CompilerParams(
            dimension_semantics=("parallel",),
            vmem_limit_bytes=vmem_limit),
    )(*operands)
    return packed[:B, 0, 0:1], packed[:B, 0, 1:2]


# ----------------------------------------------------------------------------
# parameter init (xavier-uniform like the PyTorch module), folded for the kernel
# ----------------------------------------------------------------------------
def _xavier(key, shape, fan_in, fan_out):
    lim = math.sqrt(6.0 / (fan_in + fan_out))
    return jax.random.uniform(key, shape, jnp.float32, -lim, lim)


def _fold_conv_bn(w3, b, gamma, beta, mean, var):
    """w3: (3, Cin, Cout) conv weight -> (tap-packed bf16 weight, (2, Cout) f32)."""
    k, cin, cout = w3.shape
    scale = gamma * jax.lax.rsqrt(var + _BN_EPS)
    shift = (b - mean) * scale + beta
    return (w3.reshape(k * cin, cout).astype(jnp.bfloat16),
            jnp.stack([scale, shift], axis=0))


def init_params(key, ft_dim):
    ks = jax.random.split(key, 12)

    def conv_layer(k, cin, cout):
        w = _xavier(k, (3, cin, cout), cin * 3, cout * 3)
        zeros = jnp.zeros((cout,), jnp.float32)
        ones = jnp.ones((cout,), jnp.float32)
        # BatchNorm1d eval-mode defaults: mean=0, var=1, gamma=1, beta=0
        return _fold_conv_bn(w, zeros, ones, zeros, zeros, ones)

    p = {}
    for i, (k, cin, cout) in enumerate(
            [(ks[0], ft_dim, 64), (ks[1], 64, 128), (ks[2], 128, 256)], 1):
        p[f"a_w{i}"], p[f"a_ss{i}"] = conv_layer(k, cin, cout)
    for i, (k, cin, cout) in enumerate(
            [(ks[3], ft_dim, 64), (ks[4], 64, 128), (ks[5], 128, 256)], 1):
        p[f"v_w{i}"], p[f"v_ss{i}"] = conv_layer(k, cin, cout)

    # attention 1x1 convs (heads=1): weight vectors (256,), biases 0 (summed)
    aw = _xavier(ks[6], (256,), 256, 1)
    vw = _xavier(ks[7], (256,), 256, 1)
    p["att_w"] = jnp.stack([aw, vw], axis=0)              # (2, 256)
    p["att_b"] = jnp.zeros((1, 1), jnp.float32)           # a_bias + v_bias

    # bn4 (512 channels), eval-mode defaults folded into scale/shift
    gamma4 = jnp.ones((512,), jnp.float32)
    beta4 = jnp.zeros((512,), jnp.float32)
    mean4 = jnp.zeros((512,), jnp.float32)
    var4 = jnp.ones((512,), jnp.float32)
    scale4 = gamma4 * jax.lax.rsqrt(var4 + _BN_EPS)
    p["ss4"] = jnp.stack([scale4, beta4 - mean4 * scale4], axis=0)

    def head_params(k1, k2):
        w1 = _xavier(k1, (512, 256), 512, 256).astype(jnp.bfloat16)
        b1 = jnp.zeros((256,), jnp.float32)
        w2 = _xavier(k2, (256,), 256, 1)                  # second Linear, out=1
        b2 = jnp.zeros((1, 1), jnp.float32)
        return w1, jnp.stack([b1, w2], axis=0), b2

    p["reg_w1"], p["reg_v"], p["reg_b2"] = head_params(ks[8], ks[9])
    p["cls_w1"], p["cls_v"], p["cls_b2"] = head_params(ks[10], ks[11])
    return p


# ----------------------------------------------------------------------------
if __name__ == "__main__":
    B, L_ab, L_v, FT = 2, 16, 16, 32
    key = jax.random.PRNGKey(0)
    k_p, k_a, k_v = jax.random.split(key, 3)

    params = init_params(k_p, FT)
    ab_ft = jax.random.normal(k_a, (B, L_ab, FT), jnp.float32)
    v_ft = jax.random.normal(k_v, (B, L_v, FT), jnp.float32)
    ab_len = jnp.array([12, 16], jnp.int32)
    v_len = jnp.array([10, 16], jnp.int32)

    reg_pred, cls_pred = jax.jit(forward)(params, ab_ft, v_ft, ab_len, v_len)
    jax.block_until_ready((reg_pred, cls_pred))
    assert reg_pred.shape == (B, 1) and cls_pred.shape == (B, 1)
    assert bool(jnp.all(jnp.isfinite(reg_pred)))
    assert bool(jnp.all(jnp.isfinite(cls_pred)))
    assert bool(jnp.all((cls_pred >= 0) & (cls_pred <= 1)))
    print("KERNEL_OK")
</pallas_src>

<mosaic_0001>
module attributes {stable_mosaic.version = 11 : i64} {
  func.func @_fused_kernel(%arg0: i32, %arg1: memref<2x1x1xi32, #tpu.memory_space<vmem>>, %arg2: memref<2x1x1xi32, #tpu.memory_space<vmem>>, %arg3: memref<2x16x32xbf16, #tpu.memory_space<vmem>>, %arg4: memref<2x16x32xbf16, #tpu.memory_space<vmem>>, %arg5: memref<96x64xbf16, #tpu.memory_space<vmem>>, %arg6: memref<2x64xf32, #tpu.memory_space<vmem>>, %arg7: memref<192x128xbf16, #tpu.memory_space<vmem>>, %arg8: memref<2x128xf32, #tpu.memory_space<vmem>>, %arg9: memref<384x256xbf16, #tpu.memory_space<vmem>>, %arg10: memref<2x256xf32, #tpu.memory_space<vmem>>, %arg11: memref<96x64xbf16, #tpu.memory_space<vmem>>, %arg12: memref<2x64xf32, #tpu.memory_space<vmem>>, %arg13: memref<192x128xbf16, #tpu.memory_space<vmem>>, %arg14: memref<2x128xf32, #tpu.memory_space<vmem>>, %arg15: memref<384x256xbf16, #tpu.memory_space<vmem>>, %arg16: memref<2x256xf32, #tpu.memory_space<vmem>>, %arg17: memref<2x256xf32, #tpu.memory_space<vmem>>, %arg18: memref<1x1xf32, #tpu.memory_space<vmem>>, %arg19: memref<2x512xf32, #tpu.memory_space<vmem>>, %arg20: memref<512x256xbf16, #tpu.memory_space<vmem>>, %arg21: memref<2x256xf32, #tpu.memory_space<vmem>>, %arg22: memref<1x1xf32, #tpu.memory_space<vmem>>, %arg23: memref<512x256xbf16, #tpu.memory_space<vmem>>, %arg24: memref<2x256xf32, #tpu.memory_space<vmem>>, %arg25: memref<1x1xf32, #tpu.memory_space<vmem>>, %arg26: memref<2x1x2xf32, #tpu.memory_space<vmem>>) attributes {dimension_semantics = [#tpu.dimension_semantics<parallel>], iteration_bounds = array<i64: 1>, scalar_prefetch = 0 : i64, scratch_operands = 0 : i64, tpu.core_type = #tpu.core_type<tc>, window_params = [{transform_indices = @transform_0, window_bounds = array<i64: 2, 1, 1>}, {transform_indices = @transform_1, window_bounds = array<i64: 2, 1, 1>}, {transform_indices = @transform_2, window_bounds = array<i64: 2, 16, 32>}, {transform_indices = @transform_3, window_bounds = array<i64: 2, 16, 32>}, {pipeline_mode = #tpu.pipeline_mode<synchronous>, transform_indices = @transform_4, window_bounds = array<i64: 96, 64>}, {pipeline_mode = #tpu.pipeline_mode<synchronous>, transform_indices = @transform_5, window_bounds = array<i64: 2, 64>}, {pipeline_mode = #tpu.pipeline_mode<synchronous>, transform_indices = @transform_6, window_bounds = array<i64: 192, 128>}, {pipeline_mode = #tpu.pipeline_mode<synchronous>, transform_indices = @transform_7, window_bounds = array<i64: 2, 128>}, {pipeline_mode = #tpu.pipeline_mode<synchronous>, transform_indices = @transform_8, window_bounds = array<i64: 384, 256>}, {pipeline_mode = #tpu.pipeline_mode<synchronous>, transform_indices = @transform_9, window_bounds = array<i64: 2, 256>}, {pipeline_mode = #tpu.pipeline_mode<synchronous>, transform_indices = @transform_10, window_bounds = array<i64: 96, 64>}, {pipeline_mode = #tpu.pipeline_mode<synchronous>, transform_indices = @transform_11, window_bounds = array<i64: 2, 64>}, {pipeline_mode = #tpu.pipeline_mode<synchronous>, transform_indices = @transform_12, window_bounds = array<i64: 192, 128>}, {pipeline_mode = #tpu.pipeline_mode<synchronous>, transform_indices = @transform_13, window_bounds = array<i64: 2, 128>}, {pipeline_mode = #tpu.pipeline_mode<synchronous>, transform_indices = @transform_14, window_bounds = array<i64: 384, 256>}, {pipeline_mode = #tpu.pipeline_mode<synchronous>, transform_indices = @transform_15, window_bounds = array<i64: 2, 256>}, {pipeline_mode = #tpu.pipeline_mode<synchronous>, transform_indices = @transform_16, window_bounds = array<i64: 2, 256>}, {pipeline_mode = #tpu.pipeline_mode<synchronous>, transform_indices = @transform_17, window_bounds = array<i64: 1, 1>}, {pipeline_mode = #tpu.pipeline_mode<synchronous>, transform_indices = @transform_18, window_bounds = array<i64: 2, 512>}, {pipeline_mode = #tpu.pipeline_mode<synchronous>, transform_indices = @transform_19, window_bounds = array<i64: 512, 256>}, {pipeline_mode = #tpu.pipeline_mode<synchronous>, transform_indices = @transform_20, window_bounds = array<i64: 2, 256>}, {pipeline_mode = #tpu.pipeline_mode<synchronous>, transform_indices = @transform_21, window_bounds = array<i64: 1, 1>}, {pipeline_mode = #tpu.pipeline_mode<synchronous>, transform_indices = @transform_22, window_bounds = array<i64: 512, 256>}, {pipeline_mode = #tpu.pipeline_mode<synchronous>, transform_indices = @transform_23, window_bounds = array<i64: 2, 256>}, {pipeline_mode = #tpu.pipeline_mode<synchronous>, transform_indices = @transform_24, window_bounds = array<i64: 1, 1>}, {transform_indices = @transform_25, window_bounds = array<i64: 2, 1, 2>}]} {
    %c0 = arith.constant 0 : index
    %c0_0 = arith.constant 0 : index
    %c0_1 = arith.constant 0 : index
    %0 = vector.load %arg1[%c0, %c0_0, %c0_1] : memref<2x1x1xi32, #tpu.memory_space<vmem>>, vector<2x1x1xi32>
    %c1_i32 = arith.constant 1 : i32
    %1 = vector.broadcast %c1_i32 : i32 to vector<2x1x1xi32>
    %2 = arith.cmpi sge, %0, %1 : vector<2x1x1xi32>
    %3 = arith.extui %2 : vector<2x1x1xi1> to vector<2x1x1xi32>
    %4 = arith.sitofp %3 : vector<2x1x1xi32> to vector<2x1x1xf32>
    %c0_2 = arith.constant 0 : index
    %c0_3 = arith.constant 0 : index
    %c0_4 = arith.constant 0 : index
    %5 = vector.load %arg2[%c0_2, %c0_3, %c0_4] : memref<2x1x1xi32, #tpu.memory_space<vmem>>, vector<2x1x1xi32>
    %c1_i32_5 = arith.constant 1 : i32
    %6 = vector.broadcast %c1_i32_5 : i32 to vector<2x1x1xi32>
    %7 = arith.cmpi sge, %5, %6 : vector<2x1x1xi32>
    %8 = arith.extui %7 : vector<2x1x1xi1> to vector<2x1x1xi32>
    %9 = arith.sitofp %8 : vector<2x1x1xi32> to vector<2x1x1xf32>
    %c0_6 = arith.constant 0 : index
    %c0_7 = arith.constant 0 : index
    %c0_8 = arith.constant 0 : index
    %10 = vector.load %arg3[%c0_6, %c0_7, %c0_8] : memref<2x16x32xbf16, #tpu.memory_space<vmem>>, vector<2x16x32xbf16>
    %cst = arith.constant 0.000000e+00 : bf16
    %11 = vector.broadcast %cst : bf16 to vector<2x1x32xbf16>
    %12 = vector.extract_strided_slice %10 {offsets = [0, 0, 0], sizes = [2, 15, 32], strides = [1, 1, 1]} : vector<2x16x32xbf16> to vector<2x15x32xbf16>
    %13 = tpu.concatenate %11, %12 in 1 : vector<2x1x32xbf16>, vector<2x15x32xbf16> -> vector<2x16x32xbf16>
    %cst_9 = arith.constant 0.000000e+00 : bf16
    %14 = vector.broadcast %cst_9 : bf16 to vector<2x1x32xbf16>
    %15 = vector.extract_strided_slice %10 {offsets = [0, 1, 0], sizes = [2, 15, 32], strides = [1, 1, 1]} : vector<2x16x32xbf16> to vector<2x15x32xbf16>
    %16 = tpu.concatenate %15, %14 in 1 : vector<2x15x32xbf16>, vector<2x1x32xbf16> -> vector<2x16x32xbf16>
    %17 = tpu.concatenate %13, %10, %16 in 2 : vector<2x16x32xbf16>, vector<2x16x32xbf16>, vector<2x16x32xbf16> -> vector<2x16x96xbf16>
    %18 = vector.shape_cast %17 : vector<2x16x96xbf16> to vector<32x96xbf16>
    %c0_10 = arith.constant 0 : index
    %c0_11 = arith.constant 0 : index
    %19 = vector.load %arg5[%c0_10, %c0_11] : memref<96x64xbf16, #tpu.memory_space<vmem>>, vector<96x64xbf16>
    %cst_12 = arith.constant dense<0.000000e+00> : vector<32x64xf32>
    %20 = tpu.matmul %18, %19, %cst_12 {dimension_numbers = #tpu.dot_dimension_numbers<[1], [0], [0], [1], [0, 0, 1, 1], [], []>} : vector<32x96xbf16>, vector<96x64xbf16>, vector<32x64xf32> -> vector<32x64xf32>
    %21 = vector.shape_cast %20 : vector<32x64xf32> to vector<2x16x64xf32>
    %c0_13 = arith.constant 0 : index
    %c0_14 = arith.constant 0 : index
    %22 = vector.load %arg6[%c0_13, %c0_14] : memref<2x64xf32, #tpu.memory_space<vmem>>, vector<1x64xf32>
    %23 = vector.shape_cast %22 : vector<1x64xf32> to vector<1x1x64xf32>
    %24 = vector.broadcast %23 : vector<1x1x64xf32> to vector<2x16x64xf32>
    %25 = arith.mulf %21, %24 : vector<2x16x64xf32>
    %c1 = arith.constant 1 : index
    %c0_15 = arith.constant 0 : index
    %26 = vector.load %arg6[%c1, %c0_15] : memref<2x64xf32, #tpu.memory_space<vmem>>, vector<1x64xf32>
    %27 = vector.shape_cast %26 : vector<1x64xf32> to vector<1x1x64xf32>
    %28 = vector.broadcast %27 : vector<1x1x64xf32> to vector<2x16x64xf32>
    %29 = arith.addf %25, %28 : vector<2x16x64xf32>
    %cst_16 = arith.constant 0.000000e+00 : f32
    %30 = vector.broadcast %cst_16 : f32 to vector<2x16x64xf32>
    %31 = arith.cmpf ogt, %29, %30 : vector<2x16x64xf32>
    %cst_17 = arith.constant 0.000000e+00 : f32
    %32 = vector.broadcast %cst_17 : f32 to vector<2x16x64xf32>
    %33 = arith.minimumf %29, %32 : vector<2x16x64xf32>
    %34 = math.exp %33 : vector<2x16x64xf32>
    %cst_18 = arith.constant 1.000000e+00 : f32
    %35 = vector.broadcast %cst_18 : f32 to vector<2x16x64xf32>
    %36 = arith.subf %34, %35 : vector<2x16x64xf32>
    %37 = arith.select %31, %29, %36 : vector<2x16x64xi1>, vector<2x16x64xf32>
    %38 = vector.broadcast %4 : vector<2x1x1xf32> to vector<2x16x64xf32>
    %39 = arith.mulf %37, %38 : vector<2x16x64xf32>
    %40 = arith.truncf %39 : vector<2x16x64xf32> to vector<2x16x64xbf16>
    %cst_19 = arith.constant 0.000000e+00 : bf16
    %41 = vector.broadcast %cst_19 : bf16 to vector<2x2x64xbf16>
    %42 = vector.extract_strided_slice %40 {offsets = [0, 0, 0], sizes = [2, 14, 64], strides = [1, 1, 1]} : vector<2x16x64xbf16> to vector<2x14x64xbf16>
    %43 = tpu.concatenate %41, %42 in 1 : vector<2x2x64xbf16>, vector<2x14x64xbf16> -> vector<2x16x64xbf16>
    %cst_20 = arith.constant 0.000000e+00 : bf16
    %44 = vector.broadcast %cst_20 : bf16 to vector<2x2x64xbf16>
    %45 = vector.extract_strided_slice %40 {offsets = [0, 2, 0], sizes = [2, 14, 64], strides = [1, 1, 1]} : vector<2x16x64xbf16> to vector<2x14x64xbf16>
    %46 = tpu.concatenate %45, %44 in 1 : vector<2x14x64xbf16>, vector<2x2x64xbf16> -> vector<2x16x64xbf16>
    %47 = tpu.concatenate %43, %40, %46 in 2 : vector<2x16x64xbf16>, vector<2x16x64xbf16>, vector<2x16x64xbf16> -> vector<2x16x192xbf16>
    %48 = vector.shape_cast %47 : vector<2x16x192xbf16> to vector<32x192xbf16>
    %c0_21 = arith.constant 0 : index
    %c0_22 = arith.constant 0 : index
    %49 = vector.load %arg7[%c0_21, %c0_22] : memref<192x128xbf16, #tpu.memory_space<vmem>>, vector<192x128xbf16>
    %cst_23 = arith.constant dense<0.000000e+00> : vector<32x128xf32>
    %50 = tpu.matmul %48, %49, %cst_23 {dimension_numbers = #tpu.dot_dimension_numbers<[1], [0], [0], [1], [0, 0, 1, 1], [], []>} : vector<32x192xbf16>, vector<192x128xbf16>, vector<32x128xf32> -> vector<32x128xf32>
    %51 = vector.shape_cast %50 : vector<32x128xf32> to vector<2x16x128xf32>
    %c0_24 = arith.constant 0 : index
    %c0_25 = arith.constant 0 : index
    %52 = vector.load %arg8[%c0_24, %c0_25] : memref<2x128xf32, #tpu.memory_space<vmem>>, vector<1x128xf32>
    %53 = vector.shape_cast %52 : vector<1x128xf32> to vector<1x1x128xf32>
    %54 = vector.broadcast %53 : vector<1x1x128xf32> to vector<2x16x128xf32>
    %55 = arith.mulf %51, %54 : vector<2x16x128xf32>
    %c1_26 = arith.constant 1 : index
    %c0_27 = arith.constant 0 : index
    %56 = vector.load %arg8[%c1_26, %c0_27] : memref<2x128xf32, #tpu.memory_space<vmem>>, vector<1x128xf32>
    %57 = vector.shape_cast %56 : vector<1x128xf32> to vector<1x1x128xf32>
    %58 = vector.broadcast %57 : vector<1x1x128xf32> to vector<2x16x128xf32>
    %59 = arith.addf %55, %58 : vector<2x16x128xf32>
    %cst_28 = arith.constant 0.000000e+00 : f32
    %60 = vector.broadcast %cst_28 : f32 to vector<2x16x128xf32>
    %61 = arith.cmpf ogt, %59, %60 : vector<2x16x128xf32>
    %cst_29 = arith.constant 0.000000e+00 : f32
    %62 = vector.broadcast %cst_29 : f32 to vector<2x16x128xf32>
    %63 = arith.minimumf %59, %62 : vector<2x16x128xf32>
    %64 = math.exp %63 : vector<2x16x128xf32>
    %cst_30 = arith.constant 1.000000e+00 : f32
    %65 = vector.broadcast %cst_30 : f32 to vector<2x16x128xf32>
    %66 = arith.subf %64, %65 : vector<2x16x128xf32>
    %67 = arith.select %61, %59, %66 : vector<2x16x128xi1>, vector<2x16x128xf32>
    %68 = vector.broadcast %4 : vector<2x1x1xf32> to vector<2x16x128xf32>
    %69 = arith.mulf %67, %68 : vector<2x16x128xf32>
    %70 = arith.truncf %69 : vector<2x16x128xf32> to vector<2x16x128xbf16>
    %cst_31 = arith.constant 0.000000e+00 : bf16
    %71 = vector.broadcast %cst_31 : bf16 to vector<2x4x128xbf16>
    %72 = vector.extract_strided_slice %70 {offsets = [0, 0, 0], sizes = [2, 12, 128], strides = [1, 1, 1]} : vector<2x16x128xbf16> to vector<2x12x128xbf16>
    %73 = tpu.concatenate %71, %72 in 1 : vector<2x4x128xbf16>, vector<2x12x128xbf16> -> vector<2x16x128xbf16>
    %cst_32 = arith.constant 0.000000e+00 : bf16
    %74 = vector.broadcast %cst_32 : bf16 to vector<2x4x128xbf16>
    %75 = vector.extract_strided_slice %70 {offsets = [0, 4, 0], sizes = [2, 12, 128], strides = [1, 1, 1]} : vector<2x16x128xbf16> to vector<2x12x128xbf16>
    %76 = tpu.concatenate %75, %74 in 1 : vector<2x12x128xbf16>, vector<2x4x128xbf16> -> vector<2x16x128xbf16>
    %77 = vector.shape_cast %73 : vector<2x16x128xbf16> to vector<32x128xbf16>
    %c0_33 = arith.constant 0 : index
    %c0_34 = arith.constant 0 : index
    %78 = vector.load %arg9[%c0_33, %c0_34] : memref<384x256xbf16, #tpu.memory_space<vmem>>, vector<128x256xbf16>
    %cst_35 = arith.constant dense<0.000000e+00> : vector<32x256xf32>
    %79 = tpu.matmul %77, %78, %cst_35 {dimension_numbers = #tpu.dot_dimension_numbers<[1], [0], [0], [1], [0, 0, 1, 1], [], []>} : vector<32x128xbf16>, vector<128x256xbf16>, vector<32x256xf32> -> vector<32x256xf32>
    %80 = vector.shape_cast %70 : vector<2x16x128xbf16> to vector<32x128xbf16>
    %c128 = arith.constant 128 : index
    %c0_36 = arith.constant 0 : index
    %81 = vector.load %arg9[%c128, %c0_36] : memref<384x256xbf16, #tpu.memory_space<vmem>>, vector<128x256xbf16>
    %cst_37 = arith.constant dense<0.000000e+00> : vector<32x256xf32>
    %82 = tpu.matmul %80, %81, %cst_37 {dimension_numbers = #tpu.dot_dimension_numbers<[1], [0], [0], [1], [0, 0, 1, 1], [], []>} : vector<32x128xbf16>, vector<128x256xbf16>, vector<32x256xf32> -> vector<32x256xf32>
    %83 = arith.addf %79, %82 : vector<32x256xf32>
    %84 = vector.shape_cast %76 : vector<2x16x128xbf16> to vector<32x128xbf16>
    %c256 = arith.constant 256 : index
    %c0_38 = arith.constant 0 : index
    %85 = vector.load %arg9[%c256, %c0_38] : memref<384x256xbf16, #tpu.memory_space<vmem>>, vector<128x256xbf16>
    %cst_39 = arith.constant dense<0.000000e+00> : vector<32x256xf32>
    %86 = tpu.matmul %84, %85, %cst_39 {dimension_numbers = #tpu.dot_dimension_numbers<[1], [0], [0], [1], [0, 0, 1, 1], [], []>} : vector<32x128xbf16>, vector<128x256xbf16>, vector<32x256xf32> -> vector<32x256xf32>
    %87 = arith.addf %83, %86 : vector<32x256xf32>
    %88 = vector.shape_cast %87 : vector<32x256xf32> to vector<2x16x256xf32>
    %c0_40 = arith.constant 0 : index
    %c0_41 = arith.constant 0 : index
    %89 = vector.load %arg10[%c0_40, %c0_41] : memref<2x256xf32, #tpu.memory_space<vmem>>, vector<1x256xf32>
    %90 = vector.shape_cast %89 : vector<1x256xf32> to vector<1x1x256xf32>
    %91 = vector.broadcast %90 : vector<1x1x256xf32> to vector<2x16x256xf32>
    %92 = arith.mulf %88, %91 : vector<2x16x256xf32>
    %c1_42 = arith.constant 1 : index
    %c0_43 = arith.constant 0 : index
    %93 = vector.load %arg10[%c1_42, %c0_43] : memref<2x256xf32, #tpu.memory_space<vmem>>, vector<1x256xf32>
    %94 = vector.shape_cast %93 : vector<1x256xf32> to vector<1x1x256xf32>
    %95 = vector.broadcast %94 : vector<1x1x256xf32> to vector<2x16x256xf32>
    %96 = arith.addf %92, %95 : vector<2x16x256xf32>
    %cst_44 = arith.constant 0.000000e+00 : f32
    %97 = vector.broadcast %cst_44 : f32 to vector<2x16x256xf32>
    %98 = arith.cmpf ogt, %96, %97 : vector<2x16x256xf32>
    %cst_45 = arith.constant 0.000000e+00 : f32
    %99 = vector.broadcast %cst_45 : f32 to vector<2x16x256xf32>
    %100 = arith.minimumf %96, %99 : vector<2x16x256xf32>
    %101 = math.exp %100 : vector<2x16x256xf32>
    %cst_46 = arith.constant 1.000000e+00 : f32
    %102 = vector.broadcast %cst_46 : f32 to vector<2x16x256xf32>
    %103 = arith.subf %101, %102 : vector<2x16x256xf32>
    %104 = arith.select %98, %96, %103 : vector<2x16x256xi1>, vector<2x16x256xf32>
    %105 = vector.broadcast %4 : vector<2x1x1xf32> to vector<2x16x256xf32>
    %106 = arith.mulf %104, %105 : vector<2x16x256xf32>
    %107 = arith.truncf %106 : vector<2x16x256xf32> to vector<2x16x256xbf16>
    %c0_47 = arith.constant 0 : index
    %c0_48 = arith.constant 0 : index
    %c0_49 = arith.constant 0 : index
    %108 = vector.load %arg4[%c0_47, %c0_48, %c0_49] : memref<2x16x32xbf16, #tpu.memory_space<vmem>>, vector<2x16x32xbf16>
    %cst_50 = arith.constant 0.000000e+00 : bf16
    %109 = vector.broadcast %cst_50 : bf16 to vector<2x1x32xbf16>
    %110 = vector.extract_strided_slice %108 {offsets = [0, 0, 0], sizes = [2, 15, 32], strides = [1, 1, 1]} : vector<2x16x32xbf16> to vector<2x15x32xbf16>
    %111 = tpu.concatenate %109, %110 in 1 : vector<2x1x32xbf16>, vector<2x15x32xbf16> -> vector<2x16x32xbf16>
    %cst_51 = arith.constant 0.000000e+00 : bf16
    %112 = vector.broadcast %cst_51 : bf16 to vector<2x1x32xbf16>
    %113 = vector.extract_strided_slice %108 {offsets = [0, 1, 0], sizes = [2, 15, 32], strides = [1, 1, 1]} : vector<2x16x32xbf16> to vector<2x15x32xbf16>
    %114 = tpu.concatenate %113, %112 in 1 : vector<2x15x32xbf16>, vector<2x1x32xbf16> -> vector<2x16x32xbf16>
    %115 = tpu.concatenate %111, %108, %114 in 2 : vector<2x16x32xbf16>, vector<2x16x32xbf16>, vector<2x16x32xbf16> -> vector<2x16x96xbf16>
    %116 = vector.shape_cast %115 : vector<2x16x96xbf16> to vector<32x96xbf16>
    %c0_52 = arith.constant 0 : index
    %c0_53 = arith.constant 0 : index
    %117 = vector.load %arg11[%c0_52, %c0_53] : memref<96x64xbf16, #tpu.memory_space<vmem>>, vector<96x64xbf16>
    %cst_54 = arith.constant dense<0.000000e+00> : vector<32x64xf32>
    %118 = tpu.matmul %116, %117, %cst_54 {dimension_numbers = #tpu.dot_dimension_numbers<[1], [0], [0], [1], [0, 0, 1, 1], [], []>} : vector<32x96xbf16>, vector<96x64xbf16>, vector<32x64xf32> -> vector<32x64xf32>
    %119 = vector.shape_cast %118 : vector<32x64xf32> to vector<2x16x64xf32>
    %c0_55 = arith.constant 0 : index
    %c0_56 = arith.constant 0 : index
    %120 = vector.load %arg12[%c0_55, %c0_56] : memref<2x64xf32, #tpu.memory_space<vmem>>, vector<1x64xf32>
    %121 = vector.shape_cast %120 : vector<1x64xf32> to vector<1x1x64xf32>
    %122 = vector.broadcast %121 : vector<1x1x64xf32> to vector<2x16x64xf32>
    %123 = arith.mulf %119, %122 : vector<2x16x64xf32>
    %c1_57 = arith.constant 1 : index
    %c0_58 = arith.constant 0 : index
    %124 = vector.load %arg12[%c1_57, %c0_58] : memref<2x64xf32, #tpu.memory_space<vmem>>, vector<1x64xf32>
    %125 = vector.shape_cast %124 : vector<1x64xf32> to vector<1x1x64xf32>
    %126 = vector.broadcast %125 : vector<1x1x64xf32> to vector<2x16x64xf32>
    %127 = arith.addf %123, %126 : vector<2x16x64xf32>
    %cst_59 = arith.constant 0.000000e+00 : f32
    %128 = vector.broadcast %cst_59 : f32 to vector<2x16x64xf32>
    %129 = arith.cmpf ogt, %127, %128 : vector<2x16x64xf32>
    %cst_60 = arith.constant 0.000000e+00 : f32
    %130 = vector.broadcast %cst_60 : f32 to vector<2x16x64xf32>
    %131 = arith.minimumf %127, %130 : vector<2x16x64xf32>
    %132 = math.exp %131 : vector<2x16x64xf32>
    %cst_61 = arith.constant 1.000000e+00 : f32
    %133 = vector.broadcast %cst_61 : f32 to vector<2x16x64xf32>
    %134 = arith.subf %132, %133 : vector<2x16x64xf32>
    %135 = arith.select %129, %127, %134 : vector<2x16x64xi1>, vector<2x16x64xf32>
    %136 = vector.broadcast %9 : vector<2x1x1xf32> to vector<2x16x64xf32>
    %137 = arith.mulf %135, %136 : vector<2x16x64xf32>
    %138 = arith.truncf %137 : vector<2x16x64xf32> to vector<2x16x64xbf16>
    %cst_62 = arith.constant 0.000000e+00 : bf16
    %139 = vector.broadcast %cst_62 : bf16 to vector<2x2x64xbf16>
    %140 = vector.extract_strided_slice %138 {offsets = [0, 0, 0], sizes = [2, 14, 64], strides = [1, 1, 1]} : vector<2x16x64xbf16> to vector<2x14x64xbf16>
    %141 = tpu.concatenate %139, %140 in 1 : vector<2x2x64xbf16>, vector<2x14x64xbf16> -> vector<2x16x64xbf16>
    %cst_63 = arith.constant 0.000000e+00 : bf16
    %142 = vector.broadcast %cst_63 : bf16 to vector<2x2x64xbf16>
    %143 = vector.extract_strided_slice %138 {offsets = [0, 2, 0], sizes = [2, 14, 64], strides = [1, 1, 1]} : vector<2x16x64xbf16> to vector<2x14x64xbf16>
    %144 = tpu.concatenate %143, %142 in 1 : vector<2x14x64xbf16>, vector<2x2x64xbf16> -> vector<2x16x64xbf16>
    %145 = tpu.concatenate %141, %138, %144 in 2 : vector<2x16x64xbf16>, vector<2x16x64xbf16>, vector<2x16x64xbf16> -> vector<2x16x192xbf16>
    %146 = vector.shape_cast %145 : vector<2x16x192xbf16> to vector<32x192xbf16>
    %c0_64 = arith.constant 0 : index
    %c0_65 = arith.constant 0 : index
    %147 = vector.load %arg13[%c0_64, %c0_65] : memref<192x128xbf16, #tpu.memory_space<vmem>>, vector<192x128xbf16>
    %cst_66 = arith.constant dense<0.000000e+00> : vector<32x128xf32>
    %148 = tpu.matmul %146, %147, %cst_66 {dimension_numbers = #tpu.dot_dimension_numbers<[1], [0], [0], [1], [0, 0, 1, 1], [], []>} : vector<32x192xbf16>, vector<192x128xbf16>, vector<32x128xf32> -> vector<32x128xf32>
    %149 = vector.shape_cast %148 : vector<32x128xf32> to vector<2x16x128xf32>
    %c0_67 = arith.constant 0 : index
    %c0_68 = arith.constant 0 : index
    %150 = vector.load %arg14[%c0_67, %c0_68] : memref<2x128xf32, #tpu.memory_space<vmem>>, vector<1x128xf32>
    %151 = vector.shape_cast %150 : vector<1x128xf32> to vector<1x1x128xf32>
    %152 = vector.broadcast %151 : vector<1x1x128xf32> to vector<2x16x128xf32>
    %153 = arith.mulf %149, %152 : vector<2x16x128xf32>
    %c1_69 = arith.constant 1 : index
    %c0_70 = arith.constant 0 : index
    %154 = vector.load %arg14[%c1_69, %c0_70] : memref<2x128xf32, #tpu.memory_space<vmem>>, vector<1x128xf32>
    %155 = vector.shape_cast %154 : vector<1x128xf32> to vector<1x1x128xf32>
    %156 = vector.broadcast %155 : vector<1x1x128xf32> to vector<2x16x128xf32>
    %157 = arith.addf %153, %156 : vector<2x16x128xf32>
    %cst_71 = arith.constant 0.000000e+00 : f32
    %158 = vector.broadcast %cst_71 : f32 to vector<2x16x128xf32>
    %159 = arith.cmpf ogt, %157, %158 : vector<2x16x128xf32>
    %cst_72 = arith.constant 0.000000e+00 : f32
    %160 = vector.broadcast %cst_72 : f32 to vector<2x16x128xf32>
    %161 = arith.minimumf %157, %160 : vector<2x16x128xf32>
    %162 = math.exp %161 : vector<2x16x128xf32>
    %cst_73 = arith.constant 1.000000e+00 : f32
    %163 = vector.broadcast %cst_73 : f32 to vector<2x16x128xf32>
    %164 = arith.subf %162, %163 : vector<2x16x128xf32>
    %165 = arith.select %159, %157, %164 : vector<2x16x128xi1>, vector<2x16x128xf32>
    %166 = vector.broadcast %9 : vector<2x1x1xf32> to vector<2x16x128xf32>
    %167 = arith.mulf %165, %166 : vector<2x16x128xf32>
    %168 = arith.truncf %167 : vector<2x16x128xf32> to vector<2x16x128xbf16>
    %cst_74 = arith.constant 0.000000e+00 : bf16
    %169 = vector.broadcast %cst_74 : bf16 to vector<2x4x128xbf16>
    %170 = vector.extract_strided_slice %168 {offsets = [0, 0, 0], sizes = [2, 12, 128], strides = [1, 1, 1]} : vector<2x16x128xbf16> to vector<2x12x128xbf16>
    %171 = tpu.concatenate %169, %170 in 1 : vector<2x4x128xbf16>, vector<2x12x128xbf16> -> vector<2x16x128xbf16>
    %cst_75 = arith.constant 0.000000e+00 : bf16
    %172 = vector.broadcast %cst_75 : bf16 to vector<2x4x128xbf16>
    %173 = vector.extract_strided_slice %168 {offsets = [0, 4, 0], sizes = [2, 12, 128], strides = [1, 1, 1]} : vector<2x16x128xbf16> to vector<2x12x128xbf16>
    %174 = tpu.concatenate %173, %172 in 1 : vector<2x12x128xbf16>, vector<2x4x128xbf16> -> vector<2x16x128xbf16>
    %175 = vector.shape_cast %171 : vector<2x16x128xbf16> to vector<32x128xbf16>
    %c0_76 = arith.constant 0 : index
    %c0_77 = arith.constant 0 : index
    %176 = vector.load %arg15[%c0_76, %c0_77] : memref<384x256xbf16, #tpu.memory_space<vmem>>, vector<128x256xbf16>
    %cst_78 = arith.constant dense<0.000000e+00> : vector<32x256xf32>
    %177 = tpu.matmul %175, %176, %cst_78 {dimension_numbers = #tpu.dot_dimension_numbers<[1], [0], [0], [1], [0, 0, 1, 1], [], []>} : vector<32x128xbf16>, vector<128x256xbf16>, vector<32x256xf32> -> vector<32x256xf32>
    %178 = vector.shape_cast %168 : vector<2x16x128xbf16> to vector<32x128xbf16>
    %c128_79 = arith.constant 128 : index
    %c0_80 = arith.constant 0 : index
    %179 = vector.load %arg15[%c128_79, %c0_80] : memref<384x256xbf16, #tpu.memory_space<vmem>>, vector<128x256xbf16>
    %cst_81 = arith.constant dense<0.000000e+00> : vector<32x256xf32>
    %180 = tpu.matmul %178, %179, %cst_81 {dimension_numbers = #tpu.dot_dimension_numbers<[1], [0], [0], [1], [0, 0, 1, 1], [], []>} : vector<32x128xbf16>, vector<128x256xbf16>, vector<32x256xf32> -> vector<32x256xf32>
    %181 = arith.addf %177, %180 : vector<32x256xf32>
    %182 = vector.shape_cast %174 : vector<2x16x128xbf16> to vector<32x128xbf16>
    %c256_82 = arith.constant 256 : index
    %c0_83 = arith.constant 0 : index
    %183 = vector.load %arg15[%c256_82, %c0_83] : memref<384x256xbf16, #tpu.memory_space<vmem>>, vector<128x256xbf16>
    %cst_84 = arith.constant dense<0.000000e+00> : vector<32x256xf32>
    %184 = tpu.matmul %182, %183, %cst_84 {dimension_numbers = #tpu.dot_dimension_numbers<[1], [0], [0], [1], [0, 0, 1, 1], [], []>} : vector<32x128xbf16>, vector<128x256xbf16>, vector<32x256xf32> -> vector<32x256xf32>
    %185 = arith.addf %181, %184 : vector<32x256xf32>
    %186 = vector.shape_cast %185 : vector<32x256xf32> to vector<2x16x256xf32>
    %c0_85 = arith.constant 0 : index
    %c0_86 = arith.constant 0 : index
    %187 = vector.load %arg16[%c0_85, %c0_86] : memref<2x256xf32, #tpu.memory_space<vmem>>, vector<1x256xf32>
    %188 = vector.shape_cast %187 : vector<1x256xf32> to vector<1x1x256xf32>
    %189 = vector.broadcast %188 : vector<1x1x256xf32> to vector<2x16x256xf32>
    %190 = arith.mulf %186, %189 : vector<2x16x256xf32>
    %c1_87 = arith.constant 1 : index
    %c0_88 = arith.constant 0 : index
    %191 = vector.load %arg16[%c1_87, %c0_88] : memref<2x256xf32, #tpu.memory_space<vmem>>, vector<1x256xf32>
    %192 = vector.shape_cast %191 : vector<1x256xf32> to vector<1x1x256xf32>
    %193 = vector.broadcast %192 : vector<1x1x256xf32> to vector<2x16x256xf32>
    %194 = arith.addf %190, %193 : vector<2x16x256xf32>
    %cst_89 = arith.constant 0.000000e+00 : f32
    %195 = vector.broadcast %cst_89 : f32 to vector<2x16x256xf32>
    %196 = arith.cmpf ogt, %194, %195 : vector<2x16x256xf32>
    %cst_90 = arith.constant 0.000000e+00 : f32
    %197 = vector.broadcast %cst_90 : f32 to vector<2x16x256xf32>
    %198 = arith.minimumf %194, %197 : vector<2x16x256xf32>
    %199 = math.exp %198 : vector<2x16x256xf32>
    %cst_91 = arith.constant 1.000000e+00 : f32
    %200 = vector.broadcast %cst_91 : f32 to vector<2x16x256xf32>
    %201 = arith.subf %199, %200 : vector<2x16x256xf32>
    %202 = arith.select %196, %194, %201 : vector<2x16x256xi1>, vector<2x16x256xf32>
    %203 = vector.broadcast %9 : vector<2x1x1xf32> to vector<2x16x256xf32>
    %204 = arith.mulf %202, %203 : vector<2x16x256xf32>
    %205 = arith.truncf %204 : vector<2x16x256xf32> to vector<2x16x256xbf16>
    %c0_92 = arith.constant 0 : index
    %c0_93 = arith.constant 0 : index
    %206 = vector.load %arg17[%c0_92, %c0_93] : memref<2x256xf32, #tpu.memory_space<vmem>>, vector<1x256xf32>
    %c1_94 = arith.constant 1 : index
    %c0_95 = arith.constant 0 : index
    %207 = vector.load %arg17[%c1_94, %c0_95] : memref<2x256xf32, #tpu.memory_space<vmem>>, vector<1x256xf32>
    %208 = arith.extf %107 : vector<2x16x256xbf16> to vector<2x16x256xf32>
    %209 = vector.shape_cast %206 : vector<1x256xf32> to vector<1x1x256xf32>
    %210 = vector.broadcast %209 : vector<1x1x256xf32> to vector<2x16x256xf32>
    %211 = arith.mulf %208, %210 : vector<2x16x256xf32>
    %cst_96 = arith.constant dense<0.000000e+00> : vector<2x16xf32>
    %212 = vector.multi_reduction <add>, %211, %cst_96 [2] : vector<2x16x256xf32> to vector<2x16xf32>
    %213 = vector.shape_cast %212 : vector<2x16xf32> to vector<2x16x1xf32>
    %214 = arith.extf %205 : vector<2x16x256xbf16> to vector<2x16x256xf32>
    %215 = vector.shape_cast %207 : vector<1x256xf32> to vector<1x1x256xf32>
    %216 = vector.broadcast %215 : vector<1x1x256xf32> to vector<2x16x256xf32>
    %217 = arith.mulf %214, %216 : vector<2x16x256xf32>
    %cst_97 = arith.constant dense<0.000000e+00> : vector<2x16xf32>
    %218 = vector.multi_reduction <add>, %217, %cst_97 [2] : vector<2x16x256xf32> to vector<2x16xf32>
    %219 = vector.shape_cast %218 : vector<2x16xf32> to vector<2x1x16xf32>
    %220 = vector.broadcast %213 : vector<2x16x1xf32> to vector<2x16x16xf32>
    %221 = vector.broadcast %219 : vector<2x1x16xf32> to vector<2x16x16xf32>
    %222 = arith.addf %220, %221 : vector<2x16x16xf32>
    %c0_98 = arith.constant 0 : index
    %c0_99 = arith.constant 0 : index
    %223 = vector.load %arg18[%c0_98, %c0_99] : memref<1x1xf32, #tpu.memory_space<vmem>>, vector<1x1xf32>
    %224 = vector.shape_cast %223 : vector<1x1xf32> to vector<1x1x1xf32>
    %225 = vector.broadcast %224 : vector<1x1x1xf32> to vector<2x16x16xf32>
    %226 = arith.addf %222, %225 : vector<2x16x16xf32>
    %cst_100 = arith.constant 0.000000e+00 : f32
    %227 = vector.broadcast %cst_100 : f32 to vector<2x16x16xf32>
    %228 = arith.cmpf ogt, %226, %227 : vector<2x16x16xf32>
    %cst_101 = arith.constant 2.000000e-01 : f32
    %229 = vector.broadcast %cst_101 : f32 to vector<2x16x16xf32>
    %230 = arith.mulf %229, %226 : vector<2x16x16xf32>
    %231 = arith.select %228, %226, %230 : vector<2x16x16xi1>, vector<2x16x16xf32>
    %232 = tpu.iota {dimensions = array<i32: 1>} : vector<2x16x16xi32>
    %233 = tpu.iota {dimensions = array<i32: 2>} : vector<2x16x16xi32>
    %c0_102 = arith.constant 0 : index
    %c0_103 = arith.constant 0 : index
    %c0_104 = arith.constant 0 : index
    %234 = vector.load %arg1[%c0_102, %c0_103, %c0_104] : memref<2x1x1xi32, #tpu.memory_space<vmem>>, vector<2x1x1xi32>
    %235 = vector.broadcast %234 : vector<2x1x1xi32> to vector<2x16x16xi32>
    %236 = arith.cmpi sge, %232, %235 : vector<2x16x16xi32>
    %c0_105 = arith.constant 0 : index
    %c0_106 = arith.constant 0 : index
    %c0_107 = arith.constant 0 : index
    %237 = vector.load %arg2[%c0_105, %c0_106, %c0_107] : memref<2x1x1xi32, #tpu.memory_space<vmem>>, vector<2x1x1xi32>
    %238 = vector.broadcast %237 : vector<2x1x1xi32> to vector<2x16x16xi32>
    %239 = arith.cmpi sge, %233, %238 : vector<2x16x16xi32>
    %240 = arith.ori %236, %239 : vector<2x16x16xi1>
    %cst_108 = arith.constant -1.000000e+09 : f32
    %cst_109 = arith.constant 0.000000e+00 : f32
    %241 = vector.broadcast %cst_108 : f32 to vector<2x16x16xf32>
    %242 = vector.broadcast %cst_109 : f32 to vector<2x16x16xf32>
    %243 = arith.select %240, %241, %242 : vector<2x16x16xi1>, vector<2x16x16xf32>
    %244 = arith.addf %231, %243 : vector<2x16x16xf32>
    %cst_110 = arith.constant dense<0xFF800000> : vector<2x16xf32>
    %245 = vector.multi_reduction <maximumf>, %244, %cst_110 [2] : vector<2x16x16xf32> to vector<2x16xf32>
    %246 = vector.shape_cast %245 : vector<2x16xf32> to vector<2x16x1xf32>
    %247 = vector.broadcast %246 : vector<2x16x1xf32> to vector<2x16x16xf32>
    %248 = arith.subf %244, %247 : vector<2x16x16xf32>
    %249 = math.exp %248 : vector<2x16x16xf32>
    %cst_111 = arith.constant dense<0.000000e+00> : vector<2x16xf32>
    %250 = vector.multi_reduction <add>, %249, %cst_111 [2] : vector<2x16x16xf32> to vector<2x16xf32>
    %251 = vector.shape_cast %250 : vector<2x16xf32> to vector<2x16x1xf32>
    %252 = tpu.reciprocal %251 {approx = true} : vector<2x16x1xf32> -> vector<2x16x1xf32>
    %253 = vector.broadcast %252 : vector<2x16x1xf32> to vector<2x16x16xf32>
    %254 = arith.mulf %249, %253 : vector<2x16x16xf32>
    %255 = arith.truncf %254 : vector<2x16x16xf32> to vector<2x16x16xbf16>
    "tpu.trace_start"() <{level = 10 : i32, message = "bqk,bkc->bqc"}> : () -> ()
    %cst_112 = arith.constant dense<0.000000e+00> : vector<2x16x256xf32>
    %256 = tpu.matmul %255, %205, %cst_112 {dimension_numbers = #tpu.dot_dimension_numbers<[2], [1], [1], [2], [0, 0, 0, 1, 1, 2], [0], [0]>} : vector<2x16x16xbf16>, vector<2x16x256xbf16>, vector<2x16x256xf32> -> vector<2x16x256xf32>
    "tpu.trace_stop"() : () -> ()
    %257 = arith.truncf %256 : vector<2x16x256xf32> to vector<2x16x256xbf16>
    %258 = tpu.concatenate %107, %257 in 2 : vector<2x16x256xbf16>, vector<2x16x256xbf16> -> vector<2x16x512xbf16>
    %c0_113 = arith.constant 0 : index
    %c0_114 = arith.constant 0 : index
    %259 = vector.load %arg19[%c0_113, %c0_114] : memref<2x512xf32, #tpu.memory_space<vmem>>, vector<1x512xf32>
    %260 = arith.extf %258 : vector<2x16x512xbf16> to vector<2x16x512xf32>
    %261 = vector.shape_cast %259 : vector<1x512xf32> to vector<1x1x512xf32>
    %262 = vector.broadcast %261 : vector<1x1x512xf32> to vector<2x16x512xf32>
    %263 = arith.mulf %260, %262 : vector<2x16x512xf32>
    %c1_115 = arith.constant 1 : index
    %c0_116 = arith.constant 0 : index
    %264 = vector.load %arg19[%c1_115, %c0_116] : memref<2x512xf32, #tpu.memory_space<vmem>>, vector<1x512xf32>
    %265 = vector.shape_cast %264 : vector<1x512xf32> to vector<1x1x512xf32>
    %266 = vector.broadcast %265 : vector<1x1x512xf32> to vector<2x16x512xf32>
    %267 = arith.addf %263, %266 : vector<2x16x512xf32>
    %cst_117 = arith.constant 0.000000e+00 : f32
    %268 = vector.broadcast %cst_117 : f32 to vector<2x16x512xf32>
    %269 = arith.cmpf ogt, %267, %268 : vector<2x16x512xf32>
    %cst_118 = arith.constant 0.000000e+00 : f32
    %270 = vector.broadcast %cst_118 : f32 to vector<2x16x512xf32>
    %271 = arith.minimumf %267, %270 : vector<2x16x512xf32>
    %272 = math.exp %271 : vector<2x16x512xf32>
    %cst_119 = arith.constant 1.000000e+00 : f32
    %273 = vector.broadcast %cst_119 : f32 to vector<2x16x512xf32>
    %274 = arith.subf %272, %273 : vector<2x16x512xf32>
    %275 = arith.select %269, %267, %274 : vector<2x16x512xi1>, vector<2x16x512xf32>
    %276 = vector.broadcast %4 : vector<2x1x1xf32> to vector<2x16x512xf32>
    %277 = arith.mulf %275, %276 : vector<2x16x512xf32>
    %cst_120 = arith.constant dense<0xFF800000> : vector<2x512xf32>
    %278 = vector.multi_reduction <maximumf>, %277, %cst_120 [1] : vector<2x16x512xf32> to vector<2x512xf32>
    %279 = arith.truncf %278 : vector<2x512xf32> to vector<2x512xbf16>
    %c0_121 = arith.constant 0 : index
    %c0_122 = arith.constant 0 : index
    %280 = vector.load %arg20[%c0_121, %c0_122] : memref<512x256xbf16, #tpu.memory_space<vmem>>, vector<512x256xbf16>
    %cst_123 = arith.constant dense<0.000000e+00> : vector<2x256xf32>
    %281 = tpu.matmul %279, %280, %cst_123 {dimension_numbers = #tpu.dot_dimension_numbers<[1], [0], [0], [1], [0, 0, 1, 1], [], []>} : vector<2x512xbf16>, vector<512x256xbf16>, vector<2x256xf32> -> vector<2x256xf32>
    %c0_124 = arith.constant 0 : index
    %c0_125 = arith.constant 0 : index
    %282 = vector.load %arg21[%c0_124, %c0_125] : memref<2x256xf32, #tpu.memory_space<vmem>>, vector<1x256xf32>
    %283 = vector.broadcast %282 : vector<1x256xf32> to vector<2x256xf32>
    %284 = arith.addf %281, %283 : vector<2x256xf32>
    %cst_126 = arith.constant 0.000000e+00 : f32
    %285 = vector.broadcast %cst_126 : f32 to vector<2x256xf32>
    %286 = arith.cmpf ogt, %284, %285 : vector<2x256xf32>
    %cst_127 = arith.constant 0.000000e+00 : f32
    %287 = vector.broadcast %cst_127 : f32 to vector<2x256xf32>
    %288 = arith.minimumf %284, %287 : vector<2x256xf32>
    %289 = math.exp %288 : vector<2x256xf32>
    %cst_128 = arith.constant 1.000000e+00 : f32
    %290 = vector.broadcast %cst_128 : f32 to vector<2x256xf32>
    %291 = arith.subf %289, %290 : vector<2x256xf32>
    %292 = arith.select %286, %284, %291 : vector<2x256xi1>, vector<2x256xf32>
    %c1_129 = arith.constant 1 : index
    %c0_130 = arith.constant 0 : index
    %293 = vector.load %arg21[%c1_129, %c0_130] : memref<2x256xf32, #tpu.memory_space<vmem>>, vector<1x256xf32>
    %294 = vector.broadcast %293 : vector<1x256xf32> to vector<2x256xf32>
    %295 = arith.mulf %292, %294 : vector<2x256xf32>
    %cst_131 = arith.constant dense<0.000000e+00> : vector<2xf32>
    %296 = vector.multi_reduction <add>, %295, %cst_131 [1] : vector<2x256xf32> to vector<2xf32>
    %297 = vector.shape_cast %296 : vector<2xf32> to vector<2x1xf32>
    %c0_132 = arith.constant 0 : index
    %c0_133 = arith.constant 0 : index
    %298 = vector.load %arg22[%c0_132, %c0_133] : memref<1x1xf32, #tpu.memory_space<vmem>>, vector<1x1xf32>
    %299 = vector.broadcast %298 : vector<1x1xf32> to vector<2x1xf32>
    %300 = arith.addf %297, %299 : vector<2x1xf32>
    %c0_134 = arith.constant 0 : index
    %c0_135 = arith.constant 0 : index
    %301 = vector.load %arg23[%c0_134, %c0_135] : memref<512x256xbf16, #tpu.memory_space<vmem>>, vector<512x256xbf16>
    %cst_136 = arith.constant dense<0.000000e+00> : vector<2x256xf32>
    %302 = tpu.matmul %279, %301, %cst_136 {dimension_numbers = #tpu.dot_dimension_numbers<[1], [0], [0], [1], [0, 0, 1, 1], [], []>} : vector<2x512xbf16>, vector<512x256xbf16>, vector<2x256xf32> -> vector<2x256xf32>
    %c0_137 = arith.constant 0 : index
    %c0_138 = arith.constant 0 : index
    %303 = vector.load %arg24[%c0_137, %c0_138] : memref<2x256xf32, #tpu.memory_space<vmem>>, vector<1x256xf32>
    %304 = vector.broadcast %303 : vector<1x256xf32> to vector<2x256xf32>
    %305 = arith.addf %302, %304 : vector<2x256xf32>
    %cst_139 = arith.constant 0.000000e+00 : f32
    %306 = vector.broadcast %cst_139 : f32 to vector<2x256xf32>
    %307 = arith.cmpf ogt, %305, %306 : vector<2x256xf32>
    %cst_140 = arith.constant 0.000000e+00 : f32
    %308 = vector.broadcast %cst_140 : f32 to vector<2x256xf32>
    %309 = arith.minimumf %305, %308 : vector<2x256xf32>
    %310 = math.exp %309 : vector<2x256xf32>
    %cst_141 = arith.constant 1.000000e+00 : f32
    %311 = vector.broadcast %cst_141 : f32 to vector<2x256xf32>
    %312 = arith.subf %310, %311 : vector<2x256xf32>
    %313 = arith.select %307, %305, %312 : vector<2x256xi1>, vector<2x256xf32>
    %c1_142 = arith.constant 1 : index
    %c0_143 = arith.constant 0 : index
    %314 = vector.load %arg24[%c1_142, %c0_143] : memref<2x256xf32, #tpu.memory_space<vmem>>, vector<1x256xf32>
    %315 = vector.broadcast %314 : vector<1x256xf32> to vector<2x256xf32>
    %316 = arith.mulf %313, %315 : vector<2x256xf32>
    %cst_144 = arith.constant dense<0.000000e+00> : vector<2xf32>
    %317 = vector.multi_reduction <add>, %316, %cst_144 [1] : vector<2x256xf32> to vector<2xf32>
    %318 = vector.shape_cast %317 : vector<2xf32> to vector<2x1xf32>
    %c0_145 = arith.constant 0 : index
    %c0_146 = arith.constant 0 : index
    %319 = vector.load %arg25[%c0_145, %c0_146] : memref<1x1xf32, #tpu.memory_space<vmem>>, vector<1x1xf32>
    %320 = vector.broadcast %319 : vector<1x1xf32> to vector<2x1xf32>
    %321 = arith.addf %318, %320 : vector<2x1xf32>
    %322 = arith.negf %321 : vector<2x1xf32>
    %323 = math.exp %322 : vector<2x1xf32>
    %cst_147 = arith.constant 1.000000e+00 : f32
    %324 = vector.broadcast %cst_147 : f32 to vector<2x1xf32>
    %325 = arith.addf %324, %323 : vector<2x1xf32>
    %326 = arith.divf %324, %325 : vector<2x1xf32>
    %327 = tpu.concatenate %300, %326 in 1 : vector<2x1xf32>, vector<2x1xf32> -> vector<2x2xf32>
    %328 = vector.shape_cast %327 : vector<2x2xf32> to vector<2x1x2xf32>
    %c0_148 = arith.constant 0 : index
    %c0_149 = arith.constant 0 : index
    %c0_150 = arith.constant 0 : index
    %329 = vector.load %arg26[%c0_148, %c0_149, %c0_150] : memref<2x1x2xf32, #tpu.memory_space<vmem>>, vector<2x1x2xf32>
    tpu.vector_store %arg26[%c0_148, %c0_149, %c0_150], %328 {strides = array<i32>} : memref<2x1x2xf32, #tpu.memory_space<vmem>>, vector<2x1x2xf32>,
    return
  }
  func.func @transform_0(%arg0: i32) -> (i32, i32, i32) {
    %c0_i32 = arith.constant 0 : i32
    %c0_i32_0 = arith.constant 0 : i32
    %c0_i32_1 = arith.constant 0 : i32
    return %arg0, %c0_i32, %c0_i32_0 : i32, i32, i32
  }
  func.func @transform_1(%arg0: i32) -> (i32, i32, i32) {
    %c0_i32 = arith.constant 0 : i32
    %c0_i32_0 = arith.constant 0 : i32
    %c0_i32_1 = arith.constant 0 : i32
    return %arg0, %c0_i32, %c0_i32_0 : i32, i32, i32
  }
  func.func @transform_2(%arg0: i32) -> (i32, i32, i32) {
    %c0_i32 = arith.constant 0 : i32
    %c0_i32_0 = arith.constant 0 : i32
    %c0_i32_1 = arith.constant 0 : i32
    return %arg0, %c0_i32, %c0_i32_0 : i32, i32, i32
  }
  func.func @transform_3(%arg0: i32) -> (i32, i32, i32) {
    %c0_i32 = arith.constant 0 : i32
    %c0_i32_0 = arith.constant 0 : i32
    %c0_i32_1 = arith.constant 0 : i32
    return %arg0, %c0_i32, %c0_i32_0 : i32, i32, i32
  }
  func.func @transform_4(%arg0: i32) -> (i32, i32) {
    %c0_i32 = arith.constant 0 : i32
    %c0_i32_0 = arith.constant 0 : i32
    %c0_i32_1 = arith.constant 0 : i32
    return %c0_i32, %c0_i32_0 : i32, i32
  }
  func.func @transform_5(%arg0: i32) -> (i32, i32) {
    %c0_i32 = arith.constant 0 : i32
    %c0_i32_0 = arith.constant 0 : i32
    %c0_i32_1 = arith.constant 0 : i32
    return %c0_i32, %c0_i32_0 : i32, i32
  }
  func.func @transform_6(%arg0: i32) -> (i32, i32) {
    %c0_i32 = arith.constant 0 : i32
    %c0_i32_0 = arith.constant 0 : i32
    %c0_i32_1 = arith.constant 0 : i32
    return %c0_i32, %c0_i32_0 : i32, i32
  }
  func.func @transform_7(%arg0: i32) -> (i32, i32) {
    %c0_i32 = arith.constant 0 : i32
    %c0_i32_0 = arith.constant 0 : i32
    %c0_i32_1 = arith.constant 0 : i32
    return %c0_i32, %c0_i32_0 : i32, i32
  }
  func.func @transform_8(%arg0: i32) -> (i32, i32) {
    %c0_i32 = arith.constant 0 : i32
    %c0_i32_0 = arith.constant 0 : i32
    %c0_i32_1 = arith.constant 0 : i32
    return %c0_i32, %c0_i32_0 : i32, i32
  }
  func.func @transform_9(%arg0: i32) -> (i32, i32) {
    %c0_i32 = arith.constant 0 : i32
    %c0_i32_0 = arith.constant 0 : i32
    %c0_i32_1 = arith.constant 0 : i32
    return %c0_i32, %c0_i32_0 : i32, i32
  }
  func.func @transform_10(%arg0: i32) -> (i32, i32) {
    %c0_i32 = arith.constant 0 : i32
    %c0_i32_0 = arith.constant 0 : i32
    %c0_i32_1 = arith.constant 0 : i32
    return %c0_i32, %c0_i32_0 : i32, i32
  }
  func.func @transform_11(%arg0: i32) -> (i32, i32) {
    %c0_i32 = arith.constant 0 : i32
    %c0_i32_0 = arith.constant 0 : i32
    %c0_i32_1 = arith.constant 0 : i32
    return %c0_i32, %c0_i32_0 : i32, i32
  }
  func.func @transform_12(%arg0: i32) -> (i32, i32) {
    %c0_i32 = arith.constant 0 : i32
    %c0_i32_0 = arith.constant 0 : i32
    %c0_i32_1 = arith.constant 0 : i32
    return %c0_i32, %c0_i32_0 : i32, i32
  }
  func.func @transform_13(%arg0: i32) -> (i32, i32) {
    %c0_i32 = arith.constant 0 : i32
    %c0_i32_0 = arith.constant 0 : i32
    %c0_i32_1 = arith.constant 0 : i32
    return %c0_i32, %c0_i32_0 : i32, i32
  }
  func.func @transform_14(%arg0: i32) -> (i32, i32) {
    %c0_i32 = arith.constant 0 : i32
    %c0_i32_0 = arith.constant 0 : i32
    %c0_i32_1 = arith.constant 0 : i32
    return %c0_i32, %c0_i32_0 : i32, i32
  }
  func.func @transform_15(%arg0: i32) -> (i32, i32) {
    %c0_i32 = arith.constant 0 : i32
    %c0_i32_0 = arith.constant 0 : i32
    %c0_i32_1 = arith.constant 0 : i32
    return %c0_i32, %c0_i32_0 : i32, i32
  }
  func.func @transform_16(%arg0: i32) -> (i32, i32) {
    %c0_i32 = arith.constant 0 : i32
    %c0_i32_0 = arith.constant 0 : i32
    %c0_i32_1 = arith.constant 0 : i32
    return %c0_i32, %c0_i32_0 : i32, i32
  }
  func.func @transform_17(%arg0: i32) -> (i32, i32) {
    %c0_i32 = arith.constant 0 : i32
    %c0_i32_0 = arith.constant 0 : i32
    %c0_i32_1 = arith.constant 0 : i32
    return %c0_i32, %c0_i32_0 : i32, i32
  }
  func.func @transform_18(%arg0: i32) -> (i32, i32) {
    %c0_i32 = arith.constant 0 : i32
    %c0_i32_0 = arith.constant 0 : i32
    %c0_i32_1 = arith.constant 0 : i32
    return %c0_i32, %c0_i32_0 : i32, i32
  }
  func.func @transform_19(%arg0: i32) -> (i32, i32) {
    %c0_i32 = arith.constant 0 : i32
    %c0_i32_0 = arith.constant 0 : i32
    %c0_i32_1 = arith.constant 0 : i32
    return %c0_i32, %c0_i32_0 : i32, i32
  }
  func.func @transform_20(%arg0: i32) -> (i32, i32) {
    %c0_i32 = arith.constant 0 : i32
    %c0_i32_0 = arith.constant 0 : i32
    %c0_i32_1 = arith.constant 0 : i32
    return %c0_i32, %c0_i32_0 : i32, i32
  }
  func.func @transform_21(%arg0: i32) -> (i32, i32) {
    %c0_i32 = arith.constant 0 : i32
    %c0_i32_0 = arith.constant 0 : i32
    %c0_i32_1 = arith.constant 0 : i32
    return %c0_i32, %c0_i32_0 : i32, i32
  }
  func.func @transform_22(%arg0: i32) -> (i32, i32) {
    %c0_i32 = arith.constant 0 : i32
    %c0_i32_0 = arith.constant 0 : i32
    %c0_i32_1 = arith.constant 0 : i32
    return %c0_i32, %c0_i32_0 : i32, i32
  }
  func.func @transform_23(%arg0: i32) -> (i32, i32) {
    %c0_i32 = arith.constant 0 : i32
    %c0_i32_0 = arith.constant 0 : i32
    %c0_i32_1 = arith.constant 0 : i32
    return %c0_i32, %c0_i32_0 : i32, i32
  }
  func.func @transform_24(%arg0: i32) -> (i32, i32) {
    %c0_i32 = arith.constant 0 : i32
    %c0_i32_0 = arith.constant 0 : i32
    %c0_i32_1 = arith.constant 0 : i32
    return %c0_i32, %c0_i32_0 : i32, i32
  }
  func.func @transform_25(%arg0: i32) -> (i32, i32, i32) {
    %c0_i32 = arith.constant 0 : i32
    %c0_i32_0 = arith.constant 0 : i32
    %c0_i32_1 = arith.constant 0 : i32
    return %arg0, %c0_i32, %c0_i32_0 : i32, i32, i32
  }
}

</mosaic_0001>

<bundles_post_ra>
// kernel: forward.1
= control target key start
LH: loop header
LB: loop body
LE: loop exit
PB: predicated region body
PF: predicated region fallthrough
CT: control target
= control target key end

     0   :  { %s6080_s0 = inlined_call_operand.vmem [shape: s32[2,1,1], index: 0, kind: input, shape index: {}]   ;;  %s6081_s1 = inlined_call_operand.vmem [shape: s32[2,1,1], index: 1, kind: input, shape index: {}]   ;;  %s6082_s2 = inlined_call_operand.vmem [shape: bf16[2,16,32], index: 2, kind: input, shape index: {}]   ;;  %s6083_s3 = inlined_call_operand.vmem [shape: bf16[2,16,32], index: 3, kind: input, shape index: {}]   ;;  %s6084_s4 = inlined_call_operand.vmem [shape: bf16[96,64], index: 4, kind: input, shape index: {}]   ;;  %s6085_s5 = inlined_call_operand.hbm [shape: f32[2,64], index: 5, kind: input, shape index: {}]   ;;  %s6086_s6 = inlined_call_operand.vmem [shape: bf16[192,128], index: 6, kind: input, shape index: {}]   ;;  %s6087_s7 = inlined_call_operand.hbm [shape: f32[2,128], index: 7, kind: input, shape index: {}]   ;;  %s6088_s8 = inlined_call_operand.hbm [shape: bf16[384,256], index: 8, kind: input, shape index: {}]   ;;  %s6089_s9 = inlined_call_operand.vmem [shape: f32[2,256], index: 9, kind: input, shape index: {}]   ;;  %s6090_s10 = inlined_call_operand.vmem [shape: bf16[96,64], index: 10, kind: input, shape index: {}]   ;;  %s6091_s11 = inlined_call_operand.hbm [shape: f32[2,64], index: 11, kind: input, shape index: {}]   ;;  %s6092_s12 = inlined_call_operand.vmem [shape: bf16[192,128], index: 12, kind: input, shape index: {}]   ;;  %s6093_s13 = inlined_call_operand.hbm [shape: f32[2,128], index: 13, kind: input, shape index: {}]   ;;  %s6094_s14 = inlined_call_operand.hbm [shape: bf16[384,256], index: 14, kind: input, shape index: {}]   ;;  %s6095_s15 = inlined_call_operand.vmem [shape: f32[2,256], index: 15, kind: input, shape index: {}]   ;;  %s6096_s16 = inlined_call_operand.hbm [shape: f32[2,256], index: 16, kind: input, shape index: {}]   ;;  %s6097_s17 = inlined_call_operand.<no memory space> [shape: f32[1,1], index: 17, kind: input, shape index: {}]   ;;  %s6098_s18 = inlined_call_operand.vmem [shape: f32[2,512], index: 18, kind: input, shape index: {}]   ;;  %s6099_s19 = inlined_call_operand.hbm [shape: bf16[512,256], index: 19, kind: input, shape index: {}]   ;;  %s6100_s20 = inlined_call_operand.hbm [shape: f32[2,256], index: 20, kind: input, shape index: {}]   ;;  %s6101_s22 = inlined_call_operand.hbm [shape: bf16[512,256], index: 22, kind: input, shape index: {}]   ;;  %s6102_s23 = inlined_call_operand.hbm [shape: f32[2,256], index: 23, kind: input, shape index: {}]   ;;  %s6103_s25 = inlined_call_operand.vmem [shape: f32[2,1,2], index: 25, kind: output, shape index: {}]   ;;  %s6104_s21 = inlined_call_operand.<no memory space> [shape: f32[1,1], index: 21, kind: input, shape index: {}]   ;;  %s6105_s24 = inlined_call_operand.<no memory space> [shape: f32[1,1], index: 24, kind: input, shape index: {}]  }
   0x1   :  { %6113 = sst [smem:[#allocation28_spill]] %s6080_s0  ;;  %v30_v0 = vstv %s6097_s17  ;;  %v32_v1 = vstv %s6104_s21  ;;  %v34_v2 = vstv %s6105_s24 }
   0x2   :  { %6114 = sst [smem:[#allocation29_spill]] %s6081_s1  ;;  %31 = vst [vmem:[#allocation2] sm:$0x1] %v30_v0  ;;  %33 = vst [vmem:[#allocation3] sm:$0x1] %v32_v1 }
   0x3   :  { %6115 = sst [smem:[#allocation30_spill]] %s6082_s2  ;;  %35 = vst [vmem:[#allocation4] sm:$0x1] %v34_v2 }
   0x4   :  { %6116 = sst [smem:[#allocation31_spill]] %s6083_s3 }
   0x5   :  { %6117 = sst [smem:[#allocation32_spill]] %s6084_s4 }
   0x6   :  { %6118 = sst [smem:[#allocation33_spill]] %s6085_s5 }
   0x7   :  { %6119 = sst [smem:[#allocation34_spill]] %s6086_s6 }
   0x8   :  { %6120 = sst [smem:[#allocation35_spill]] %s6087_s7 }
   0x9   :  { %6121 = sst [smem:[#allocation36_spill]] %s6088_s8 }
   0xa   :  { %6122 = sst [smem:[#allocation37_spill]] %s6089_s9 }
   0xb   :  { %36 = vsyncpa [#allocation6], 0 }
   0xc   :  { %37 = vsyncpa [#allocation8], 0 }
   0xd   :  { %38 = vsyncpa [#allocation11], 0 }
   0xe   :  { %39 = vsyncpa [#allocation14], 0 }
   0xf   :  { %40 = vsyncpa [#allocation17], 0 }
  0x10   :  { %41 = vsyncpa [#allocation20], 0  ;;  %s5189_s26 = smov [#allocation7]   ;;  %s5190_s17 = smov [#allocation10]  }
  0x11   :  { %s70_s1 = sshll.u32 %s5189_s26, 4  ;;  %s96_s8 = sshll.u32 %s5190_s17, 4  ;;  %s71_s1 = int_to_ptr.vmem [resolvable:$true] %s70_s1  ;;  %s97_s8 = int_to_ptr.vmem [resolvable:$true] %s96_s8 }
  0x12   :  { %s4965_s21 = scalar_lea.vmem %s71_s1, 32  ;;  %p4970_p1 = scmp.lt.s32.totalorder %s71_s1, %s71_s1 }
  0x13   :  { %p4966_p0 = scmp.ne.s32.totalorder %s71_s1, %s4965_s21  ;;  %p4971_p2 = scmp.lt.s32.totalorder %s4965_s21, %s4965_s21 }
  0x15   :  { %p4972_p3 = por %p4971_p2, %p4970_p1 }
  0x17   :  { %p4973_p4 = pnand %p4972_p3, %p4966_p0 }
  0x19   :  { %4976 = shalt.err (!%p4973_p4)
}
  0x1a   :  { %s6123_s4 = sld [smem:[#allocation35_spill]]  ;;  %s4985_s28 = scalar_lea.vmem %s97_s8, 32 }
  0x1b   :  { %p4986_p5 = scmp.ne.s32.totalorder %s97_s8, %s4985_s28  ;;  %p4990_p6 = scmp.lt.s32.totalorder %s97_s8, %s97_s8 }
  0x1c   :  { %p4991_p7 = scmp.lt.s32.totalorder %s4985_s28, %s4985_s28 }
  0x1e   :  { %p4992_p8 = por %p4991_p7, %p4990_p6 }
  0x20   :  { %73 = dma.hbm_to_vmem [thread:$0]  %s6123_s4, 32, %s71_s1, [#allocation8]  }
  0x21   :  { %p4993_p9 = pnand %p4992_p8, %p4986_p5 }
  0x23   :  { %4996 = shalt.err (!%p4993_p9)
}
  0x24   :  { %99 = dma.hbm_to_vmem [thread:$0]  %s6091_s11, 32, %s97_s8, [#allocation11]  }
  0x25   :  { %s5191_s0 = smov [#allocation13]   ;;  %s5192_s2 = smov [#allocation16]  }
  0x26   :  { %s117_s29 = sshll.u32 %s5191_s0, 4  ;;  %s145_s6 = sshll.u32 %s5192_s2, 4  ;;  %s118_s29 = int_to_ptr.vmem [resolvable:$true] %s117_s29  ;;  %s146_s6 = int_to_ptr.vmem [resolvable:$true] %s145_s6 }
  0x27   :  { %s5005_s30 = scalar_lea.vmem %s118_s29, 6144  ;;  %p5010_p11 = scmp.lt.s32.totalorder %s118_s29, %s118_s29 }
  0x28   :  { %p5006_p10 = scmp.ne.s32.totalorder %s118_s29, %s5005_s30  ;;  %p5011_p12 = scmp.lt.s32.totalorder %s5005_s30, %s5005_s30 }
  0x2a   :  { %p5012_p13 = por %p5011_p12, %p5010_p11 }
  0x2c   :  { %p5013_p0 = pnand %p5012_p13, %p5006_p10 }
  0x2e   :  { %5016 = shalt.err (!%p5013_p0)
}
  0x2f   :  { %s5193_s7 = smov 128   ;;  %s5194_s3 = smov 8  }
  0x30   :  { %123 = dma.hbm_to_vmem [thread:$0]  %s6094_s14, 6144, %s118_s29, [#allocation14], %s5193_s7, %s5193_s7, %s5194_s3  }
  0x31   :  { %s5025_s1 = scalar_lea.vmem %s146_s6, 8192  ;;  %p5030_p2 = scmp.lt.s32.totalorder %s146_s6, %s146_s6 }
  0x32   :  { %p5026_p1 = scmp.ne.s32.totalorder %s146_s6, %s5025_s1  ;;  %p5031_p3 = scmp.lt.s32.totalorder %s5025_s1, %s5025_s1 }
  0x34   :  { %p5032_p4 = por %p5031_p3, %p5030_p2 }
  0x36   :  { %p5033_p5 = pnand %p5032_p4, %p5026_p1 }
  0x38   :  { %5036 = shalt.err (!%p5033_p5)
}
  0x39   :  { %151 = dma.hbm_to_vmem [thread:$0]  %s6099_s19, 8192, %s146_s6, [#allocation17], %s5193_s7, %s5193_s7, %s5194_s3  }
  0x3a   :  { %s5195_s21 = smov [#allocation19]   ;;  %s5196_s27 = smov [#allocation5]  }
  0x3b   :  { %s169_s24 = sshll.u32 %s5195_s21, 4  ;;  %s58_s4 = sshll.u32 %s5196_s27, 4  ;;  %s170_s24 = int_to_ptr.vmem [resolvable:$true] %s169_s24  ;;  %s59_s4 = int_to_ptr.vmem [resolvable:$true] %s58_s4 }
  0x3c   :  { %s5045_s14 = scalar_lea.vmem %s170_s24, 8192  ;;  %p5050_p7 = scmp.lt.s32.totalorder %s170_s24, %s170_s24 }
  0x3d   :  { %p5046_p6 = scmp.ne.s32.totalorder %s170_s24, %s5045_s14  ;;  %p5051_p8 = scmp.lt.s32.totalorder %s5045_s14, %s5045_s14 }
  0x3f   :  { %p5052_p9 = por %p5051_p8, %p5050_p7 }
  0x41   :  { %p5053_p10 = pnand %p5052_p9, %p5046_p6 }
  0x43   :  { %5056 = shalt.err (!%p5053_p10)
}
  0x44   :  { %175 = dma.hbm_to_vmem [thread:$0]  %s6101_s22, 8192, %s170_s24, [#allocation20], %s5193_s7, %s5193_s7, %s5194_s3  }
  0x45   :  { %s5065_s19 = scalar_lea.vmem %s59_s4, 32  ;;  %p5070_p12 = scmp.lt.s32.totalorder %s59_s4, %s59_s4 }
  0x46   :  { %p5066_p11 = scmp.ne.s32.totalorder %s59_s4, %s5065_s19  ;;  %p5071_p13 = scmp.lt.s32.totalorder %s5065_s19, %s5065_s19 }
  0x48   :  { %p5072_p0 = por %p5071_p13, %p5070_p12 }
  0x4a   :  { %p5073_p1 = pnand %p5072_p0, %p5066_p11 }
  0x4c   :  { %5076 = shalt.err (!%p5073_p1)
}
  0x4d   :  { %s6124_s29 = sld [smem:[#allocation33_spill]]  ;;  %s5197_s2 = smov [#allocation9]  }
  0x4e   :  { %s79_s6 = sshll.u32 %s5197_s2, 4  ;;  %s5198_s30 = smov [#allocation12]   ;;  %s80_s6 = int_to_ptr.vmem [resolvable:$true] %s79_s6 }
  0x4f   :  { %s108_s26 = sshll.u32 %s5198_s30, 4  ;;  %s5085_s11 = scalar_lea.vmem %s80_s6, 6144  ;;  %s109_s26 = int_to_ptr.vmem [resolvable:$true] %s108_s26 }
  0x50   :  { %p5086_p2 = scmp.ne.s32.totalorder %s80_s6, %s5085_s11  ;;  %p5090_p3 = scmp.lt.s32.totalorder %s80_s6, %s80_s6 }
  0x51   :  { %p5091_p4 = scmp.lt.s32.totalorder %s5085_s11, %s5085_s11 }
  0x53   :  { %61 = dma.hbm_to_vmem [thread:$0]  %s6124_s29, 32, %s59_s4, [#allocation6]  }
  0x54   :  { %p5092_p5 = por %p5091_p4, %p5090_p3 }
  0x56   :  { %p5093_p6 = pnand %p5092_p5, %p5086_p2 }
  0x58   :  { %5096 = shalt.err (!%p5093_p6)
}
  0x59   :  { %s6125_s17 = sld [smem:[#allocation36_spill]]  ;;  %s5105_s8 = scalar_lea.vmem %s109_s26, 32 }
  0x5a   :  { %p5106_p7 = scmp.ne.s32.totalorder %s109_s26, %s5105_s8  ;;  %p5110_p8 = scmp.lt.s32.totalorder %s109_s26, %s109_s26 }
  0x5b   :  { %p5111_p9 = scmp.lt.s32.totalorder %s5105_s8, %s5105_s8 }
  0x5d   :  { %p5112_p10 = por %p5111_p9, %p5110_p8 }
  0x5f   :  { %85 = dma.hbm_to_vmem [thread:$0]  %s6125_s17, 6144, %s80_s6, [#allocation8], %s5193_s7, %s5193_s7, %s5194_s3  }
  0x60   :  { %p5113_p11 = pnand %p5112_p10, %p5106_p7 }
  0x62   :  { %5116 = shalt.err (!%p5113_p11)
}
  0x63   :  { %111 = dma.hbm_to_vmem [thread:$0]  %s6093_s13, 32, %s109_s26, [#allocation11]  }
  0x64   :  { %s5199_s27 = smov [#allocation15]   ;;  %s5200_s14 = smov [#allocation18]  }
  0x65   :  { %s132_s4 = sshll.u32 %s5199_s27, 4  ;;  %s158_s28 = sshll.u32 %s5200_s14, 4  ;;  %s133_s4 = int_to_ptr.vmem [resolvable:$true] %s132_s4  ;;  %s159_s28 = int_to_ptr.vmem [resolvable:$true] %s158_s28 }
  0x66   :  { %s5125_s9 = scalar_lea.vmem %s133_s4, 64  ;;  %p5130_p13 = scmp.lt.s32.totalorder %s133_s4, %s133_s4 }
  0x67   :  { %p5126_p12 = scmp.ne.s32.totalorder %s133_s4, %s5125_s9  ;;  %p5131_p0 = scmp.lt.s32.totalorder %s5125_s9, %s5125_s9 }
  0x69   :  { %p5132_p1 = por %p5131_p0, %p5130_p13 }
  0x6b   :  { %p5133_p2 = pnand %p5132_p1, %p5126_p12 }
  0x6d   :  { %5136 = shalt.err (!%p5133_p2)
}
  0x6e   :  { %135 = dma.hbm_to_vmem [thread:$0]  %s6096_s16, 64, %s133_s4, [#allocation14]  }
  0x6f   :  { %s5145_s19 = scalar_lea.vmem %s159_s28, 64  ;;  %p5150_p4 = scmp.lt.s32.totalorder %s159_s28, %s159_s28 }
  0x70   :  { %p5146_p3 = scmp.ne.s32.totalorder %s159_s28, %s5145_s19  ;;  %p5151_p5 = scmp.lt.s32.totalorder %s5145_s19, %s5145_s19 }
  0x72   :  { %p5152_p6 = por %p5151_p5, %p5150_p4 }
  0x74   :  { %p5153_p7 = pnand %p5152_p6, %p5146_p3 }
  0x76   :  { %5156 = shalt.err (!%p5153_p7)
}
  0x77   :  { %161 = dma.hbm_to_vmem [thread:$0]  %s6100_s20, 64, %s159_s28, [#allocation17]  }
  0x78   :  { %s5201_s0 = smov [#allocation21]  }
  0x79   :  { %s182_s29 = sshll.u32 %s5201_s0, 4  ;;  %s183_s29 = int_to_ptr.vmem [resolvable:$true] %s182_s29 }
  0x7a   :  { %s5165_s2 = scalar_lea.vmem %s183_s29, 64  ;;  %p5170_p9 = scmp.lt.s32.totalorder %s183_s29, %s183_s29 }
  0x7b   :  { %p5166_p8 = scmp.ne.s32.totalorder %s183_s29, %s5165_s2  ;;  %p5171_p10 = scmp.lt.s32.totalorder %s5165_s2, %s5165_s2 }
  0x7d   :  { %p5172_p11 = por %p5171_p10, %p5170_p9 }
  0x7f   :  { %p5173_p12 = pnand %p5172_p11, %p5166_p8 }
  0x81   :  { %5176 = shalt.err (!%p5173_p12)
}
  0x82   :  { %185 = dma.hbm_to_vmem [thread:$0]  %s6102_s23, 64, %s183_s29, [#allocation20]  }
  0x83   :  { %5177 = dma.done.wait [#allocation6], 32  }
  0x84   :  { %5178 = vsyncadd [#allocation6], 4294967264 }
  0x85   :  { %5179 = dma.done.wait [#allocation8], 6176  }
  0x86   :  { %5180 = vsyncadd [#allocation8], 4294961120 }
  0x87   :  { %5181 = dma.done.wait [#allocation11], 64  }
  0x88   :  { %5182 = vsyncadd [#allocation11], 4294967232 }
  0x89   :  { %5183 = dma.done.wait [#allocation14], 6208  }
  0x8a   :  { %5184 = vsyncadd [#allocation14], 4294961088 }
  0x8b   :  { %5185 = dma.done.wait [#allocation17], 8256  }
  0x8c   :  { %5186 = vsyncadd [#allocation17], 4294959040 }
  0x8d   :  { %5187 = dma.done.wait [#allocation20], 8256  }
  0x8e   :  { %5188 = vsyncadd [#allocation20], 4294959040  ;;  %vm280_vm0 = vsmask.f32 7424  ;;  %s6126_s26 = sld [smem:[#allocation30_spill]]  ;;  %vm279_vm1 = vcmask 1047552   ;;  %v452_v14 = vlaneseq }
  0x8f   :  { %s5202_s22 = smov 32   ;;  %v5203_v7 = vmov 0   ;;  %s6127_s8 = sld [smem:[#allocation32_spill]]  ;;  %vm5410_vm2 = vmand %vm279_vm1, %vm280_vm0  ;;  %v5205_v30 = vmov 0.0   ;;  %vm268_vm5 = vcmask 1040384   ;;  %vm294_vm8 = vcmask 261120  }
  0x90   :  { %4446 = vset.pattern.permute.xlu1 %v5203_v7  ;;  %4445 = vset.pattern.permute.xlu0 %v5203_v7  ;;  %v5421_v24 = vshrl.u32 %v452_v14, 7  ;;  %s5204_s14 = smov 64   ;;  %s6130_s19 = sld [smem:[#allocation28_spill]]  ;;  %vm269_vm6 = vsmask.f32 256  ;;  %vm301_vm9 = vcmask 523264  }
  0x91   :  { %601 = vmatprep.subr.bf16.mxu1 %v5203_v7  ;;  %vm5450_vm7 = vmand %vm268_vm5, %vm269_vm6  ;;  %vm354_vm10 = vcmask 785408   ;;  %s6133_s30 = sld [smem:[#allocation34_spill]]  ;;  %v4035_v59 = vld [vmem:[#allocation5] ss:$0 sm:$0xff]  ;;  %v4036_v61 = vld [vmem:[#allocation5 + $0x1] ss:$0 sm:$0xff] }
  0x92   :  { %v5436_v29 = vsub.s32 0, %v5421_v24  ;;  %s6134_s23 = sld [smem:[#allocation31_spill]]  ;;  %vm486_vm0 = vcmask 1046528  }
  0x93   :  { %s6135_s21 = sld [smem:[#allocation29_spill]] }
  0x94   :  { %v4447_v3 = vld [vmem:[%s6126_s26] sm:$0xff]   ;;  %v4448_v4 = vld [vmem:[%s6126_s26 + $0x8] sm:$0xff]  }
  0x95   :  { %284 = vrot.lane.b32.xlu0 %v4447_v3, %s5202_s22  ;;  %v253_v5 = vshrl.u32 %v4447_v3, 16  ;;  %v256_v6 = vshll.u32 %v4447_v3, 16  ;;  %v260_v8 = vshrl.u32 %v4448_v4, 16  ;;  %v263_v9 = vshll.u32 %v4448_v4, 16  ;;  %v4449_v10 = vld [vmem:[%s6127_s8 + $0x28] sm:$0xff]   ;;  %v4450_v11 = vld [vmem:[%s6127_s8 + $0x20] sm:$0xff]  }
  0x96   :  { %4394 = vmatprep.subr.bf16.mxu0 %v4449_v10  ;;  %v4451_v21 = vld [vmem:[%s6127_s8 + $0x18] sm:$0xff]   ;;  %v4452_v26 = vld [vmem:[%s6127_s8 + $0x10] sm:$0xff]   ;;  %v223_v27 = vld [vmem:[%s6130_s19 + $0x1] sm:$0x1] }
  0x97   :  { %v273_v12 = vrot.slane %v256_v6, 1  ;;  %v255_v13 = vrot.slane %v253_v5, 7  ;;  %v262_v16 = vrot.slane %v260_v8, 7  ;;  %v275_v17 = vrot.slane %v263_v9, 1  ;;  %4395 = vmatpush3.bf16.msra.mxu0 %v4449_v10  ;;  %v222_v28 = vld [vmem:[%s6130_s19] sm:$0x1] }
  0x98   :  { %4396 = vmatprep.subr.bf16.mxu0 %v4450_v11  ;;  %vm225_vm3 = vcmp.ge.s32.totalorder %v223_v27, 1  ;;  %vm224_vm4 = vcmp.ge.s32.totalorder %v222_v28, 1  ;;  %v4453_v34 = vld [vmem:[%s6127_s8 + $0x8] sm:$0xff]   ;;  %v4454_v36 = vld [vmem:[%s6127_s8] sm:$0xff]   ;;  %v4457_v48 = vld [vmem:[%s6133_s30 + $0x38] sm:$0xff]  }
  0x99   :  { %v274_v18 = vor.u32 %v273_v12, %v253_v5  ;;  %286 = vrot.lane.b32.xlu0 %v4448_v4, %s5202_s22  ;;  %v258_v19 = vor.u32 %v256_v6, %v255_v13  ;;  %v276_v20 = vor.u32 %v275_v17, %v260_v8  ;;  %v265_v22 = vor.u32 %v263_v9, %v262_v16  ;;  %v4458_v49 = vld [vmem:[%s6133_s30 + $0x30] sm:$0xff]   ;;  %v4459_v50 = vld [vmem:[%s6133_s30 + $0x28] sm:$0xff]   ;;  %v4460_v51 = vld [vmem:[%s6133_s30 + $0x20] sm:$0xff]  }
  0x9a   :  { %v4022_v31 = vsel %vm225_vm3, 1.0, %v5205_v30  ;;  %v4021_v32 = vsel %vm224_vm4, 1.0, %v5205_v30  ;;  %602 = vmatpush1.bf16.msra.mxu1 %v4457_v48  ;;  %v4461_v52 = vld [vmem:[%s6133_s30 + $0x18] sm:$0xff]   ;;  %v4462_v53 = vld [vmem:[%s6133_s30 + $0x10] sm:$0xff]   ;;  %v4463_v54 = vld [vmem:[%s6133_s30 + $0x8] sm:$0xff]   ;;  %vm702_vm4 = vcmask 1041408  }
  0x9b   :  { %v282_v23 = vsel %vm5410_vm2, %v274_v18, 0  ;;  %v283_v25 = vsel %vm5410_vm2, %v276_v20, 0  ;;  %4397 = vmatpush3.bf16.msra.mxu0 %v4450_v11  ;;  %v455_v33 = vrot.slane %v4021_v32, %v5436_v29  ;;  %v459_v35 = vrot.slane %v4022_v31, %v5436_v29  ;;  %603 = vmatprep.subr.bf16.mxu1 %v5203_v7  ;;  %v4464_v55 = vld [vmem:[%s6133_s30] sm:$0xff]   ;;  %v4465_v56 = vld [vmem:[%s6133_s30 + $0x58] sm:$0xff]   ;;  %v4466_v57 = vld [vmem:[%s6133_s30 + $0x50] sm:$0xff]  }
  0x9c   :  { %290 = vrot.lane.b32.xlu1 %v282_v23, %s5204_s14  ;;  %4398 = vmatprep.subr.bf16.mxu0 %v4451_v21  ;;  %v271_v39 = vsel %vm5450_vm7, 0, %v258_v19  ;;  %v272_v41 = vsel %vm5450_vm7, 0, %v265_v22  ;;  %v4467_v58 = vld [vmem:[%s6133_s30 + $0x48] sm:$0xff]   ;;  %v4468_v20 = vld [vmem:[%s6133_s30 + $0x40] sm:$0xff]   ;;  %vm5588_vm6 = vmneg %vm702_vm4 }
  0x9d   :  { %461 = vperm.xlu0 %4445, %v455_v33   ;;  %v5515_v23 = vld [vmem:[%s6134_s23 + $0x8] sm:$0xff]  }
  0x9e   :  { %604 = vmatpush1.bf16.msra.mxu1 %v4458_v49 }
  0x9f   :  { %4399 = vmatpush3.bf16.msra.mxu0 %v4451_v21  ;;  %605 = vmatprep.subr.bf16.mxu1 %v5203_v7 }
  0xa0   :  { %292 = vrot.lane.b32.xlu1 %v283_v25, %s5204_s14  ;;  %4400 = vmatprep.subr.bf16.mxu0 %v4452_v26 }
  0xa2   :  { %606 = vmatpush1.bf16.msra.mxu1 %v4459_v50  ;;  %v231_v50 = vld [vmem:[%s6135_s21 + $0x1] sm:$0x1] }
  0xa3   :  { %4401 = vmatpush3.bf16.msra.mxu0 %v4452_v26  ;;  %607 = vmatprep.subr.bf16.mxu1 %v5203_v7  ;;  %v5520_v26 = vld [vmem:[%s6134_s23] sm:$0xff]   ;;  %vm233_vm15 = vcmp.ge.s32.totalorder %v231_v50, 1 }
  0xa4   :  { %465 = vperm.xlu1 %4446, %v459_v35   ;;  %4402 = vmatprep.subr.bf16.mxu0 %v4453_v34  ;;  %v4510_v50 = vld [vmem:[#allocation9 + $0x14] ss:$8 sps:$4 sm:$0xff]  }
  0xa6   :  { %608 = vmatpush1.bf16.msra.mxu1 %v4460_v51  ;;  %v1289_v51 = vshrl.u32 %v5520_v26, 16 }
  0xa7   :  { %4403 = vmatpush3.bf16.msra.mxu0 %v4453_v34  ;;  %609 = vmatprep.subr.bf16.mxu1 %v5203_v7  ;;  %v1299_v34 = vshll.u32 %v5515_v23, 16 }
  0xa8   :  { %4404 = vmatprep.subr.bf16.mxu0 %v4454_v36 }
  0xaa   :  { %610 = vmatpush1.bf16.msra.mxu1 %v4461_v52 }
  0xab   :  { %4405 = vmatpush3.bf16.msra.mxu0 %v4454_v36  ;;  %611 = vmatprep.subr.bf16.mxu1 %v5203_v7 }
  0xae   :  { %612 = vmatpush1.bf16.msra.mxu1 %v4462_v53 }
  0xaf   :  { %613 = vmatprep.subr.bf16.mxu1 %v5203_v7 }
  0xb2   :  { %614 = vmatpush1.bf16.msra.mxu1 %v4463_v54 }
  0xb3   :  { %615 = vmatprep.subr.bf16.mxu1 %v5203_v7 }
  0xb6   :  { %616 = vmatpush1.bf16.msra.mxu1 %v4464_v55  ;;  %v230_v55 = vld [vmem:[%s6135_s21] sm:$0x1] }
  0xb7   :  { %625 = vmatprep.subr.bf16.mxu1 %v5203_v7  ;;  %vm232_vm1 = vcmp.ge.s32.totalorder %v230_v55, 1  ;;  %v4516_v55 = vld [vmem:[#allocation9 + $0x4] ss:$8 sps:$4 sm:$0xff]  }
  0xba   :  { %626 = vmatpush2.bf16.msra.mxu1 %v4465_v56 }
  0xbb   :  { %627 = vmatprep.subr.bf16.mxu1 %v5203_v7 }
  0xbe   :  { %628 = vmatpush2.bf16.msra.mxu1 %v4466_v57 }
  0xbf   :  { %629 = vmatprep.subr.bf16.mxu1 %v5203_v7 }
  0xc2   :  { %630 = vmatpush2.bf16.msra.mxu1 %v4467_v58 }
  0xc3   :  { %631 = vmatprep.subr.bf16.mxu1 %v5203_v7 }
  0xc6   :  { %632 = vmatpush2.bf16.msra.mxu1 %v4468_v20  ;;  %v4478_v20 = vld [vmem:[#allocation9 + $0x60] ss:$8 sps:$4 sm:$0xff]  }
 0x107   :  { %v285_v38 = vpop.permute.xlu0 %284 }
 0x108   :  { %v297_v40 = vsel %vm294_vm8, %v271_v39, %v285_v38  ;;  %v1292_v38 = vshll.u32 %v5520_v26, 16 }
 0x10a   :  { %v1306_v52 = vrot.slane %v1292_v38, 1 }
 0x10b   :  { %v287_v42 = vpop.permute.xlu0 %286 }
 0x10c   :  { %v300_v45 = vsel %vm294_vm8, %v272_v41, %v287_v42  ;;  %v1307_v57 = vor.u32 %v1306_v52, %v1289_v51  ;;  %v4508_v52 = vld [vmem:[#allocation9 + $0x10] ss:$8 sps:$4 sm:$0xff]  }
 0x10e   :  { %v291_v43 = vpop.permute.xlu1 %290 }
 0x10f   :  { %v303_v44 = vsel %vm301_vm9, %v297_v40, %v291_v43 }
 0x110   :  { %4406 = vmatprep.mubr.msk.bf16.mxu0 %vm354_vm10, %v303_v44  ;;  %v1296_v44 = vshrl.u32 %v5515_v23, 16 }
 0x112   :  { %v293_v46 = vpop.permute.xlu1 %292 }
 0x113   :  { %v305_v47 = vsel %vm301_vm9, %v300_v45, %v293_v46  ;;  %v1308_v45 = vrot.slane %v1299_v34, 1 }
 0x114   :  { %4407 = vmatmul.mubr.msk.bf16.vlgmr.msra.gmra.mxu0 %vm354_vm10, %v305_v47 }
 0x115   :  { %862 = vmatprep.mubr.bf16.mxu0 %v5203_v7  ;;  %v1309_v54 = vor.u32 %v1308_v45, %v1296_v44  ;;  %v4499_v45 = vld [vmem:[#allocation9 + $0xa0] ss:$8 sps:$4 sm:$0xff]  }
 0x118   :  { %v5526_v39 = vpop.permute.xlu0 %461 }
 0x11f   :  { %v5522_v31 = vpop.permute.xlu1 %465 }
 0x1d4   :  { %v4408_v60 = vpop.f32.mrf.mxu0 }
 0x1d5   :  { %v415_v62 = vmul.f32 %v4408_v60, %v4035_v59  ;;  %v4024_v60 = vsel %vm233_vm15, 1.0, %v5205_v30 }
 0x1d6   :  { %v393_v63 = vpop.f32.mrf.mxu0 }
 0x1d7   :  { %v424_v0 = vadd.f32 %v4036_v61, %v415_v62  ;;  %v413_v1 = vmul.f32 %v4035_v59, %v393_v63  ;;  %v1486_v62 = vrot.slane %v4024_v60, %v5436_v29  ;;  %v4023_v63 = vsel %vm232_vm1, 1.0, %v5205_v30 }
 0x1d8   :  { %v4409_v2 = vpop.f32.mrf.mxu0 }
 0x1d9   :  { %v432_v3 = vmin.f32 %v424_v0, 0.0  ;;  %v422_v4 = vadd.f32 %v4036_v61, %v413_v1  ;;  %v416_v5 = vmul.f32 %v4409_v2, %v4035_v59  ;;  %vm428_vm11 = vcmp.gt.f32.partialorder %v424_v0, 0.0 }
 0x1da   :  { %v396_v6 = vpop.f32.mrf.mxu0 }
 0x1db   :  { %v438_v8 = vmul.f32 1.442695, %v432_v3  ;;  %v430_v9 = vmin.f32 %v422_v4, 0.0  ;;  %v425_v10 = vadd.f32 %v4036_v61, %v416_v5  ;;  %v414_v11 = vmul.f32 %v4035_v59, %v396_v6 }
 0x1dc   :  { %vm426_vm13 = vcmp.gt.f32.partialorder %v422_v4, 0.0  ;;  %v1313_v59 = vsel %vm5410_vm2, %v1309_v54, 0  ;;  %v4511_v54 = vld [vmem:[#allocation9 + $0x80] ss:$8 sps:$4 sm:$0xff]  }
 0x1dd   :  { %4823 = vpow2.f32 %v438_v8  ;;  %v434_v12 = vmul.f32 1.442695, %v430_v9  ;;  %v433_v13 = vmin.f32 %v425_v10, 0.0  ;;  %v423_v16 = vadd.f32 %v4036_v61, %v414_v11  ;;  %v4471_v11 = vld [vmem:[#allocation9 + $0xf4] ss:$8 sps:$4 sm:$0xff]  }
 0x1de   :  { %vm429_vm12 = vcmp.gt.f32.partialorder %v425_v10, 0.0  ;;  %v1312_v61 = vsel %vm5410_vm2, %v1307_v57, 0  ;;  %830 = vmatprep.subr.bf16.mxu0 %v4471_v11  ;;  %v4519_v57 = vld [vmem:[#allocation9 + $0x174] ss:$8 sps:$4 sm:$0xff]  }
 0x1df   :  { %4825 = vpow2.f32 %v434_v12  ;;  %v440_v17 = vmul.f32 1.442695, %v433_v13  ;;  %v431_v18 = vmin.f32 %v423_v16, 0.0  ;;  %vm427_vm14 = vcmp.gt.f32.partialorder %v423_v16, 0.0  ;;  %v4469_v12 = vld [vmem:[#allocation9 + $0xf0] ss:$8 sps:$4 sm:$0xff]  }
 0x1e0   :  { %v4474_v13 = vld [vmem:[#allocation9 + $0x74] ss:$8 sps:$4 sm:$0xff]   ;;  %831 = vmatpush1.bf16.msra.mxu0 %v4469_v12 }
 0x1e1   :  { %4827 = vpow2.f32 %v440_v17  ;;  %v436_v19 = vmul.f32 1.442695, %v431_v18  ;;  %963 = vmatprep.subr.bf16.mxu1 %v4474_v13  ;;  %v4477_v17 = vld [vmem:[#allocation9 + $0xe4] ss:$8 sps:$4 sm:$0xff]   ;;  %v4475_v18 = vld [vmem:[#allocation9 + $0xe0] ss:$8 sps:$4 sm:$0xff]  }
 0x1e2   :  { %832 = vmatprep.subr.bf16.mxu0 %v4477_v17 }
 0x1e3   :  { %4829 = vpow2.f32 %v436_v19  ;;  %v4480_v19 = vld [vmem:[#allocation9 + $0x64] ss:$8 sps:$4 sm:$0xff]  }
 0x1e4   :  { %833 = vmatpush1.bf16.msra.mxu0 %v4475_v18 }
 0x1ea   :  { %v4824_v21 = vpop.eup %4823 }
 0x1eb   :  { %v4039_v22 = vadd.f32 -1.0, %v4824_v21  ;;  %v4483_v21 = vld [vmem:[#allocation9 + $0xd4] ss:$8 sps:$4 sm:$0xff]  }
 0x1ec   :  { %v4826_v25 = vpop.eup %4825  ;;  %834 = vmatprep.subr.bf16.mxu0 %v4483_v21 }
 0x1ed   :  { %v4037_v28 = vadd.f32 -1.0, %v4826_v25  ;;  %v448_v33 = vsel %vm428_vm11, %v424_v0, %v4039_v22  ;;  %v1482_v0 = vrot.slane %v4023_v63, %v5436_v29  ;;  %v4481_v22 = vld [vmem:[#allocation9 + $0xd0] ss:$8 sps:$4 sm:$0xff]   ;;  %v4486_v25 = vld [vmem:[#allocation9 + $0x54] ss:$8 sps:$4 sm:$0xff]  }
 0x1ee   :  { %v4828_v27 = vpop.eup %4827  ;;  %v470_v40 = vmul.f32 %v5522_v31, %v448_v33  ;;  %835 = vmatpush1.bf16.msra.mxu0 %v4481_v22  ;;  %v4492_v33 = vld [vmem:[#allocation9 + $0x44] ss:$8 sps:$4 sm:$0xff]  }
 0x1ef   :  { %v4040_v32 = vadd.f32 -1.0, %v4828_v27  ;;  %v446_v43 = vsel %vm426_vm13, %v422_v4, %v4037_v28  ;;  %v4484_v27 = vld [vmem:[#allocation9 + $0x50] ss:$8 sps:$4 sm:$0xff]   ;;  %v4489_v28 = vld [vmem:[#allocation9 + $0xc4] ss:$8 sps:$4 sm:$0xff]  }
 0x1f0   :  { %v4830_v35 = vpop.eup %4829  ;;  %v468_v48 = vmul.f32 %v5526_v39, %v446_v43  ;;  %836 = vmatprep.subr.bf16.mxu0 %v4489_v28  ;;  %v4501_v43 = vld [vmem:[#allocation9 + $0xa4] ss:$8 sps:$4 sm:$0xff]  }
 0x1f1   :  { %v449_v36 = vsel %vm429_vm12, %v425_v10, %v4040_v32  ;;  %v4038_v42 = vadd.f32 -1.0, %v4830_v35  ;;  %v4487_v32 = vld [vmem:[#allocation9 + $0xc0] ss:$8 sps:$4 sm:$0xff]  }
 0x1f2   :  { %v471_v41 = vmul.f32 %v5522_v31, %v449_v36  ;;  %837 = vmatpush1.bf16.msra.mxu0 %v4487_v32  ;;  %v4490_v35 = vld [vmem:[#allocation9 + $0x40] ss:$8 sps:$4 sm:$0xff]   ;;  %v4495_v36 = vld [vmem:[#allocation9 + $0xb4] ss:$8 sps:$4 sm:$0xff]  }
 0x1f3   :  { %v447_v47 = vsel %vm427_vm14, %v423_v16, %v4038_v42  ;;  %v4472_v16 = vld [vmem:[#allocation9 + $0x70] ss:$8 sps:$4 sm:$0xff]   ;;  %838 = vmatprep.subr.bf16.mxu0 %v4495_v36 }
 0x1f4   :  { %v473_v46 = vpack.c.bf16 %v471_v41, %v470_v40  ;;  %v469_v49 = vmul.f32 %v5526_v39, %v447_v47  ;;  %v4493_v40 = vld [vmem:[#allocation9 + $0xb0] ss:$8 sps:$4 sm:$0xff]   ;;  %v4498_v41 = vld [vmem:[#allocation9 + $0x34] ss:$8 sps:$4 sm:$0xff]   ;;  %v4502_v47 = vld [vmem:[#allocation9 + $0x20] ss:$8 sps:$4 sm:$0xff]  }
 0x1f5   :  { %v4496_v42 = vld [vmem:[#allocation9 + $0x30] ss:$8 sps:$4 sm:$0xff]  }
 0x1f6   :  { %493 = vrot.lane.b32.xlu0 %v473_v46, %s5204_s14  ;;  %v472_v53 = vpack.c.bf16 %v469_v49, %v468_v48  ;;  %v485_v2 = vrot.slane %v473_v46, 1  ;;  %v477_v6 = vrot.slane %v473_v46, 7  ;;  %839 = vmatpush1.bf16.msra.mxu0 %v4493_v40  ;;  %v4504_v46 = vld [vmem:[#allocation9 + $0x24] ss:$8 sps:$4 sm:$0xff]   ;;  %v4507_v48 = vld [vmem:[#allocation9 + $0x94] ss:$8 sps:$4 sm:$0xff]  }
 0x1f7   :  { %840 = vmatprep.subr.bf16.mxu0 %v4501_v43  ;;  %v4505_v49 = vld [vmem:[#allocation9 + $0x90] ss:$8 sps:$4 sm:$0xff]  }
 0x1f8   :  { %491 = vrot.lane.b32.xlu1 %v472_v53, %s5204_s14  ;;  %v484_v56 = vrot.slane %v472_v53, 1  ;;  %v476_v1 = vrot.slane %v472_v53, 7  ;;  %v490_v15 = vsel %vm486_vm0, %v485_v2, 0  ;;  %v483_v9 = vsel %vm268_vm5, 0, %v477_v6  ;;  %v4513_v53 = vld [vmem:[#allocation9 + $0x84] ss:$8 sps:$4 sm:$0xff]  }
 0x1f9   :  { %v4517_v43 = vld [vmem:[#allocation9 + $0x170] ss:$8 sps:$4 sm:$0xff]  }
 0x1fa   :  { %1316 = vrot.lane.b32.xlu0 %v5515_v23, %s5202_s22  ;;  %v488_v58 = vsel %vm486_vm0, %v484_v56, 0  ;;  %v481_v4 = vsel %vm268_vm5, 0, %v476_v1  ;;  %841 = vmatpush1.bf16.msra.mxu0 %v4499_v45  ;;  %v4514_v56 = vld [vmem:[#allocation9] ss:$8 sps:$4 sm:$0xff]  }
 0x1fb   :  { %4053 = vmatprep.mubr.msk.bf16.mxu1 %vm301_vm9, %v488_v58  ;;  %842 = vmatprep.subr.bf16.mxu0 %v4507_v48  ;;  %v5576_v58 = vld [vmem:[%s6090_s10 + $0x28] sm:$0xff]  }
 0x1fc   :  { %1314 = vrot.lane.b32.xlu1 %v5520_v26, %s5202_s22  ;;  %v4523_v48 = vld [vmem:[#allocation9 + $0x164] ss:$8 sps:$4 sm:$0xff]  }
 0x1fe   :  { %1322 = vrot.lane.b32.xlu0 %v1313_v59, %s5204_s14  ;;  %843 = vmatpush1.bf16.msra.mxu0 %v4505_v49  ;;  %v4055_v59 = vld [vmem:[#allocation7] ss:$0 sm:$0xff] }
 0x1ff   :  { %844 = vmatprep.subr.bf16.mxu0 %v4513_v53 }
 0x200   :  { %1320 = vrot.lane.b32.xlu1 %v1312_v61, %s5204_s14  ;;  %v4056_v61 = vld [vmem:[#allocation7 + $0x1] ss:$0 sm:$0xff] }
 0x202   :  { %1492 = vperm.xlu0 %4445, %v1486_v62   ;;  %845 = vmatpush1.bf16.msra.mxu0 %v4511_v54 }
 0x203   :  { %1112 = vmatprep.subr.bf16.mxu0 %v4519_v57 }
 0x204   :  { %1488 = vperm.xlu1 %4446, %v1482_v0  }
 0x268   :  { %v494_v8 = vpop.permute.xlu0 %493 }
 0x269   :  { %v499_v10 = vsel %vm301_vm9, %v483_v9, %v494_v8 }
 0x26a   :  { %v492_v3 = vpop.permute.xlu1 %491 }
 0x26b   :  { %v496_v5 = vsel %vm301_vm9, %v481_v4, %v492_v3 }
 0x26c   :  { %634 = vmatmul.mubr.bf16.vlgmr.msra.gmra.mxu1 %v496_v5 }
 0x26d   :  { %4054 = vmatprep.mubr.msk.bf16.mxu1 %vm301_vm9, %v490_v15  ;;  %964 = vmatpush1.bf16.msra.mxu1 %v4472_v16 }
 0x26e   :  { %965 = vmatprep.subr.bf16.mxu1 %v4480_v19  ;;  %v1315_v26 = vpop.permute.xlu1 %1314 }
 0x271   :  { %966 = vmatpush1.bf16.msra.mxu1 %v4478_v20 }
 0x272   :  { %967 = vmatprep.subr.bf16.mxu1 %v4486_v25 }
 0x274   :  { %642 = vmatmul.mubr.bf16.gmra.mxu1 %v499_v10 }
 0x275   :  { %995 = vmatprep.mubr.bf16.mxu1 %v5203_v7  ;;  %968 = vmatpush1.bf16.msra.mxu1 %v4484_v27 }
 0x276   :  { %969 = vmatprep.subr.bf16.mxu1 %v4492_v33 }
 0x279   :  { %970 = vmatpush1.bf16.msra.mxu1 %v4490_v35  ;;  %v1291_v35 = vrot.slane %v1289_v51, 7 }
 0x27a   :  { %971 = vmatprep.subr.bf16.mxu1 %v4498_v41 }
 0x27d   :  { %972 = vmatpush1.bf16.msra.mxu1 %v4496_v42 }
 0x27e   :  { %973 = vmatprep.subr.bf16.mxu1 %v4504_v46  ;;  %v1294_v46 = vor.u32 %v1292_v38, %v1291_v35  ;;  %v4521_v38 = vld [vmem:[#allocation9 + $0x160] ss:$8 sps:$4 sm:$0xff]  }
 0x27f   :  { %v4552_v35 = vld [vmem:[%s6092_s12 + $0x10] sm:$0xff]  }
 0x281   :  { %974 = vmatpush1.bf16.msra.mxu1 %v4502_v47 }
 0x282   :  { %975 = vmatprep.subr.bf16.mxu1 %v4510_v50 }
 0x285   :  { %976 = vmatpush1.bf16.msra.mxu1 %v4508_v52  ;;  %v4524_v52 = vld [vmem:[%s6090_s10 + $0x20] sm:$0xff]  }
 0x286   :  { %977 = vmatprep.subr.bf16.mxu1 %v4516_v55  ;;  %v1304_v55 = vsel %vm5450_vm7, 0, %v1294_v46 }
 0x289   :  { %978 = vmatpush1.bf16.msra.mxu1 %v4514_v56  ;;  %v4527_v56 = vld [vmem:[#allocation9 + $0x154] ss:$8 sps:$4 sm:$0xff]  }
 0x28a   :  { %4410 = vmatprep.subr.bf16.mxu1 %v5576_v58 }
 0x32c   :  { %v635_v60 = vpop.f32.mrf.mxu1 }
 0x32d   :  { %v655_v62 = vmul.f32 %v4055_v59, %v635_v60 }
 0x32e   :  { %v637_v63 = vpop.f32.mrf.mxu1 }
 0x32f   :  { %v664_v0 = vadd.f32 %v4056_v61, %v655_v62  ;;  %v1326_v62 = vsel %vm294_vm8, %v1304_v55, %v1315_v26  ;;  %v4525_v63 = vld [vmem:[#allocation9 + $0x150] ss:$8 sps:$4 sm:$0xff]   ;;  %v4557_v55 = vld [vmem:[%s6092_s12 + $0x48] sm:$0xff]  }
 0x330   :  { %v638_v1 = vpop.f32.mrf.mxu1 }
 0x331   :  { %v672_v2 = vmin.f32 %v664_v0, 0.0  ;;  %v656_v3 = vmul.f32 %v4055_v59, %v638_v1  ;;  %vm668_vm2 = vcmp.gt.f32.partialorder %v664_v0, 0.0  ;;  %v4531_v1 = vld [vmem:[#allocation9 + $0x144] ss:$8 sps:$4 sm:$0xff]  }
 0x332   :  { %v640_v4 = vpop.f32.mrf.mxu1 }
 0x333   :  { %v676_v5 = vmul.f32 1.442695, %v672_v2  ;;  %v665_v15 = vadd.f32 %v4056_v61, %v656_v3  ;;  %v4532_v4 = vld [vmem:[%s6090_s10 + $0x10] sm:$0xff]  }
 0x334   :  { %v643_v6 = vpop.f32.mrf.mxu1 }
 0x335   :  { %4831 = vpow2.f32 %v676_v5  ;;  %v673_v8 = vmin.f32 %v665_v15, 0.0  ;;  %v657_v9 = vmul.f32 %v4055_v59, %v643_v6  ;;  %vm669_vm3 = vcmp.gt.f32.partialorder %v665_v15, 0.0  ;;  %v4529_v5 = vld [vmem:[#allocation9 + $0x140] ss:$8 sps:$4 sm:$0xff]  }
 0x336   :  { %v645_v10 = vpop.f32.mrf.mxu1  ;;  %v1298_v6 = vrot.slane %v1296_v44, 7  ;;  %v4540_v44 = vld [vmem:[%s6090_s10] sm:$0xff]  }
 0x337   :  { %v678_v11 = vmul.f32 1.442695, %v673_v8  ;;  %v666_v12 = vadd.f32 %v4056_v61, %v657_v9  ;;  %v4536_v8 = vld [vmem:[%s6090_s10 + $0x8] sm:$0xff]   ;;  %v4533_v9 = vld [vmem:[#allocation9 + $0x130] ss:$8 sps:$4 sm:$0xff]  }
 0x338   :  { %v646_v13 = vpop.f32.mrf.mxu1  ;;  %v4539_v10 = vld [vmem:[#allocation9 + $0x124] ss:$8 sps:$4 sm:$0xff]  }
 0x339   :  { %4833 = vpow2.f32 %v678_v11  ;;  %v674_v16 = vmin.f32 %v666_v12, 0.0  ;;  %v658_v17 = vmul.f32 %v4055_v59, %v646_v13  ;;  %vm670_vm11 = vcmp.gt.f32.partialorder %v666_v12, 0.0  ;;  %v1317_v13 = vpop.permute.xlu0 %1316 }
 0x33a   :  { %v648_v18 = vpop.f32.mrf.mxu1  ;;  %v1301_v11 = vor.u32 %v1299_v34, %v1298_v6  ;;  %v4546_v34 = vld [vmem:[#allocation9 + $0x104] ss:$8 sps:$4 sm:$0xff]  }
 0x33b   :  { %v680_v19 = vmul.f32 1.442695, %v674_v16  ;;  %v667_v20 = vadd.f32 %v4056_v61, %v658_v17  ;;  %v4528_v61 = vld [vmem:[%s6090_s10 + $0x18] sm:$0xff]   ;;  %s6138_s10 = sld [smem:[#allocation37_spill]] }
 0x33c   :  { %v4543_v16 = vld [vmem:[#allocation9 + $0x114] ss:$8 sps:$4 sm:$0xff]   ;;  %v1305_v17 = vsel %vm5450_vm7, 0, %v1301_v11  ;;  %v4541_v18 = vld [vmem:[#allocation9 + $0x110] ss:$8 sps:$4 sm:$0xff]   ;;  %vm711_vm7 = vcmask 1045504  }
 0x33d   :  { %4835 = vpow2.f32 %v680_v19  ;;  %v675_v21 = vmin.f32 %v667_v20, 0.0  ;;  %vm671_vm12 = vcmp.gt.f32.partialorder %v667_v20, 0.0  ;;  %v1329_v23 = vsel %vm294_vm8, %v1305_v17, %v1317_v13  ;;  %v1323_v19 = vpop.permute.xlu0 %1322 }
 0x33f   :  { %v682_v22 = vmul.f32 1.442695, %v675_v21  ;;  %v4544_v21 = vld [vmem:[#allocation9 + $0x100] ss:$8 sps:$4 sm:$0xff]  }
 0x341   :  { %4837 = vpow2.f32 %v682_v22 }
 0x342   :  { %v4832_v25 = vpop.eup %4831 }
 0x343   :  { %v4057_v27 = vadd.f32 -1.0, %v4832_v25  ;;  %v4547_v25 = vld [vmem:[%s6092_s12 + $0x38] sm:$0xff]  }
 0x345   :  { %v688_v32 = vsel %vm668_vm2, %v664_v0, %v4057_v27  ;;  %v4548_v27 = vld [vmem:[%s6092_s12 + $0x30] sm:$0xff]  }
 0x346   :  { %v4834_v28 = vpop.eup %4833  ;;  %v692_v41 = vmul.f32 %v688_v32, %v5526_v39  ;;  %v4550_v32 = vld [vmem:[%s6092_s12 + $0x20] sm:$0xff]  }
 0x347   :  { %v4058_v33 = vadd.f32 -1.0, %v4834_v28  ;;  %v4549_v28 = vld [vmem:[%s6092_s12 + $0x28] sm:$0xff]  }
 0x349   :  { %v689_v36 = vsel %vm669_vm3, %v665_v15, %v4058_v33  ;;  %v4535_v15 = vld [vmem:[#allocation9 + $0x134] ss:$8 sps:$4 sm:$0xff]  }
 0x34a   :  { %v4836_v40 = vpop.eup %4835  ;;  %v693_v42 = vmul.f32 %v689_v36, %v5526_v39  ;;  %v4551_v33 = vld [vmem:[%s6092_s12 + $0x18] sm:$0xff]  }
 0x34b   :  { %v4059_v45 = vadd.f32 -1.0, %v4836_v40 }
 0x34c   :  { %v5585_v47 = vpack.c.bf16 %v693_v42, %v692_v41  ;;  %v4553_v42 = vld [vmem:[%s6092_s12 + $0x8] sm:$0xff]  }
 0x34d   :  { %v690_v54 = vsel %vm670_vm11, %v666_v12, %v4059_v45  ;;  %v4537_v12 = vld [vmem:[#allocation9 + $0x120] ss:$8 sps:$4 sm:$0xff]  }
 0x34e   :  { %v4838_v51 = vpop.eup %4837  ;;  %v700_v50 = vrot.slane %v5585_v47, 6  ;;  %863 = vmatmul.mubr.bf16.vlgmr.msra.gmra.mxu0 %v5585_v47  ;;  %v694_v59 = vmul.f32 %v690_v54, %v5522_v31  ;;  %v709_v37 = vrot.slane %v5585_v47, 2  ;;  %v4554_v47 = vld [vmem:[%s6092_s12] sm:$0xff]  }
 0x34f   :  { %1113 = vmatpush1.bf16.msra.mxu0 %v4517_v43  ;;  %872 = vmatprep.mubr.bf16.mxu0 %v5203_v7  ;;  %v4060_v53 = vadd.f32 -1.0, %v4838_v51 }
 0x350   :  { %4094 = vmatmul.mubr.msk.bf16.vlgmr.msra.gmra.mxu1 %vm5588_vm6, %v700_v50  ;;  %1114 = vmatprep.subr.bf16.mxu0 %v4523_v48  ;;  %v4555_v50 = vld [vmem:[%s6092_s12 + $0x58] sm:$0xff]  }
 0x351   :  { %4411 = vmatpush3.bf16.msra.mxu1 %v5576_v58  ;;  %v691_v57 = vsel %vm671_vm12, %v667_v20, %v4060_v53  ;;  %1005 = vmatprep.mubr.bf16.mxu1 %v5203_v7  ;;  %v1321_v58 = vpop.permute.xlu1 %1320  ;;  %v1333_v20 = vsel %vm301_vm9, %v1329_v23, %v1323_v19 }
 0x352   :  { %4412 = vmatprep.subr.bf16.mxu1 %v4524_v52  ;;  %v695_v60 = vmul.f32 %v691_v57, %v5522_v31  ;;  %v1331_v2 = vsel %vm301_vm9, %v1326_v62, %v1321_v58  ;;  %v4135_v62 = vld [vmem:[#allocation10 + $0x1] ss:$0 sm:$0xff] }
 0x353   :  { %1115 = vmatpush1.bf16.msra.mxu0 %v4521_v38  ;;  %v4556_v38 = vld [vmem:[%s6092_s12 + $0x50] sm:$0xff]  }
 0x354   :  { %1116 = vmatprep.subr.bf16.mxu0 %v4527_v56  ;;  %v697_v0 = vpack.c.bf16 %v695_v60, %v694_v59  ;;  %v4134_v59 = vld [vmem:[#allocation10] ss:$0 sm:$0xff] }
 0x355   :  { %4413 = vmatpush3.bf16.msra.mxu1 %v4524_v52 }
 0x356   :  { %873 = vmatmul.mubr.bf16.gmra.mxu0 %v697_v0  ;;  %4414 = vmatprep.subr.bf16.mxu1 %v4528_v61  ;;  %v701_v3 = vrot.slane %v697_v0, 6  ;;  %v710_v22 = vrot.slane %v697_v0, 2 }
 0x357   :  { %1117 = vmatpush1.bf16.msra.mxu0 %v4525_v63  ;;  %1144 = vmatprep.mubr.bf16.mxu0 %v5203_v7 }
 0x358   :  { %4096 = vmatmul.mubr.msk.bf16.gmra.mxu1 %vm5588_vm6, %v701_v3  ;;  %1118 = vmatprep.subr.bf16.mxu0 %v4531_v1 }
 0x359   :  { %4415 = vmatpush3.bf16.msra.mxu1 %v4528_v61  ;;  %4422 = vmatprep.mubr.msk.bf16.mxu1 %vm354_vm10, %v1331_v2  ;;  %v1173_v2 = vld [vmem:[%s6138_s10] ss:$2 sm:$0x3] }
 0x35a   :  { %4416 = vmatprep.subr.bf16.mxu1 %v4532_v4 }
 0x35b   :  { %1119 = vmatpush1.bf16.msra.mxu0 %v4529_v5  ;;  %v4115_v5 = vld [vmem:[%s6138_s10 + $0x1] ss:$2 sm:$0x3] }
 0x35c   :  { %1120 = vmatprep.subr.bf16.mxu0 %v4535_v15  ;;  %v5704_v15 = vsub.s32 1, %v5421_v24 }
 0x35d   :  { %4417 = vmatpush3.bf16.msra.mxu1 %v4532_v4 }
 0x35e   :  { %4418 = vmatprep.subr.bf16.mxu1 %v4536_v8 }
 0x35f   :  { %1121 = vmatpush1.bf16.msra.mxu0 %v4533_v9 }
 0x360   :  { %1122 = vmatprep.subr.bf16.mxu0 %v4539_v10 }
 0x361   :  { %4419 = vmatpush3.bf16.msra.mxu1 %v4536_v8 }
 0x362   :  { %4420 = vmatprep.subr.bf16.mxu1 %v4540_v44 }
 0x363   :  { %1123 = vmatpush1.bf16.msra.mxu0 %v4537_v12 }
 0x364   :  { %1124 = vmatprep.subr.bf16.mxu0 %v4543_v16 }
 0x365   :  { %4421 = vmatpush3.bf16.msra.mxu1 %v4540_v44  ;;  %v5710_v44 = vrot.slane %v1173_v2, %v5436_v29 }
 0x367   :  { %1125 = vmatpush1.bf16.msra.mxu0 %v4541_v18  ;;  %v5716_v18 = vrot.slane %v4115_v5, %v5436_v29 }
 0x368   :  { %4423 = vmatmul.mubr.msk.bf16.vlgmr.msra.gmra.mxu1 %vm354_vm10, %v1333_v20  ;;  %1126 = vmatprep.subr.bf16.mxu0 %v4546_v34 }
 0x369   :  { %1884 = vmatprep.mubr.bf16.mxu1 %v5203_v7 }
 0x36b   :  { %1127 = vmatpush1.bf16.msra.mxu0 %v4544_v21  ;;  %v5719_v21 = vrot.slane %v1173_v2, %v5704_v15 }
 0x36c   :  { %1625 = vmatprep.subr.bf16.mxu0 %v5203_v7 }
 0x36e   :  { %4113 = vmatmul.mubr.msk.bf16.vlgmr.msra.gmra.mxu0 %vm711_vm7, %v709_v37 }
 0x36f   :  { %1154 = vmatprep.mubr.bf16.mxu0 %v5203_v7  ;;  %1626 = vmatpush1.bf16.msra.mxu0 %v4547_v25 }
 0x370   :  { %1627 = vmatprep.subr.bf16.mxu0 %v5203_v7 }
 0x373   :  { %1628 = vmatpush1.bf16.msra.mxu0 %v4548_v27 }
 0x374   :  { %1629 = vmatprep.subr.bf16.mxu0 %v5203_v7 }
 0x376   :  { %4114 = vmatmul.mubr.msk.bf16.gmra.mxu0 %vm711_vm7, %v710_v22 }
 0x377   :  { %1630 = vmatpush1.bf16.msra.mxu0 %v4549_v28 }
 0x378   :  { %1631 = vmatprep.subr.bf16.mxu0 %v5203_v7 }
 0x37b   :  { %1632 = vmatpush1.bf16.msra.mxu0 %v4550_v32 }
 0x37c   :  { %1633 = vmatprep.subr.bf16.mxu0 %v5203_v7 }
 0x37f   :  { %1634 = vmatpush1.bf16.msra.mxu0 %v4551_v33  ;;  %v5726_v33 = vrot.slane %v4115_v5, %v5704_v15 }
 0x380   :  { %1635 = vmatprep.subr.bf16.mxu0 %v5203_v7 }
 0x383   :  { %1636 = vmatpush1.bf16.msra.mxu0 %v4552_v35 }
 0x384   :  { %1637 = vmatprep.subr.bf16.mxu0 %v5203_v7 }
 0x387   :  { %1638 = vmatpush1.bf16.msra.mxu0 %v4553_v42 }
 0x388   :  { %1639 = vmatprep.subr.bf16.mxu0 %v5203_v7 }
 0x38b   :  { %1640 = vmatpush1.bf16.msra.mxu0 %v4554_v47 }
 0x38c   :  { %1649 = vmatprep.subr.bf16.mxu0 %v5203_v7 }
 0x38f   :  { %1650 = vmatpush2.bf16.msra.mxu0 %v4555_v50 }
 0x390   :  { %1651 = vmatprep.subr.bf16.mxu0 %v5203_v7 }
 0x393   :  { %1652 = vmatpush2.bf16.msra.mxu0 %v4556_v38 }
 0x394   :  { %1653 = vmatprep.subr.bf16.mxu0 %v5203_v7 }
 0x397   :  { %1654 = vmatpush2.bf16.msra.mxu0 %v4557_v55 }
 0x398   :  { %1655 = vmatprep.subr.bf16.mxu0 %v5203_v7 }
 0x40e   :  { %v864_v36 = vpop.f32.mrf.mxu0 }
 0x410   :  { %v997_v40 = vpop.f32.mrf.mxu1  ;;  %v866_v43 = vpop.f32.mrf.mxu0 }
 0x411   :  { %v998_v10 = vadd.f32 %v997_v40, %v864_v36 }
 0x412   :  { %v999_v41 = vpop.f32.mrf.mxu1  ;;  %v868_v48 = vpop.f32.mrf.mxu0 }
 0x413   :  { %v1000_v23 = vadd.f32 %v999_v41, %v866_v43 }
 0x414   :  { %v1001_v45 = vpop.f32.mrf.mxu1  ;;  %v870_v52 = vpop.f32.mrf.mxu0 }
 0x415   :  { %v1002_v37 = vadd.f32 %v1001_v45, %v868_v48 }
 0x416   :  { %v1003_v46 = vpop.f32.mrf.mxu1  ;;  %v874_v53 = vpop.f32.mrf.mxu0 }
 0x417   :  { %v1004_v36 = vadd.f32 %v1003_v46, %v870_v52 }
 0x418   :  { %v5670_v51 = vpop.f32.mrf.mxu1  ;;  %v876_v56 = vpop.f32.mrf.mxu0 }
 0x419   :  { %v1008_v48 = vadd.f32 %v5670_v51, %v874_v53 }
 0x41a   :  { %v5676_v26 = vpop.f32.mrf.mxu1  ;;  %v5690_v60 = vpop.f32.mrf.mxu0 }
 0x41c   :  { %v5682_v54 = vpop.f32.mrf.mxu1  ;;  %v5698_v3 = vpop.f32.mrf.mxu0 }
 0x41e   :  { %v5688_v57 = vpop.f32.mrf.mxu1 }
 0x428   :  { %v4424_v61 = vpop.f32.mrf.mxu1 }
 0x429   :  { %v1442_v63 = vmul.f32 %v4424_v61, %v4134_v59 }
 0x42a   :  { %v1420_v0 = vpop.f32.mrf.mxu1 }
 0x42b   :  { %v5693_v1 = vadd.f32 %v4135_v62, %v1442_v63  ;;  %v1440_v58 = vmul.f32 %v4134_v59, %v1420_v0  ;;  %v1010_v0 = vadd.f32 %v5676_v26, %v876_v56 }
 0x42c   :  { %v4425_v4 = vpop.f32.mrf.mxu1 }
 0x42d   :  { %v1459_v6 = vmin.f32 %v5693_v1, 0.0  ;;  %v5707_v8 = vadd.f32 %v4135_v62, %v1440_v58  ;;  %v1443_v9 = vmul.f32 %v4425_v4, %v4134_v59  ;;  %vm1455_vm8 = vcmp.gt.f32.partialorder %v5693_v1, 0.0 }
 0x42e   :  { %v1146_v11 = vpop.f32.mrf.mxu0  ;;  %v1423_v12 = vpop.f32.mrf.mxu1 }
 0x42f   :  { %v1465_v13 = vmul.f32 1.442695, %v1459_v6  ;;  %v1457_v16 = vmin.f32 %v5707_v8, 0.0  ;;  %v5713_v17 = vadd.f32 %v4135_v62, %v1443_v9  ;;  %v1165_v34 = vadd.f32 %v1146_v11, %v998_v10 }
 0x430   :  { %v1441_v19 = vmul.f32 %v4134_v59, %v1423_v12  ;;  %v1148_v20 = vpop.f32.mrf.mxu0  ;;  %v1012_v6 = vadd.f32 %v5682_v54, %v5690_v60  ;;  %v4558_v54 = vld [vmem:[%s6092_s12 + $0x40] sm:$0xff]   ;;  %vm1453_vm10 = vcmp.gt.f32.partialorder %v5707_v8, 0.0 }
 0x431   :  { %4839 = vpow2.f32 %v1465_v13  ;;  %v1461_v22 = vmul.f32 1.442695, %v1457_v16  ;;  %v1460_v25 = vmin.f32 %v5713_v17, 0.0  ;;  %v1185_v27 = vmul.f32 %v5710_v44, %v1165_v34  ;;  %1656 = vmatpush2.bf16.msra.mxu0 %v4558_v54 }
 0x432   :  { %v5723_v28 = vadd.f32 %v4135_v62, %v1441_v19  ;;  %v1166_v32 = vadd.f32 %v1148_v20, %v1000_v23  ;;  %v1150_v35 = vpop.f32.mrf.mxu0  ;;  %v1014_v13 = vadd.f32 %v5688_v57, %v5698_v3  ;;  %vm1456_vm13 = vcmp.gt.f32.partialorder %v5713_v17, 0.0 }
 0x433   :  { %4841 = vpow2.f32 %v1461_v22  ;;  %v1467_v40 = vmul.f32 1.442695, %v1460_v25  ;;  %v1167_v41 = vadd.f32 %v1150_v35, %v1002_v37  ;;  %v5729_v42 = vadd.f32 %v5716_v18, %v1185_v27 }
 0x434   :  { %v1458_v43 = vmin.f32 %v5723_v28, 0.0  ;;  %v1186_v45 = vmul.f32 %v5719_v21, %v1166_v32  ;;  %v1152_v47 = vpop.f32.mrf.mxu0  ;;  %vm1454_vm14 = vcmp.gt.f32.partialorder %v5723_v28, 0.0 }
 0x435   :  { %4843 = vpow2.f32 %v1467_v40  ;;  %v1187_v50 = vmul.f32 %v5710_v44, %v1167_v41  ;;  %v1168_v38 = vadd.f32 %v1152_v47, %v1004_v36  ;;  %v1222_v55 = vmin.f32 %v5729_v42, 0.0 }
 0x436   :  { %v1463_v46 = vmul.f32 1.442695, %v1458_v43  ;;  %v5737_v52 = vadd.f32 %v5726_v33, %v1186_v45  ;;  %v1156_v59 = vpop.f32.mrf.mxu0  ;;  %vm1214_vm15 = vcmp.gt.f32.partialorder %v5729_v42, 0.0 }
 0x437   :  { %v5740_v61 = vadd.f32 %v5716_v18, %v1187_v50  ;;  %v1188_v62 = vmul.f32 %v5719_v21, %v1168_v38  ;;  %v1169_v63 = vadd.f32 %v1156_v59, %v1008_v48  ;;  %v1230_v51 = vmul.f32 1.442695, %v1222_v55 }
 0x438   :  { %4845 = vpow2.f32 %v1463_v46  ;;  %v1223_v53 = vmin.f32 %v5737_v52, 0.0  ;;  %v1158_v58 = vpop.f32.mrf.mxu0  ;;  %vm1215_vm1 = vcmp.gt.f32.partialorder %v5737_v52, 0.0 }
 0x439   :  { %v1224_v2 = vmin.f32 %v5740_v61, 0.0  ;;  %v5747_v4 = vadd.f32 %v5726_v33, %v1188_v62  ;;  %v1189_v5 = vmul.f32 %v5710_v44, %v1169_v63  ;;  %4847 = vpow2.f32 %v1230_v51 }
 0x43a   :  { %v1232_v9 = vmul.f32 1.442695, %v1223_v53  ;;  %v1170_v10 = vadd.f32 %v1158_v58, %v1010_v0  ;;  %v1160_v11 = vpop.f32.mrf.mxu0  ;;  %v5788_v0 = vpop.permute.xlu1 %1488  ;;  %vm1216_vm2 = vcmp.gt.f32.partialorder %v5740_v61, 0.0 }
 0x43b   :  { %v1234_v26 = vmul.f32 1.442695, %v1224_v2  ;;  %v1225_v56 = vmin.f32 %v5747_v4, 0.0  ;;  %v5754_v12 = vadd.f32 %v5716_v18, %v1189_v5  ;;  %v1171_v23 = vadd.f32 %v1160_v11, %v1012_v6 }
 0x43c   :  { %4849 = vpow2.f32 %v1232_v9  ;;  %v1190_v16 = vmul.f32 %v5719_v21, %v1170_v10  ;;  %v1162_v34 = vpop.f32.mrf.mxu0  ;;  %vm1217_vm3 = vcmp.gt.f32.partialorder %v5747_v4, 0.0 }
 0x43d   :  { %4851 = vpow2.f32 %v1234_v26  ;;  %v1236_v60 = vmul.f32 1.442695, %v1225_v56  ;;  %v1226_v19 = vmin.f32 %v5754_v12, 0.0  ;;  %v1191_v22 = vmul.f32 %v5710_v44, %v1171_v23  ;;  %v4223_v26 = vld [vmem:[#allocation2] ss:$0 sm:$0xff] }
 0x43e   :  { %v4840_v20 = vpop.eup %4839  ;;  %v5764_v37 = vadd.f32 %v5726_v33, %v1190_v16  ;;  %v1172_v57 = vadd.f32 %v1162_v34, %v1014_v13  ;;  %vm1218_vm11 = vcmp.gt.f32.partialorder %v5754_v12, 0.0 }
 0x43f   :  { %4853 = vpow2.f32 %v1236_v60  ;;  %v1238_v3 = vmul.f32 1.442695, %v1226_v19  ;;  %v4138_v25 = vadd.f32 -1.0, %v4840_v20  ;;  %v5769_v35 = vadd.f32 %v5716_v18, %v1191_v22  ;;  %v5779_v18 = vpop.permute.xlu0 %1492 }
 0x440   :  { %v4842_v27 = vpop.eup %4841  ;;  %v1227_v32 = vmin.f32 %v5764_v37, 0.0  ;;  %v1192_v36 = vmul.f32 %v5719_v21, %v1172_v57  ;;  %vm1219_vm12 = vcmp.gt.f32.partialorder %v5764_v37, 0.0 }
 0x441   :  { %4855 = vpow2.f32 %v1238_v3  ;;  %v4136_v40 = vadd.f32 -1.0, %v4842_v27  ;;  %v1228_v44 = vmin.f32 %v5769_v35, 0.0  ;;  %v1475_v47 = vsel %vm1455_vm8, %v5693_v1, %v4138_v25  ;;  %v4226_v25 = vld [vmem:[%s6098_s18 + $0x1] ss:$2 sm:$0xf] }
 0x442   :  { %v4844_v41 = vpop.eup %4843  ;;  %v1240_v43 = vmul.f32 1.442695, %v1227_v32  ;;  %v5775_v45 = vadd.f32 %v5726_v33, %v1192_v36  ;;  %v1497_v46 = vmul.f32 %v5779_v18, %v1475_v47  ;;  %v2698_v47 = vrot.slane %v4226_v25, %v5436_v29 }
 0x443   :  { %v4139_v48 = vadd.f32 -1.0, %v4844_v41  ;;  %v1242_v21 = vmul.f32 1.442695, %v1228_v44  ;;  %v1473_v33 = vsel %vm1453_vm10, %v5707_v8, %v4136_v40  ;;  %vm1220_vm8 = vcmp.gt.f32.partialorder %v5769_v35, 0.0 }
 0x444   :  { %4857 = vpow2.f32 %v1240_v43  ;;  %v1229_v50 = vmin.f32 %v5775_v45, 0.0  ;;  %v1495_v2 = vmul.f32 %v5788_v0, %v1473_v33  ;;  %vm1221_vm10 = vcmp.gt.f32.partialorder %v5775_v45, 0.0 }
 0x445   :  { %v4846_v38 = vpop.eup %4845  ;;  %v1476_v55 = vsel %vm1456_vm13, %v5713_v17, %v4139_v48  ;;  %4859 = vpow2.f32 %v1242_v21  ;;  %v2702_v48 = vrot.slane %v4226_v25, %v5704_v15 }
 0x446   :  { %v1244_v1 = vmul.f32 1.442695, %v1229_v50  ;;  %v1498_v59 = vmul.f32 %v5779_v18, %v1476_v55  ;;  %v4137_v62 = vadd.f32 -1.0, %v4846_v38  ;;  %v4848_v63 = vpop.eup %4847 }
 0x447   :  { %v4116_v51 = vadd.f32 -1.0, %v4848_v63 }
 0x448   :  { %4861 = vpow2.f32 %v1244_v1  ;;  %v5790_v53 = vpack.c.bf16 %v1498_v59, %v1497_v46  ;;  %v1474_v17 = vsel %vm1454_vm14, %v5723_v28, %v4137_v62  ;;  %v4953_v28 = vld [vmem:[%s6130_s19] ss:$0 sm:$0xff] }
 0x449   :  { %v4850_v58 = vpop.eup %4849  ;;  %v1496_v8 = vmul.f32 %v5788_v0, %v1474_v17  ;;  %v1254_v9 = vsel %vm1214_vm15, %v5729_v42, %v4116_v51 }
 0x44a   :  { %v4852_v5 = vpop.eup %4851  ;;  %v4117_v6 = vadd.f32 -1.0, %v4850_v58  ;;  %1517 = vrot.lane.b32.xlu0 %v5790_v53, %s5204_s14  ;;  %v1262_v54 = vmul.f32 %v1254_v9, %v5526_v39 }
 0x44b   :  { %v4118_v10 = vadd.f32 -1.0, %v4852_v5  ;;  %v5799_v11 = vpack.c.bf16 %v1496_v8, %v1495_v2 }
 0x44c   :  { %v4854_v56 = vpop.eup %4853  ;;  %v1255_v13 = vsel %vm1215_vm1, %v5737_v52, %v4117_v6  ;;  %v2646_v52 = vld [vmem:[%s6098_s18] ss:$2 sm:$0xf] }
 0x44d   :  { %v1256_v16 = vsel %vm1216_vm2, %v5740_v61, %v4118_v10  ;;  %v4119_v23 = vadd.f32 -1.0, %v4854_v56  ;;  %1515 = vrot.lane.b32.xlu1 %v5799_v11, %s5204_s14  ;;  %v1509_v42 = vrot.slane %v5799_v11, 1  ;;  %v1263_v22 = vmul.f32 %v1255_v13, %v5526_v39 }
 0x44e   :  { %v4856_v34 = vpop.eup %4855  ;;  %2435 = vperm.xlu0 %4445, %v4223_v26   ;;  %v1264_v60 = vmul.f32 %v1256_v16, %v5526_v39  ;;  %v2659_v32 = vrot.slane %v2646_v52, %v5436_v29  ;;  %v2663_v43 = vrot.slane %v2646_v52, %v5704_v15 }
 0x44f   :  { %v1257_v61 = vsel %vm1217_vm3, %v5747_v4, %v4119_v23  ;;  %v1512_v19 = vsel %vm486_vm0, %v1509_v42, 0  ;;  %v4120_v20 = vadd.f32 -1.0, %v4856_v34  ;;  %v4954_v4 = vld [vmem:[%s6130_s19 + $0x1] ss:$0 sm:$0xff] }
 0x450   :  { %4152 = vmatprep.mubr.msk.bf16.mxu0 %vm301_vm9, %v1512_v19  ;;  %v1265_v57 = vmul.f32 %v1257_v61, %v5526_v39  ;;  %v5822_v3 = vpack.c.bf16 %v1264_v60, %v1262_v54 }
 0x451   :  { %v4858_v27 = vpop.eup %4857  ;;  %2466 = vperm.xlu1 %4446, %v4953_v28   ;;  %v1258_v50 = vsel %vm1218_vm11, %v5754_v12, %v4120_v20 }
 0x452   :  { %v4121_v36 = vadd.f32 -1.0, %v4858_v27  ;;  %v5831_v40 = vpack.c.bf16 %v1265_v57, %v1263_v22  ;;  %v2299_v41 = vunpack.c.l.bf16 %v5822_v3  ;;  %v4860_v44 = vpop.eup %4859  ;;  %v2301_v21 = vunpack.c.h.bf16 %v5822_v3 }
 0x453   :  { %v4122_v38 = vadd.f32 -1.0, %v4860_v44  ;;  %v1266_v17 = vmul.f32 %v1258_v50, %v5522_v31 }
 0x454   :  { %v2300_v55 = vunpack.c.l.bf16 %v5831_v40  ;;  %v2676_v33 = vmul.f32 %v2659_v32, %v2299_v41  ;;  %v2302_v1 = vunpack.c.h.bf16 %v5831_v40  ;;  %v1259_v59 = vsel %vm1219_vm12, %v5764_v37, %v4121_v36  ;;  %v2296_v36 = vld [vmem:[#allocation15] ss:$2 sm:$0x3] }
 0x455   :  { %v4862_v46 = vpop.eup %4861  ;;  %2469 = vperm.xlu1 %4446, %v4954_v4   ;;  %v1260_v12 = vsel %vm1220_vm8, %v5769_v35, %v4122_v38  ;;  %v2680_v2 = vmul.f32 %v2659_v32, %v2301_v21  ;;  %v1267_v35 = vmul.f32 %v1259_v59, %v5522_v31  ;;  %v2315_v38 = vrot.slane %v2296_v36, %v5704_v15 }
 0x456   :  { %v4123_v62 = vadd.f32 -1.0, %v4862_v46  ;;  %v2677_v63 = vmul.f32 %v2663_v43, %v2300_v55  ;;  %v5849_v51 = vadd.f32 %v2698_v47, %v2676_v33  ;;  %v1268_v58 = vmul.f32 %v1260_v12, %v5522_v31 }
 0x457   :  { %v2681_v6 = vmul.f32 %v2663_v43, %v2302_v1  ;;  %v5863_v56 = vadd.f32 %v2698_v47, %v2680_v2  ;;  %v2311_v12 = vrot.slane %v2296_v36, %v5436_v29  ;;  %vm2403_vm8 = vcmask 1041409  }
 0x458   :  { %v1261_v8 = vsel %vm1221_vm10, %v5775_v45, %v4123_v62  ;;  %v2716_v5 = vadd.f32 %v2702_v48, %v2677_v63  ;;  %v2747_v37 = vmin.f32 %v5849_v51, 0.0  ;;  %v5861_v10 = vpack.c.bf16 %v1268_v58, %v1266_v17 }
 0x459   :  { %v1269_v9 = vmul.f32 %v1261_v8, %v5522_v31  ;;  %v5868_v16 = vadd.f32 %v2702_v48, %v2681_v6  ;;  %v2751_v42 = vmin.f32 %v5863_v56, 0.0  ;;  %v2319_v58 = vmul.f32 %v2315_v38, %v2300_v55 }
 0x45a   :  { %v2748_v26 = vmin.f32 %v2716_v5, 0.0  ;;  %v2763_v28 = vmul.f32 1.442695, %v2747_v37  ;;  %v2303_v45 = vunpack.c.l.bf16 %v5861_v10  ;;  %v2305_v34 = vunpack.c.h.bf16 %v5861_v10 }
 0x45b   :  { %v5865_v13 = vpack.c.bf16 %v1269_v9, %v1267_v35  ;;  %v2752_v52 = vmin.f32 %v5868_v16, 0.0  ;;  %v2771_v61 = vmul.f32 1.442695, %v2751_v42  ;;  %vm2731_vm13 = vcmp.gt.f32.partialorder %v5849_v51, 0.0 }
 0x45c   :  { %v2765_v23 = vmul.f32 1.442695, %v2748_v26  ;;  %4863 = vpow2.f32 %v2763_v28  ;;  %v2684_v60 = vmul.f32 %v2659_v32, %v2303_v45  ;;  %v2688_v25 = vmul.f32 %v2659_v32, %v2305_v34 }
 0x45d   :  { %v2304_v54 = vunpack.c.l.bf16 %v5865_v13  ;;  %v2306_v22 = vunpack.c.h.bf16 %v5865_v13  ;;  %v2773_v57 = vmul.f32 1.442695, %v2752_v52  ;;  %vm2732_vm14 = vcmp.gt.f32.partialorder %v2716_v5, 0.0 }
 0x45e   :  { %4865 = vpow2.f32 %v2765_v23  ;;  %v5874_v20 = vadd.f32 %v2698_v47, %v2684_v60  ;;  %v5884_v50 = vadd.f32 %v2698_v47, %v2688_v25  ;;  %v2318_v47 = vmul.f32 %v2311_v12, %v2299_v41 }
 0x45f   :  { %v2685_v19 = vmul.f32 %v2663_v43, %v2304_v54  ;;  %4867 = vpow2.f32 %v2771_v61  ;;  %v2689_v44 = vmul.f32 %v2663_v43, %v2306_v22  ;;  %v2323_v37 = vmul.f32 %v2315_v38, %v2304_v54 }
 0x460   :  { %v2755_v4 = vmin.f32 %v5874_v20, 0.0  ;;  %4869 = vpow2.f32 %v2773_v57  ;;  %v2759_v32 = vmin.f32 %v5884_v50, 0.0  ;;  %v2326_v8 = vadd.f32 %v2319_v58, %v2318_v47 }
 0x461   :  { %v5879_v27 = vadd.f32 %v2702_v48, %v2685_v19  ;;  %v5888_v59 = vadd.f32 %v2702_v48, %v2689_v44  ;;  %v2322_v55 = vmul.f32 %v2311_v12, %v2303_v45  ;;  %vm2735_vm15 = vcmp.gt.f32.partialorder %v5863_v56, 0.0 }
 0x462   :  { %v2779_v33 = vmul.f32 1.442695, %v2755_v4  ;;  %v2787_v17 = vmul.f32 1.442695, %v2759_v32  ;;  %v2321_v54 = vmul.f32 %v2315_v38, %v2302_v1  ;;  %vm2736_vm1 = vcmp.gt.f32.partialorder %v5868_v16, 0.0 }
 0x463   :  { %v2756_v46 = vmin.f32 %v5879_v27, 0.0  ;;  %v2760_v63 = vmin.f32 %v5888_v59, 0.0  ;;  %v2332_v60 = vadd.f32 %v2323_v37, %v2322_v55  ;;  %v2320_v45 = vmul.f32 %v2311_v12, %v2301_v21 }
 0x464   :  { %4871 = vpow2.f32 %v2779_v33  ;;  %vm2739_vm2 = vcmp.gt.f32.partialorder %v5874_v20, 0.0  ;;  %vm2740_vm3 = vcmp.gt.f32.partialorder %v5879_v27, 0.0  ;;  %v2325_v3 = vmul.f32 %v2315_v38, %v2306_v22 }
 0x465   :  { %v2781_v62 = vmul.f32 1.442695, %v2756_v46  ;;  %v2789_v43 = vmul.f32 1.442695, %v2760_v63  ;;  %vm2743_vm11 = vcmp.gt.f32.partialorder %v5884_v50, 0.0  ;;  %vm2744_vm12 = vcmp.gt.f32.partialorder %v5888_v59, 0.0 }
 0x467   :  { %4873 = vpow2.f32 %v2781_v62 }
 0x468   :  { %4875 = vpow2.f32 %v2787_v17 }
 0x469   :  { %v4864_v2 = vpop.eup %4863  ;;  %4877 = vpow2.f32 %v2789_v43 }
 0x46a   :  { %v4227_v6 = vadd.f32 -1.0, %v4864_v2 }
 0x46b   :  { %v4866_v48 = vpop.eup %4865 }
 0x46c   :  { %v4228_v35 = vadd.f32 -1.0, %v4866_v48  ;;  %v4868_v9 = vpop.eup %4867  ;;  %v2811_v26 = vsel %vm2731_vm13, %v5849_v51, %v4227_v6 }
 0x46d   :  { %2327 = vadd.xlane.f32.xlu0 %v2326_v8  ;;  %v4231_v23 = vadd.f32 -1.0, %v4868_v9  ;;  %v4870_v42 = vpop.eup %4869  ;;  %v2827_v41 = vmul.f32 %v2811_v26, %v5526_v39 }
 0x46e   :  { %v2812_v28 = vsel %vm2732_vm14, %v2716_v5, %v4228_v35  ;;  %v4232_v52 = vadd.f32 -1.0, %v4870_v42 }
 0x46f   :  { %v2815_v61 = vsel %vm2735_vm15, %v5863_v56, %v4231_v23  ;;  %v2828_v19 = vmul.f32 %v2812_v28, %v5526_v39  ;;  %v2329_v56 = vadd.f32 %v2321_v54, %v2320_v45 }
 0x470   :  { %v2831_v51 = vmul.f32 %v2815_v61, %v5526_v39  ;;  %v2816_v57 = vsel %vm2736_vm1, %v5868_v16, %v4232_v52 }
 0x471   :  { %2333 = vadd.xlane.f32.xlu0 %v2332_v60  ;;  %v4872_v5 = vpop.eup %4871  ;;  %v2832_v40 = vmul.f32 %v2816_v57, %v5526_v39 }
 0x472   :  { %v4235_v25 = vadd.f32 -1.0, %v4872_v5  ;;  %v2843_v1 = vmax.f32 %v2827_v41, %v2831_v51 }
 0x473   :  { %v2850_v32 = vmax.f32 %v2828_v19, %v2832_v40 }
 0x474   :  { %v4874_v4 = vpop.eup %4873  ;;  %v2819_v46 = vsel %vm2739_vm2, %v5874_v20, %v4235_v25  ;;  %v2844_v33 = vrot.slane %v2843_v1, 4  ;;  %v2324_v20 = vmul.f32 %v2311_v12, %v2305_v34 }
 0x475   :  { %v4876_v36 = vpop.eup %4875  ;;  %v4236_v44 = vadd.f32 -1.0, %v4874_v4  ;;  %v2835_v63 = vmul.f32 %v2819_v46, %v5522_v31  ;;  %v2851_v17 = vrot.slane %v2850_v32, 4  ;;  %v1503_v46 = vrot.slane %v5799_v11, 7  ;;  %v4561_v11 = vld [vmem:[#allocation13 + $0xf4] ss:$8 sps:$4 sm:$0xff]  }
 0x476   :  { %v4239_v21 = vadd.f32 -1.0, %v4876_v36  ;;  %v4878_v16 = vpop.eup %4877  ;;  %v2845_v58 = vmax.f32 %v2843_v1, %v2844_v33  ;;  %v1510_v33 = vrot.slane %v5790_v53, 1  ;;  %1852 = vmatprep.subr.bf16.mxu1 %v4561_v11 }
 0x477   :  { %v2820_v62 = vsel %vm2740_vm3, %v5879_v27, %v4236_v44  ;;  %v4240_v43 = vadd.f32 -1.0, %v4878_v16  ;;  %v2852_v38 = vmax.f32 %v2850_v32, %v2851_v17  ;;  %v2335_v27 = vadd.f32 %v2325_v3, %v2324_v20  ;;  %v4559_v20 = vld [vmem:[#allocation13 + $0xf0] ss:$8 sps:$4 sm:$0xff]  }
 0x478   :  { %v2823_v47 = vsel %vm2743_vm11, %v5884_v50, %v4239_v21  ;;  %v2836_v13 = vmul.f32 %v2820_v62, %v5522_v31  ;;  %v2846_v2 = vrot.slane %v2845_v58, 2  ;;  %v1506_v3 = vsel %vm268_vm5, 0, %v1503_v46  ;;  %1853 = vmatpush1.bf16.msra.mxu1 %v4559_v20 }
 0x479   :  { %2330 = vadd.xlane.f32.xlu1 %v2329_v56  ;;  %v2839_v22 = vmul.f32 %v2823_v47, %v5522_v31  ;;  %v2824_v48 = vsel %vm2744_vm12, %v5888_v59, %v4240_v43  ;;  %v2853_v10 = vrot.slane %v2852_v38, 2  ;;  %v1514_v16 = vsel %vm486_vm0, %v1510_v33, 0  ;;  %v4564_v43 = vld [vmem:[#allocation13 + $0x74] ss:$8 sps:$4 sm:$0xff]   ;;  %v4562_v47 = vld [vmem:[#allocation13 + $0x70] ss:$8 sps:$4 sm:$0xff]  }
 0x47a   :  { %v2840_v8 = vmul.f32 %v2824_v48, %v5522_v31  ;;  %v2847_v34 = vmax.f32 %v2845_v58, %v2846_v2  ;;  %v1504_v62 = vrot.slane %v5790_v53, 7  ;;  %1985 = vmatprep.subr.bf16.mxu0 %v4564_v43  ;;  %v4570_v53 = vld [vmem:[#allocation13 + $0x64] ss:$8 sps:$4 sm:$0xff]   ;;  %v4573_v2 = vld [vmem:[#allocation13 + $0xd4] ss:$8 sps:$4 sm:$0xff]   ;;  %vm2392_vm11 = vcmask 130112  }
 0x47b   :  { %v2871_v6 = vmax.f32 %v2835_v63, %v2839_v22  ;;  %v2854_v37 = vmax.f32 %v2852_v38, %v2853_v10  ;;  %v4565_v22 = vld [vmem:[#allocation13 + $0xe0] ss:$8 sps:$4 sm:$0xff]   ;;  %v4576_v48 = vld [vmem:[#allocation13 + $0x54] ss:$8 sps:$4 sm:$0xff]  }
 0x47c   :  { %v2878_v35 = vmax.f32 %v2836_v13, %v2840_v8  ;;  %v2848_v9 = vrot.slane %v2847_v34, 1  ;;  %v1508_v17 = vsel %vm268_vm5, 0, %v1504_v62  ;;  %v4567_v13 = vld [vmem:[#allocation13 + $0xe4] ss:$8 sps:$4 sm:$0xff]   ;;  %v4568_v38 = vld [vmem:[#allocation13 + $0x60] ss:$8 sps:$4 sm:$0xff]  }
 0x47d   :  { %v2872_v12 = vrot.slane %v2871_v6, 4  ;;  %2336 = vadd.xlane.f32.xlu1 %v2335_v27  ;;  %v2855_v55 = vrot.slane %v2854_v37, 1  ;;  %1854 = vmatprep.subr.bf16.mxu1 %v4567_v13  ;;  %v4571_v27 = vld [vmem:[#allocation13 + $0xd0] ss:$8 sps:$4 sm:$0xff]   ;;  %v4577_v10 = vld [vmem:[#allocation13 + $0xc0] ss:$8 sps:$4 sm:$0xff]  }
 0x47e   :  { %v2879_v50 = vrot.slane %v2878_v35, 4  ;;  %v2849_v41 = vmax.f32 %v2847_v34, %v2848_v9  ;;  %1855 = vmatpush1.bf16.msra.mxu1 %v4565_v22  ;;  %v4574_v8 = vld [vmem:[#allocation13 + $0x50] ss:$8 sps:$4 sm:$0xff]   ;;  %v4582_v34 = vld [vmem:[#allocation13 + $0x44] ss:$8 sps:$4 sm:$0xff]  }
 0x47f   :  { %v2873_v26 = vmax.f32 %v2871_v6, %v2872_v12  ;;  %v2856_v54 = vmax.f32 %v2854_v37, %v2855_v55  ;;  %1856 = vmatprep.subr.bf16.mxu1 %v4573_v2  ;;  %v4579_v6 = vld [vmem:[#allocation13 + $0xc4] ss:$8 sps:$4 sm:$0xff]   ;;  %v4580_v12 = vld [vmem:[#allocation13 + $0x40] ss:$8 sps:$4 sm:$0xff]   ;;  %v4585_v37 = vld [vmem:[#allocation13 + $0xb4] ss:$8 sps:$4 sm:$0xff]  }
 0x480   :  { %v2880_v28 = vmax.f32 %v2878_v35, %v2879_v50  ;;  %v2899_v51 = vpack.c.bf16 %v2849_v41, %v2849_v41  ;;  %v4583_v35 = vld [vmem:[#allocation13 + $0xb0] ss:$8 sps:$4 sm:$0xff]   ;;  %v4588_v50 = vld [vmem:[#allocation13 + $0x34] ss:$8 sps:$4 sm:$0xff]   ;;  %v4589_v55 = vld [vmem:[#allocation13 + $0xa0] ss:$8 sps:$4 sm:$0xff]  }
 0x481   :  { %v2874_v23 = vrot.slane %v2873_v26, 2  ;;  %v2900_v45 = vpack.c.bf16 %v2856_v54, %v2856_v54  ;;  %v4586_v9 = vld [vmem:[#allocation13 + $0x30] ss:$8 sps:$4 sm:$0xff]  }
 0x482   :  { %v2881_v42 = vrot.slane %v2880_v28, 2  ;;  %v2991_v40 = vunpack.c.l.b16 %v2899_v51  ;;  %1857 = vmatpush1.bf16.msra.mxu1 %v4571_v27  ;;  %v4595_v41 = vld [vmem:[#allocation13 + $0x90] ss:$8 sps:$4 sm:$0xff]   ;;  %v4609_v51 = vld [vmem:[#allocation13 + $0x174] ss:$8 sps:$4 sm:$0xff]  }
 0x483   :  { %v2875_v60 = vmax.f32 %v2873_v26, %v2874_v23  ;;  %v2992_v4 = vunpack.c.l.b16 %v2900_v45  ;;  %1858 = vmatprep.subr.bf16.mxu1 %v4579_v6  ;;  %v4591_v26 = vld [vmem:[#allocation13 + $0xa4] ss:$8 sps:$4 sm:$0xff]   ;;  %v4592_v23 = vld [vmem:[#allocation13 + $0x20] ss:$8 sps:$4 sm:$0xff]   ;;  %v4598_v54 = vld [vmem:[#allocation13 + $0x10] ss:$8 sps:$4 sm:$0xff]  }
 0x484   :  { %v2882_v59 = vmax.f32 %v2880_v28, %v2881_v42  ;;  %v4594_v28 = vld [vmem:[#allocation13 + $0x24] ss:$8 sps:$4 sm:$0xff]   ;;  %v4597_v42 = vld [vmem:[#allocation13 + $0x94] ss:$8 sps:$4 sm:$0xff]  }
 0x485   :  { %v2876_v52 = vrot.slane %v2875_v60, 1 }
 0x486   :  { %v2883_v61 = vrot.slane %v2882_v59, 1  ;;  %1859 = vmatpush1.bf16.msra.mxu1 %v4577_v10 }
 0x487   :  { %v2877_v19 = vmax.f32 %v2875_v60, %v2876_v52  ;;  %1860 = vmatprep.subr.bf16.mxu1 %v4585_v37  ;;  %v4600_v60 = vld [vmem:[#allocation13 + $0x14] ss:$8 sps:$4 sm:$0xff]   ;;  %v4603_v52 = vld [vmem:[#allocation13 + $0x84] ss:$8 sps:$4 sm:$0xff]  }
 0x488   :  { %v2884_v5 = vmax.f32 %v2882_v59, %v2883_v61  ;;  %v4601_v59 = vld [vmem:[#allocation13 + $0x80] ss:$8 sps:$4 sm:$0xff]   ;;  %v4606_v61 = vld [vmem:[#allocation13 + $0x4] ss:$8 sps:$4 sm:$0xff]  }
 0x489   :  { %v2903_v57 = vpack.c.bf16 %v2877_v19, %v2877_v19  ;;  %v4604_v19 = vld [vmem:[#allocation13] ss:$8 sps:$4 sm:$0xff]  }
 0x48a   :  { %v2904_v25 = vpack.c.bf16 %v2884_v5, %v2884_v5  ;;  %1861 = vmatpush1.bf16.msra.mxu1 %v4583_v35  ;;  %v4154_v5 = vld [vmem:[#allocation12] ss:$0 sm:$0xff]  ;;  %v4607_v35 = vld [vmem:[#allocation13 + $0x170] ss:$8 sps:$4 sm:$0xff]  }
 0x48b   :  { %v2995_v1 = vunpack.c.l.b16 %v2903_v57  ;;  %1862 = vmatprep.subr.bf16.mxu1 %v4591_v26  ;;  %v4155_v57 = vld [vmem:[#allocation12 + $0x1] ss:$0 sm:$0xff]  ;;  %v4612_v26 = vld [vmem:[#allocation13 + $0x164] ss:$8 sps:$4 sm:$0xff]  }
 0x48c   :  { %v2996_v56 = vunpack.c.l.b16 %v2904_v25 }
 0x48d   :  { %v5926_v36 = vsel %vm2403_vm8, %v2995_v1, %v2991_v40 }
 0x48e   :  { %v5929_v44 = vsel %vm2403_vm8, %v2996_v56, %v2992_v4  ;;  %1863 = vmatpush1.bf16.msra.mxu1 %v4589_v55 }
 0x48f   :  { %1864 = vmatprep.subr.bf16.mxu1 %v4597_v42 }
 0x492   :  { %1865 = vmatpush1.bf16.msra.mxu1 %v4595_v41 }
 0x493   :  { %1866 = vmatprep.subr.bf16.mxu1 %v4603_v52 }
 0x496   :  { %1867 = vmatpush1.bf16.msra.mxu1 %v4601_v59 }
 0x497   :  { %2134 = vmatprep.subr.bf16.mxu1 %v4609_v51  ;;  %v4618_v51 = vld [vmem:[#allocation13 + $0x144] ss:$8 sps:$4 sm:$0xff]  }
 0x4bc   :  { %v1518_v63 = vpop.permute.xlu0 %1517 }
 0x4bd   :  { %v1523_v58 = vsel %vm301_vm9, %v1508_v17, %v1518_v63 }
 0x4bf   :  { %v1516_v32 = vpop.permute.xlu1 %1515 }
 0x4c0   :  { %v1520_v21 = vsel %vm301_vm9, %v1506_v3, %v1516_v32 }
 0x4c1   :  { %1658 = vmatmul.mubr.bf16.vlgmr.msra.gmra.mxu0 %v1520_v21 }
 0x4c2   :  { %4153 = vmatprep.mubr.msk.bf16.mxu0 %vm301_vm9, %v1514_v16  ;;  %1986 = vmatpush1.bf16.msra.mxu0 %v4562_v47 }
 0x4c3   :  { %1987 = vmatprep.subr.bf16.mxu0 %v4570_v53 }
 0x4c6   :  { %1988 = vmatpush1.bf16.msra.mxu0 %v4568_v38 }
 0x4c7   :  { %1989 = vmatprep.subr.bf16.mxu0 %v4576_v48 }
 0x4c9   :  { %1666 = vmatmul.mubr.bf16.gmra.mxu0 %v1523_v58 }
 0x4ca   :  { %2017 = vmatprep.mubr.bf16.mxu0 %v5203_v7  ;;  %1990 = vmatpush1.bf16.msra.mxu0 %v4574_v8 }
 0x4cb   :  { %1991 = vmatprep.subr.bf16.mxu0 %v4582_v34 }
 0x4ce   :  { %1992 = vmatpush1.bf16.msra.mxu0 %v4580_v12 }
 0x4cf   :  { %1993 = vmatprep.subr.bf16.mxu0 %v4588_v50 }
 0x4d2   :  { %1994 = vmatpush1.bf16.msra.mxu0 %v4586_v9 }
 0x4d3   :  { %1995 = vmatprep.subr.bf16.mxu0 %v4594_v28 }
 0x4d6   :  { %1996 = vmatpush1.bf16.msra.mxu0 %v4592_v23  ;;  %v4610_v23 = vld [vmem:[#allocation13 + $0x160] ss:$8 sps:$4 sm:$0xff]  }
 0x4d7   :  { %1997 = vmatprep.subr.bf16.mxu0 %v4600_v60  ;;  %v4615_v60 = vld [vmem:[#allocation13 + $0x154] ss:$8 sps:$4 sm:$0xff]  }
 0x4da   :  { %1998 = vmatpush1.bf16.msra.mxu0 %v4598_v54 }
 0x4db   :  { %1999 = vmatprep.subr.bf16.mxu0 %v4606_v61  ;;  %v4613_v61 = vld [vmem:[#allocation13 + $0x150] ss:$8 sps:$4 sm:$0xff]  }
 0x4de   :  { %2000 = vmatpush1.bf16.msra.mxu0 %v4604_v19 }
 0x581   :  { %v1659_v45 = vpop.f32.mrf.mxu0 }
 0x582   :  { %v1679_v25 = vmul.f32 %v4154_v5, %v1659_v45  ;;  %v4616_v45 = vld [vmem:[#allocation13 + $0x140] ss:$8 sps:$4 sm:$0xff]  }
 0x583   :  { %v1661_v40 = vpop.f32.mrf.mxu0 }
 0x584   :  { %v1688_v1 = vadd.f32 %v4155_v57, %v1679_v25  ;;  %v4619_v25 = vld [vmem:[#allocation13 + $0x130] ss:$8 sps:$4 sm:$0xff]   ;;  %v4624_v40 = vld [vmem:[#allocation13 + $0x124] ss:$8 sps:$4 sm:$0xff]  }
 0x585   :  { %v1662_v4 = vpop.f32.mrf.mxu0 }
 0x586   :  { %v1696_v56 = vmin.f32 %v1688_v1, 0.0  ;;  %v1680_v46 = vmul.f32 %v4154_v5, %v1662_v4  ;;  %vm1692_vm5 = vcmp.gt.f32.partialorder %v1688_v1, 0.0  ;;  %v4627_v4 = vld [vmem:[#allocation13 + $0x114] ss:$8 sps:$4 sm:$0xff]  }
 0x587   :  { %v1664_v33 = vpop.f32.mrf.mxu0 }
 0x588   :  { %v1700_v32 = vmul.f32 1.442695, %v1696_v56  ;;  %v1689_v3 = vadd.f32 %v4155_v57, %v1680_v46  ;;  %v4625_v56 = vld [vmem:[#allocation13 + $0x110] ss:$8 sps:$4 sm:$0xff]   ;;  %v4630_v46 = vld [vmem:[#allocation13 + $0x104] ss:$8 sps:$4 sm:$0xff]  }
 0x589   :  { %v1667_v21 = vpop.f32.mrf.mxu0  ;;  %v4628_v33 = vld [vmem:[#allocation13 + $0x100] ss:$8 sps:$4 sm:$0xff]  }
 0x58a   :  { %4879 = vpow2.f32 %v1700_v32  ;;  %v1697_v16 = vmin.f32 %v1689_v3, 0.0  ;;  %v1681_v62 = vmul.f32 %v4154_v5, %v1667_v21  ;;  %vm1693_vm9 = vcmp.gt.f32.partialorder %v1689_v3, 0.0 }
 0x58b   :  { %v1669_v63 = vpop.f32.mrf.mxu0 }
 0x58c   :  { %v1702_v17 = vmul.f32 1.442695, %v1697_v16  ;;  %v1690_v58 = vadd.f32 %v4155_v57, %v1681_v62 }
 0x58d   :  { %v1670_v11 = vpop.f32.mrf.mxu0 }
 0x58e   :  { %4881 = vpow2.f32 %v1702_v17  ;;  %v1698_v20 = vmin.f32 %v1690_v58, 0.0  ;;  %v1682_v43 = vmul.f32 %v4154_v5, %v1670_v11  ;;  %vm1694_vm0 = vcmp.gt.f32.partialorder %v1690_v58, 0.0 }
 0x58f   :  { %v1672_v47 = vpop.f32.mrf.mxu0 }
 0x590   :  { %v1704_v13 = vmul.f32 1.442695, %v1698_v20  ;;  %v1691_v22 = vadd.f32 %v4155_v57, %v1682_v43  ;;  %v4621_v57 = vld [vmem:[#allocation13 + $0x134] ss:$8 sps:$4 sm:$0xff]  }
 0x592   :  { %4883 = vpow2.f32 %v1704_v13  ;;  %v1699_v53 = vmin.f32 %v1691_v22, 0.0  ;;  %vm1695_vm10 = vcmp.gt.f32.partialorder %v1691_v22, 0.0  ;;  %v2195_v13 = vld [vmem:[%s6095_s15] ss:$2 sm:$0x3] }
 0x594   :  { %v1706_v38 = vmul.f32 1.442695, %v1699_v53 }
 0x596   :  { %4885 = vpow2.f32 %v1706_v38 }
 0x597   :  { %v4880_v2 = vpop.eup %4879 }
 0x598   :  { %v4156_v27 = vadd.f32 -1.0, %v4880_v2  ;;  %v2200_v2 = vrot.slane %v2195_v13, %v5436_v29 }
 0x59a   :  { %v1712_v8 = vsel %vm1692_vm5, %v1688_v1, %v4156_v27  ;;  %v4622_v1 = vld [vmem:[#allocation13 + $0x120] ss:$8 sps:$4 sm:$0xff]  }
 0x59b   :  { %v4882_v48 = vpop.eup %4881  ;;  %v1716_v12 = vmul.f32 %v1712_v8, %v5788_v0 }
 0x59c   :  { %v4157_v6 = vadd.f32 -1.0, %v4882_v48 }
 0x59e   :  { %v1713_v10 = vsel %vm1693_vm9, %v1689_v3, %v4157_v6 }
 0x59f   :  { %v4884_v34 = vpop.eup %4883  ;;  %v1717_v37 = vmul.f32 %v1713_v10, %v5788_v0  ;;  %v2204_v10 = vrot.slane %v2195_v13, %v5704_v15 }
 0x5a0   :  { %v4158_v50 = vadd.f32 -1.0, %v4884_v34 }
 0x5a1   :  { %v1720_v9 = vpack.c.bf16 %v1717_v37, %v1716_v12 }
 0x5a2   :  { %v1714_v41 = vsel %vm1694_vm0, %v1690_v58, %v4158_v50 }
 0x5a3   :  { %v4886_v55 = vpop.eup %4885  ;;  %v1724_v28 = vrot.slane %v1720_v9, 6  ;;  %1885 = vmatmul.mubr.bf16.vlgmr.msra.gmra.mxu1 %v1720_v9  ;;  %v1718_v59 = vmul.f32 %v1714_v41, %v5779_v18  ;;  %v1732_v49 = vrot.slane %v1720_v9, 2 }
 0x5a4   :  { %2135 = vmatpush1.bf16.msra.mxu1 %v4607_v35  ;;  %1894 = vmatprep.mubr.bf16.mxu1 %v5203_v7  ;;  %v4159_v42 = vadd.f32 -1.0, %v4886_v55 }
 0x5a5   :  { %4193 = vmatmul.mubr.msk.bf16.vlgmr.msra.gmra.mxu0 %vm5588_vm6, %v1724_v28  ;;  %2136 = vmatprep.subr.bf16.mxu1 %v4612_v26 }
 0x5a6   :  { %v1715_v54 = vsel %vm1695_vm10, %v1691_v22, %v4159_v42  ;;  %2027 = vmatprep.mubr.bf16.mxu0 %v5203_v7 }
 0x5a7   :  { %v1719_v52 = vmul.f32 %v1715_v54, %v5779_v18 }
 0x5a8   :  { %2137 = vmatpush1.bf16.msra.mxu1 %v4610_v23 }
 0x5a9   :  { %2138 = vmatprep.subr.bf16.mxu1 %v4615_v60  ;;  %v1721_v19 = vpack.c.bf16 %v1719_v52, %v1718_v59 }
 0x5ab   :  { %1895 = vmatmul.mubr.bf16.gmra.mxu1 %v1721_v19  ;;  %v1725_v5 = vrot.slane %v1721_v19, 6  ;;  %v1733_v32 = vrot.slane %v1721_v19, 2 }
 0x5ac   :  { %2139 = vmatpush1.bf16.msra.mxu1 %v4613_v61  ;;  %2166 = vmatprep.mubr.bf16.mxu1 %v5203_v7 }
 0x5ad   :  { %4195 = vmatmul.mubr.msk.bf16.gmra.mxu0 %vm5588_vm6, %v1725_v5  ;;  %2140 = vmatprep.subr.bf16.mxu1 %v4618_v51 }
 0x5ae   :  { %2585 = vmatprep.mubr.bf16.mxu0 %v5203_v7 }
 0x5b0   :  { %2141 = vmatpush1.bf16.msra.mxu1 %v4616_v45 }
 0x5b1   :  { %2142 = vmatprep.subr.bf16.mxu1 %v4621_v57 }
 0x5b4   :  { %2143 = vmatpush1.bf16.msra.mxu1 %v4619_v25 }
 0x5b5   :  { %2144 = vmatprep.subr.bf16.mxu1 %v4624_v40 }
 0x5b8   :  { %2145 = vmatpush1.bf16.msra.mxu1 %v4622_v1 }
 0x5b9   :  { %2146 = vmatprep.subr.bf16.mxu1 %v4627_v4 }
 0x5bc   :  { %2147 = vmatpush1.bf16.msra.mxu1 %v4625_v56 }
 0x5bd   :  { %2148 = vmatprep.subr.bf16.mxu1 %v4630_v46 }
 0x5c0   :  { %2149 = vmatpush1.bf16.msra.mxu1 %v4628_v33 }
 0x5c3   :  { %4212 = vmatmul.mubr.msk.bf16.vlgmr.msra.gmra.mxu1 %vm711_vm7, %v1732_v49 }
 0x5c4   :  { %2176 = vmatprep.mubr.bf16.mxu1 %v5203_v7 }
 0x5cb   :  { %4213 = vmatmul.mubr.msk.bf16.gmra.mxu1 %vm711_vm7, %v1733_v32 }
 0x5cc   :  { %2631 = vmatprep.mubr.bf16.mxu1 %v5203_v7  ;;  %v4214_v7 = vld [vmem:[%s6095_s15 + $0x1] ss:$2 sm:$0x3] }
 0x5cd   :  { %v2221_v6 = vrot.slane %v4214_v7, %v5436_v29  ;;  %v2225_v9 = vrot.slane %v4214_v7, %v5704_v15 }
 0x663   :  { %v1886_v3 = vpop.f32.mrf.mxu1 }
 0x665   :  { %v1888_v21 = vpop.f32.mrf.mxu1  ;;  %v2019_v62 = vpop.f32.mrf.mxu0 }
 0x666   :  { %v2020_v38 = vadd.f32 %v2019_v62, %v1886_v3 }
 0x667   :  { %v1890_v16 = vpop.f32.mrf.mxu1  ;;  %v2021_v17 = vpop.f32.mrf.mxu0 }
 0x668   :  { %v2022_v48 = vadd.f32 %v2021_v17, %v1888_v21 }
 0x669   :  { %v1892_v63 = vpop.f32.mrf.mxu1  ;;  %v2023_v11 = vpop.f32.mrf.mxu0 }
 0x66a   :  { %v2024_v37 = vadd.f32 %v2023_v11, %v1890_v16 }
 0x66b   :  { %v1896_v58 = vpop.f32.mrf.mxu1  ;;  %v2025_v43 = vpop.f32.mrf.mxu0 }
 0x66c   :  { %v2026_v42 = vadd.f32 %v2025_v43, %v1892_v63 }
 0x66d   :  { %v1898_v20 = vpop.f32.mrf.mxu1  ;;  %v2029_v22 = vpop.f32.mrf.mxu0 }
 0x66e   :  { %v2030_v61 = vadd.f32 %v2029_v22, %v1896_v58 }
 0x66f   :  { %v1900_v47 = vpop.f32.mrf.mxu1  ;;  %v2031_v34 = vpop.f32.mrf.mxu0 }
 0x670   :  { %v2032_v25 = vadd.f32 %v2031_v34, %v1898_v20 }
 0x671   :  { %v1902_v53 = vpop.f32.mrf.mxu1  ;;  %v2033_v41 = vpop.f32.mrf.mxu0 }
 0x672   :  { %v2034_v46 = vadd.f32 %v2033_v41, %v1900_v47 }
 0x673   :  { %v2035_v40 = vpop.f32.mrf.mxu0 }
 0x674   :  { %v2036_v62 = vadd.f32 %v2035_v40, %v1902_v53 }
 0x683   :  { %v2168_v27 = vpop.f32.mrf.mxu1 }
 0x684   :  { %v2187_v8 = vadd.f32 %v2168_v27, %v2020_v38 }
 0x685   :  { %v2170_v12 = vpop.f32.mrf.mxu1 }
 0x686   :  { %v2207_v35 = vmul.f32 %v2200_v2, %v2187_v8  ;;  %v2188_v50 = vadd.f32 %v2170_v12, %v2022_v48 }
 0x687   :  { %v2172_v26 = vpop.f32.mrf.mxu1 }
 0x688   :  { %v5967_v55 = vadd.f32 %v2221_v6, %v2207_v35  ;;  %v2208_v28 = vmul.f32 %v2204_v10, %v2188_v50  ;;  %v2189_v23 = vadd.f32 %v2172_v26, %v2024_v37 }
 0x689   :  { %v2174_v60 = vpop.f32.mrf.mxu1 }
 0x68a   :  { %v2244_v54 = vmin.f32 %v5967_v55, 0.0  ;;  %v5970_v59 = vadd.f32 %v2225_v9, %v2208_v28  ;;  %v2209_v52 = vmul.f32 %v2200_v2, %v2189_v23  ;;  %v2190_v19 = vadd.f32 %v2174_v60, %v2026_v42 }
 0x68b   :  { %v2178_v51 = vpop.f32.mrf.mxu1  ;;  %vm2236_vm6 = vcmp.gt.f32.partialorder %v5967_v55, 0.0 }
 0x68c   :  { %v2252_v5 = vmul.f32 1.442695, %v2244_v54  ;;  %v2245_v45 = vmin.f32 %v5970_v59, 0.0  ;;  %v2230_v57 = vadd.f32 %v2221_v6, %v2209_v52  ;;  %v2210_v1 = vmul.f32 %v2204_v10, %v2190_v19 }
 0x68d   :  { %v2191_v4 = vadd.f32 %v2178_v51, %v2030_v61  ;;  %v2180_v56 = vpop.f32.mrf.mxu1  ;;  %vm2237_vm13 = vcmp.gt.f32.partialorder %v5970_v59, 0.0  ;;  %v2298_v51 = vld [vmem:[#allocation15 + $0x1] ss:$2 sm:$0x3] }
 0x68e   :  { %4887 = vpow2.f32 %v2252_v5  ;;  %v2254_v33 = vmul.f32 1.442695, %v2245_v45  ;;  %v2246_v49 = vmin.f32 %v2230_v57, 0.0  ;;  %v2231_v32 = vadd.f32 %v2225_v9, %v2210_v1 }
 0x68f   :  { %v2211_v3 = vmul.f32 %v2200_v2, %v2191_v4  ;;  %v2192_v21 = vadd.f32 %v2180_v56, %v2032_v25  ;;  %v2182_v16 = vpop.f32.mrf.mxu1  ;;  %vm2238_vm7 = vcmp.gt.f32.partialorder %v2230_v57, 0.0  ;;  %v2354_v56 = vrot.slane %v2298_v51, %v5704_v15 }
 0x690   :  { %4889 = vpow2.f32 %v2254_v33  ;;  %v2256_v63 = vmul.f32 1.442695, %v2246_v49  ;;  %v2193_v17 = vadd.f32 %v2182_v16, %v2034_v46  ;;  %v2247_v58 = vmin.f32 %v2231_v32, 0.0 }
 0x691   :  { %v2232_v11 = vadd.f32 %v2221_v6, %v2211_v3  ;;  %v2212_v43 = vmul.f32 %v2204_v10, %v2192_v21  ;;  %v2184_v20 = vpop.f32.mrf.mxu1  ;;  %vm2239_vm14 = vcmp.gt.f32.partialorder %v2231_v32, 0.0 }
 0x692   :  { %4891 = vpow2.f32 %v2256_v63  ;;  %v2213_v13 = vmul.f32 %v2200_v2, %v2193_v17  ;;  %v2194_v22 = vadd.f32 %v2184_v20, %v2036_v62  ;;  %v2258_v7 = vmul.f32 1.442695, %v2247_v58 }
 0x693   :  { %v2248_v47 = vmin.f32 %v2232_v11, 0.0  ;;  %v2233_v38 = vadd.f32 %v2225_v9, %v2212_v43  ;;  %vm2240_vm15 = vcmp.gt.f32.partialorder %v2232_v11, 0.0 }
 0x694   :  { %v2234_v27 = vadd.f32 %v2221_v6, %v2213_v13  ;;  %v2214_v48 = vmul.f32 %v2204_v10, %v2194_v22  ;;  %4893 = vpow2.f32 %v2258_v7 }
 0x695   :  { %v2260_v8 = vmul.f32 1.442695, %v2248_v47  ;;  %v2249_v34 = vmin.f32 %v2233_v38, 0.0  ;;  %vm2241_vm1 = vcmp.gt.f32.partialorder %v2233_v38, 0.0 }
 0x696   :  { %v2250_v12 = vmin.f32 %v2234_v27, 0.0  ;;  %v2235_v53 = vadd.f32 %v2225_v9, %v2214_v48  ;;  %vm2242_vm2 = vcmp.gt.f32.partialorder %v2234_v27, 0.0 }
 0x697   :  { %4895 = vpow2.f32 %v2260_v8  ;;  %v2262_v37 = vmul.f32 1.442695, %v2249_v34 }
 0x698   :  { %v2264_v35 = vmul.f32 1.442695, %v2250_v12  ;;  %v2251_v50 = vmin.f32 %v2235_v53, 0.0  ;;  %vm2243_vm3 = vcmp.gt.f32.partialorder %v2235_v53, 0.0 }
 0x699   :  { %4897 = vpow2.f32 %v2262_v37 }
 0x69a   :  { %4899 = vpow2.f32 %v2264_v35  ;;  %v2266_v26 = vmul.f32 1.442695, %v2251_v50 }
 0x69b   :  { %v4888_v28 = vpop.eup %4887 }
 0x69c   :  { %v4215_v2 = vadd.f32 -1.0, %v4888_v28  ;;  %4901 = vpow2.f32 %v2266_v26 }
 0x69d   :  { %v4890_v23 = vpop.eup %4889 }
 0x69e   :  { %v4216_v6 = vadd.f32 -1.0, %v4890_v23  ;;  %v2276_v10 = vsel %vm2236_vm6, %v5967_v55, %v4215_v2 }
 0x69f   :  { %v4892_v42 = vpop.eup %4891  ;;  %v2284_v61 = vmul.f32 %v2276_v10, %v5788_v0  ;;  %v4956_v10 = vld [vmem:[%s6135_s21] ss:$0 sm:$0xff] }
 0x6a0   :  { %v4217_v41 = vadd.f32 -1.0, %v4892_v42  ;;  %v2277_v52 = vsel %vm2237_vm13, %v5970_v59, %v4216_v6 }
 0x6a1   :  { %v4894_v9 = vpop.eup %4893  ;;  %v2285_v1 = vmul.f32 %v2277_v52, %v5788_v0 }
 0x6a2   :  { %v2278_v60 = vsel %vm2238_vm7, %v2230_v57, %v4217_v41  ;;  %v4218_v54 = vadd.f32 -1.0, %v4894_v9  ;;  %v2350_v57 = vrot.slane %v2298_v51, %v5436_v29  ;;  %v2467_v41 = vpop.permute.xlu1 %2466  ;;  %v2436_v9 = vpop.permute.xlu0 %2435 }
 0x6a3   :  { %v2286_v19 = vmul.f32 %v2278_v60, %v5788_v0  ;;  %vm2471_vm10 = vcmp.ge.s32.totalorder %v5421_v24, %v2467_v41 }
 0x6a4   :  { %v4896_v5 = vpop.eup %4895  ;;  %v2279_v25 = vsel %vm2239_vm14, %v2231_v32, %v4218_v54  ;;  %v2382_v54 = vand.u32 127, %v452_v14 }
 0x6a5   :  { %v4219_v45 = vadd.f32 -1.0, %v4896_v5  ;;  %v2292_v40 = vpack.c.bf16 %v2286_v19, %v2284_v61  ;;  %v2287_v4 = vmul.f32 %v2279_v25, %v5788_v0 }
 0x6a6   :  { %v4898_v55 = vpop.eup %4897  ;;  %v2470_v60 = vpop.permute.xlu1 %2469  ;;  %v2387_v19 = vadd.s32 4294967288, %v2382_v54  ;;  %v2385_v25 = vsub.s32 %v2382_v54, %v5421_v24 }
 0x6a7   :  { %v4900_v59 = vpop.eup %4899  ;;  %v2340_v46 = vunpack.c.h.bf16 %v2292_v40  ;;  %v4220_v33 = vadd.f32 -1.0, %v4898_v55  ;;  %v2280_v49 = vsel %vm2240_vm15, %v2232_v11, %v4219_v45  ;;  %v2293_v21 = vpack.c.bf16 %v2287_v4, %v2285_v1  ;;  %v2328_v52 = vpop.xlane.xlu0 %2327 }
 0x6a8   :  { %v4221_v3 = vadd.f32 -1.0, %v4900_v59  ;;  %v2338_v16 = vunpack.c.l.bf16 %v2292_v40  ;;  %v2288_v20 = vmul.f32 %v2280_v49, %v5779_v18  ;;  %v2390_v45 = vsub.s32 %v2387_v19, %v5421_v24 }
 0x6a9   :  { %v4902_v32 = vpop.eup %4901  ;;  %v2281_v62 = vsel %vm2241_vm1, %v2233_v38, %v4220_v33  ;;  %2567 = vmatprep.subr.bf16.mxu0 %v2293_v21  ;;  %v2341_v17 = vunpack.c.h.bf16 %v2293_v21  ;;  %v2339_v0 = vunpack.c.l.bf16 %v2293_v21  ;;  %v2359_v43 = vmul.f32 %v2350_v57, %v2340_v46 }
 0x6aa   :  { %v2282_v63 = vsel %vm2242_vm2, %v2234_v27, %v4221_v3  ;;  %v4222_v58 = vadd.f32 -1.0, %v4902_v32  ;;  %2568 = vmatpush1.bf16.msra.mxu0 %v2292_v40  ;;  %v2357_v11 = vmul.f32 %v2350_v57, %v2338_v16  ;;  %v2289_v48 = vmul.f32 %v2281_v62, %v5779_v18  ;;  %v2331_v61 = vpop.xlane.xlu1 %2330 }
 0x6ab   :  { %v2290_v13 = vmul.f32 %v2282_v63, %v5779_v18  ;;  %v2360_v22 = vmul.f32 %v2354_v56, %v2341_v17  ;;  %v2358_v7 = vmul.f32 %v2354_v56, %v2339_v0  ;;  %v2334_v51 = vpop.xlane.xlu0 %2333  ;;  %v2456_v17 = vadd.s32 8, %v5421_v24 }
 0x6ac   :  { %v2283_v47 = vsel %vm2243_vm3, %v2235_v53, %v4222_v58  ;;  %vm2473_vm5 = vcmp.ge.s32.totalorder %v5421_v24, %v2470_v60  ;;  %vm2503_vm1 = vcmask 130048  }
 0x6ad   :  { %v2291_v38 = vmul.f32 %v2283_v47, %v5779_v18  ;;  %v2294_v27 = vpack.c.bf16 %v2290_v13, %v2288_v20  ;;  %v2368_v8 = vadd.f32 %v2360_v22, %v2359_v43  ;;  %v2365_v34 = vadd.f32 %v2358_v7, %v2357_v11  ;;  %v4955_v18 = vld [vmem:[%s6135_s21 + $0x1] ss:$0 sm:$0xff] }
 0x6ae   :  { %v2337_v5 = vpop.xlane.xlu1 %2336  ;;  %vm2472_vm14 = vcmp.ge.s32.totalorder %v2456_v17, %v2467_v41 }
 0x6af   :  { %v2295_v12 = vpack.c.bf16 %v2291_v38, %v2289_v48  ;;  %v2342_v37 = vunpack.c.l.bf16 %v2294_v27  ;;  %v2344_v35 = vunpack.c.h.bf16 %v2294_v27  ;;  %2369 = vadd.xlane.f32.xlu0 %v2368_v8  ;;  %2366 = vadd.xlane.f32.xlu1 %v2365_v34 }
 0x6b1   :  { %2613 = vmatprep.subr.bf16.mxu1 %v2295_v12  ;;  %v2343_v50 = vunpack.c.l.bf16 %v2295_v12  ;;  %v2345_v26 = vunpack.c.h.bf16 %v2295_v12  ;;  %v2361_v28 = vmul.f32 %v2350_v57, %v2342_v37  ;;  %v2363_v23 = vmul.f32 %v2350_v57, %v2344_v35 }
 0x6b2   :  { %2614 = vmatpush1.bf16.msra.mxu1 %v2294_v27 }
 0x6b3   :  { %v2362_v2 = vmul.f32 %v2354_v56, %v2343_v50  ;;  %v2364_v53 = vmul.f32 %v2354_v56, %v2345_v26 }
 0x6b5   :  { %v2371_v42 = vadd.f32 %v2362_v2, %v2361_v28  ;;  %v2374_v6 = vadd.f32 %v2364_v53, %v2363_v23 }
 0x6b7   :  { %2372 = vadd.xlane.f32.xlu0 %v2371_v42  ;;  %2375 = vadd.xlane.f32.xlu1 %v2374_v6 }
 0x6c8   :  { %2487 = vperm.xlu1 %4446, %v4955_v18  }
 0x6cd   :  { %2484 = vperm.xlu0 %4445, %v4956_v10  }
 0x738   :  { %v2370_v40 = vpop.xlane.xlu0 %2369  ;;  %v2367_v55 = vpop.xlane.xlu1 %2366 }
 0x739   :  { %v2391_v1 = vrot.slane %v2370_v40, %v2390_v45  ;;  %v2386_v4 = vrot.slane %v2367_v55, %v2385_v25 }
 0x73b   :  { %v2393_v57 = vsel %vm2392_vm11, %v2391_v1, %v2386_v4 }
 0x73c   :  { %v2424_v56 = vadd.f32 %v2393_v57, %v2328_v52  ;;  %v2425_v59 = vadd.f32 %v2393_v57, %v2331_v61 }
 0x73e   :  { %v2438_v21 = vadd.f32 %v2436_v9, %v2424_v56  ;;  %v2439_v63 = vadd.f32 %v2436_v9, %v2425_v59  ;;  %v4633_v56 = vld [vmem:[#allocation16 + $0x74] ss:$8 sps:$4 sm:$0xff]  }
 0x73f   :  { %3331 = vmatprep.subr.bf16.mxu0 %v4633_v56  ;;  %v4688_v56 = vld [vmem:[#allocation19 + $0x40] ss:$8 sps:$4 sm:$0xff]  }
 0x740   :  { %v2373_v46 = vpop.xlane.xlu0 %2372  ;;  %v2376_v33 = vpop.xlane.xlu1 %2375  ;;  %v2446_v58 = vmul.f32 0.2, %v2438_v21  ;;  %v2447_v13 = vmul.f32 0.2, %v2439_v63  ;;  %vm2442_vm9 = vcmp.gt.f32.partialorder %v2438_v21, 0.0  ;;  %vm2443_vm13 = vcmp.gt.f32.partialorder %v2439_v63, 0.0 }
 0x741   :  { %v2397_v14 = vrot.slane %v2373_v46, %v2385_v25  ;;  %v2401_v49 = vrot.slane %v2376_v33, %v2390_v45 }
 0x742   :  { %v2450_v47 = vsel %vm2442_vm9, %v2438_v21, %v2446_v58  ;;  %v2451_v8 = vsel %vm2443_vm13, %v2439_v63, %v2447_v13  ;;  %v4636_v63 = vld [vmem:[#allocation16 + $0x64] ss:$8 sps:$4 sm:$0xff]   ;;  %v4634_v58 = vld [vmem:[#allocation16 + $0x60] ss:$8 sps:$4 sm:$0xff]  }
 0x743   :  { %v2402_v3 = vsel %vm2392_vm11, %v2401_v49, %v2397_v14  ;;  %vm2474_vm11 = vcmp.ge.s32.totalorder %v2456_v17, %v2470_v60  ;;  %v6021_v17 = vpack.c.b16 %v5929_v44, %v5929_v44  ;;  %v4640_v44 = vld [vmem:[#allocation16 + $0x40] ss:$8 sps:$4 sm:$0xff]  }
 0x744   :  { %v2426_v16 = vadd.f32 %v2402_v3, %v2334_v51  ;;  %v2427_v32 = vadd.f32 %v2402_v3, %v2337_v5  ;;  %v2488_v62 = vpop.permute.xlu1 %2487 }
 0x745   :  { %vm2490_vm12 = vcmp.ge.s32.totalorder %v2382_v54, %v2488_v62 }
 0x746   :  { %v2440_v0 = vadd.f32 %v2436_v9, %v2426_v16  ;;  %v2441_v43 = vadd.f32 %v2436_v9, %v2427_v32  ;;  %vm6000_vm6 = vmor %vm2473_vm5, %vm2490_vm12  ;;  %v4631_v32 = vld [vmem:[#allocation16 + $0x70] ss:$8 sps:$4 sm:$0xff]  }
 0x747   :  { %v2497_v12 = vsel %vm6000_vm6, -1e+09, %v5205_v30  ;;  %vm2494_vm5 = vmor %vm2474_vm11, %vm2490_vm12 }
 0x748   :  { %v2485_v20 = vpop.permute.xlu0 %2484  ;;  %vm2444_vm0 = vcmp.gt.f32.partialorder %v2440_v0, 0.0  ;;  %v2448_v22 = vmul.f32 0.2, %v2440_v0  ;;  %v2449_v38 = vmul.f32 0.2, %v2441_v43  ;;  %vm2445_vm3 = vcmp.gt.f32.partialorder %v2441_v43, 0.0 }
 0x749   :  { %vm2489_vm7 = vcmp.ge.s32.totalorder %v2382_v54, %v2485_v20  ;;  %v2498_v2 = vsel %vm2494_vm5, -1e+09, %v5205_v30  ;;  %v4639_v20 = vld [vmem:[#allocation16 + $0x54] ss:$8 sps:$4 sm:$0xff]  }
 0x74a   :  { %vm2491_vm15 = vmor %vm2471_vm10, %vm2489_vm7  ;;  %v2452_v48 = vsel %vm2444_vm0, %v2440_v0, %v2448_v22  ;;  %v2453_v28 = vsel %vm2445_vm3, %v2441_v43, %v2449_v38  ;;  %v4643_v38 = vld [vmem:[#allocation16 + $0x30] ss:$8 sps:$4 sm:$0xff]   ;;  %vm3981_vm3 = vcmask 7168  }
 0x74b   :  { %vm2492_vm2 = vmor %vm2472_vm14, %vm2489_vm7  ;;  %v2495_v7 = vsel %vm2491_vm15, -1e+09, %v5205_v30  ;;  %v2501_v50 = vadd.f32 %v2497_v12, %v2452_v48  ;;  %v2502_v53 = vadd.f32 %v2498_v2, %v2453_v28  ;;  %v4645_v48 = vld [vmem:[#allocation16 + $0x34] ss:$8 sps:$4 sm:$0xff]   ;;  %v4649_v12 = vld [vmem:[#allocation16 + $0x10] ss:$8 sps:$4 sm:$0xff]  }
 0x74c   :  { %v2496_v27 = vsel %vm2492_vm2, -1e+09, %v5205_v30  ;;  %v2499_v34 = vadd.f32 %v2495_v7, %v2450_v47  ;;  %v4637_v7 = vld [vmem:[#allocation16 + $0x50] ss:$8 sps:$4 sm:$0xff]   ;;  %v4642_v47 = vld [vmem:[#allocation16 + $0x44] ss:$8 sps:$4 sm:$0xff]  }
 0x74d   :  { %v2500_v37 = vadd.f32 %v2496_v27, %v2451_v8  ;;  %v2510_v23 = vsel %vm2503_vm1, %v2501_v50, -inf  ;;  %v2513_v42 = vsel %vm2503_vm1, %v2502_v53, -inf  ;;  %v4648_v27 = vld [vmem:[#allocation16 + $0x24] ss:$8 sps:$4 sm:$0xff]   ;;  %v4646_v8 = vld [vmem:[#allocation16 + $0x20] ss:$8 sps:$4 sm:$0xff]  }
 0x74e   :  { %v2504_v35 = vsel %vm2503_vm1, %v2499_v34, -inf  ;;  %v4660_v28 = vld [vmem:[#allocation16 + $0xe4] ss:$8 sps:$4 sm:$0xff]   ;;  %v4658_v2 = vld [vmem:[#allocation16 + $0xe0] ss:$8 sps:$4 sm:$0xff]  }
 0x74f   :  { %v2507_v26 = vsel %vm2503_vm1, %v2500_v37, -inf  ;;  %2505 = vmax.xlane.f32.xlu0 %v2504_v35  ;;  %v4652_v35 = vld [vmem:[#allocation16] ss:$8 sps:$4 sm:$0xff]  }
 0x750   :  { %2508 = vmax.xlane.f32.xlu1 %v2507_v26  ;;  %v4655_v26 = vld [vmem:[#allocation16 + $0xf0] ss:$8 sps:$4 sm:$0xff]  }
 0x753   :  { %2511 = vmax.xlane.f32.xlu0 %v2510_v23  ;;  %v4663_v23 = vld [vmem:[#allocation16 + $0xd4] ss:$8 sps:$4 sm:$0xff]  }
 0x757   :  { %2514 = vmax.xlane.f32.xlu0 %v2513_v42  ;;  %v4666_v42 = vld [vmem:[#allocation16 + $0xc4] ss:$8 sps:$4 sm:$0xff]  }
 0x7d8   :  { %v2506_v6 = vpop.xlane.xlu0 %2505 }
 0x7d9   :  { %v2516_v18 = vsub.f32 %v2499_v34, %v2506_v6  ;;  %v2509_v10 = vpop.xlane.xlu1 %2508  ;;  %v4651_v34 = vld [vmem:[#allocation16 + $0x14] ss:$8 sps:$4 sm:$0xff]   ;;  %v4664_v6 = vld [vmem:[#allocation16 + $0xc0] ss:$8 sps:$4 sm:$0xff]  }
 0x7da   :  { %v2517_v41 = vsub.f32 %v2500_v37, %v2509_v10  ;;  %v4654_v37 = vld [vmem:[#allocation16 + $0x4] ss:$8 sps:$4 sm:$0xff]   ;;  %v4667_v10 = vld [vmem:[#allocation16 + $0xb0] ss:$8 sps:$4 sm:$0xff]  }
 0x7db   :  { %v2520_v9 = vmul.f32 1.442695, %v2516_v18  ;;  %v4669_v18 = vld [vmem:[#allocation16 + $0xb4] ss:$8 sps:$4 sm:$0xff]  }
 0x7dc   :  { %v2522_v60 = vmul.f32 1.442695, %v2517_v41  ;;  %v2512_v54 = vpop.xlane.xlu0 %2511  ;;  %v4672_v41 = vld [vmem:[#allocation16 + $0xa4] ss:$8 sps:$4 sm:$0xff]  }
 0x7dd   :  { %4903 = vpow2.f32 %v2520_v9  ;;  %v2518_v52 = vsub.f32 %v2501_v50, %v2512_v54  ;;  %v4657_v50 = vld [vmem:[#allocation16 + $0xf4] ss:$8 sps:$4 sm:$0xff]   ;;  %v4670_v9 = vld [vmem:[#allocation16 + $0xa0] ss:$8 sps:$4 sm:$0xff]   ;;  %v4673_v54 = vld [vmem:[#allocation16 + $0x90] ss:$8 sps:$4 sm:$0xff]  }
 0x7de   :  { %4905 = vpow2.f32 %v2522_v60  ;;  %v4675_v60 = vld [vmem:[#allocation16 + $0x94] ss:$8 sps:$4 sm:$0xff]  }
 0x7df   :  { %v2524_v61 = vmul.f32 1.442695, %v2518_v52  ;;  %v4678_v52 = vld [vmem:[#allocation16 + $0x84] ss:$8 sps:$4 sm:$0xff]  }
 0x7e0   :  { %v2515_v19 = vpop.xlane.xlu0 %2514 }
 0x7e1   :  { %4907 = vpow2.f32 %v2524_v61  ;;  %v2519_v30 = vsub.f32 %v2502_v53, %v2515_v19  ;;  %v4661_v53 = vld [vmem:[#allocation16 + $0xd0] ss:$8 sps:$4 sm:$0xff]   ;;  %v4676_v61 = vld [vmem:[#allocation16 + $0x80] ss:$8 sps:$4 sm:$0xff]  }
 0x7e2   :  { %v4681_v19 = vld [vmem:[#allocation19 + $0x74] ss:$8 sps:$4 sm:$0xff]  }
 0x7e3   :  { %v2526_v51 = vmul.f32 1.442695, %v2519_v30  ;;  %v4679_v30 = vld [vmem:[#allocation19 + $0x70] ss:$8 sps:$4 sm:$0xff]  }
 0x7e5   :  { %4909 = vpow2.f32 %v2526_v51  ;;  %v6028_v51 = vpack.c.b16 %v5926_v36, %v5926_v36  ;;  %v4732_v36 = vld [vmem:[#allocation16 + $0x164] ss:$8 sps:$4 sm:$0xff]  }
 0x7ea   :  { %v4904_v5 = vpop.eup %4903 }
 0x7eb   :  { %v4906_v45 = vpop.eup %4905  ;;  %v2528_v25 = vsel %vm2503_vm1, %v4904_v5, 0.0 }
 0x7ec   :  { %2529 = vadd.xlane.f32.xlu1 %v2528_v25  ;;  %v2531_v40 = vsel %vm2503_vm1, %v4906_v45, 0.0  ;;  %v4687_v25 = vld [vmem:[#allocation19 + $0x54] ss:$8 sps:$4 sm:$0xff]  }
 0x7ed   :  { %2532 = vadd.xlane.f32.xlu0 %v2531_v40  ;;  %v4727_v40 = vld [vmem:[#allocation16 + $0x170] ss:$8 sps:$4 sm:$0xff]  }
 0x7ee   :  { %v4908_v55 = vpop.eup %4907 }
 0x7ef   :  { %v2534_v1 = vsel %vm2503_vm1, %v4908_v55, 0.0 }
 0x7f0   :  { %2535 = vadd.xlane.f32.xlu1 %v2534_v1  ;;  %v4685_v1 = vld [vmem:[#allocation19 + $0x50] ss:$8 sps:$4 sm:$0xff]  }
 0x7f2   :  { %v4910_v4 = vpop.eup %4909 }
 0x7f3   :  { %v2537_v57 = vsel %vm2503_vm1, %v4910_v4, 0.0 }
 0x7f4   :  { %2538 = vadd.xlane.f32.xlu0 %v2537_v57  ;;  %v4730_v57 = vld [vmem:[#allocation16 + $0x160] ss:$8 sps:$4 sm:$0xff]  }
 0x875   :  { %v2530_v59 = vpop.xlane.xlu1 %2529 }
 0x876   :  { %v2533_v46 = vpop.xlane.xlu0 %2532  ;;  %4911 = vrcp.f32 %v2530_v59  ;;  %v4693_v59 = vld [vmem:[#allocation19 + $0x34] ss:$8 sps:$4 sm:$0xff]  }
 0x877   :  { %4913 = vrcp.f32 %v2533_v46  ;;  %v4735_v46 = vld [vmem:[#allocation16 + $0x154] ss:$8 sps:$4 sm:$0xff]  }
 0x879   :  { %v2536_v33 = vpop.xlane.xlu1 %2535 }
 0x87a   :  { %4915 = vrcp.f32 %v2536_v33  ;;  %v4733_v33 = vld [vmem:[#allocation16 + $0x150] ss:$8 sps:$4 sm:$0xff]  }
 0x87d   :  { %v2539_v14 = vpop.xlane.xlu0 %2538 }
 0x87e   :  { %4917 = vrcp.f32 %v2539_v14  ;;  %v4691_v14 = vld [vmem:[#allocation19 + $0x30] ss:$8 sps:$4 sm:$0xff]  }
 0x883   :  { %v4912_v49 = vpop.eup %4911 }
 0x884   :  { %v4914_v3 = vpop.eup %4913  ;;  %v2544_v21 = vmul.f32 %v4912_v49, %v4904_v5  ;;  %v4684_v5 = vld [vmem:[#allocation19 + $0x64] ss:$8 sps:$4 sm:$0xff]  }
 0x885   :  { %v2545_v16 = vmul.f32 %v4914_v3, %v4906_v45  ;;  %v4682_v45 = vld [vmem:[#allocation19 + $0x60] ss:$8 sps:$4 sm:$0xff]   ;;  %v4696_v49 = vld [vmem:[#allocation19 + $0x24] ss:$8 sps:$4 sm:$0xff]  }
 0x886   :  { %v4738_v3 = vld [vmem:[#allocation16 + $0x144] ss:$8 sps:$4 sm:$0xff]  }
 0x887   :  { %v2548_v62 = vpack.c.bf16 %v2545_v16, %v2544_v21  ;;  %v4916_v0 = vpop.eup %4915  ;;  %v4736_v21 = vld [vmem:[#allocation16 + $0x140] ss:$8 sps:$4 sm:$0xff]   ;;  %v4694_v16 = vld [vmem:[#allocation19 + $0x20] ss:$8 sps:$4 sm:$0xff]  }
 0x888   :  { %v2546_v13 = vmul.f32 %v4916_v0, %v4908_v55  ;;  %v4729_v55 = vld [vmem:[#allocation16 + $0x174] ss:$8 sps:$4 sm:$0xff]   ;;  %v4702_v0 = vld [vmem:[#allocation19 + $0x4] ss:$8 sps:$4 sm:$0xff]  }
 0x889   :  { %4224 = vmatmul.mubr.msk.bf16.vlgmr.msra.gmra.mxu0 %vm2503_vm1, %v2548_v62  ;;  %3372 = vmatprep.subr.bf16.mxu1 %v4729_v55  ;;  %v4741_v62 = vld [vmem:[#allocation16 + $0x134] ss:$8 sps:$4 sm:$0xff]   ;;  %v4777_v55 = vld [vmem:[#allocation19 + $0x174] ss:$8 sps:$4 sm:$0xff]  }
 0x88a   :  { %3332 = vmatpush1.bf16.msra.mxu0 %v4631_v32  ;;  %3363 = vmatprep.mubr.bf16.mxu0 %v6021_v17  ;;  %v4699_v32 = vld [vmem:[#allocation19 + $0x14] ss:$8 sps:$4 sm:$0xff]  }
 0x88b   :  { %v4918_v43 = vpop.eup %4917  ;;  %3333 = vmatprep.subr.bf16.mxu0 %v4636_v63  ;;  %v4739_v63 = vld [vmem:[#allocation16 + $0x130] ss:$8 sps:$4 sm:$0xff]  }
 0x88c   :  { %v2547_v22 = vmul.f32 %v4918_v43, %v4910_v4  ;;  %v4690_v4 = vld [vmem:[#allocation19 + $0x44] ss:$8 sps:$4 sm:$0xff]  }
 0x88d   :  { %v4742_v43 = vld [vmem:[#allocation16 + $0x120] ss:$8 sps:$4 sm:$0xff]  }
 0x88e   :  { %v2549_v11 = vpack.c.bf16 %v2547_v22, %v2546_v13  ;;  %3334 = vmatpush1.bf16.msra.mxu0 %v4634_v58  ;;  %v4744_v58 = vld [vmem:[#allocation16 + $0x124] ss:$8 sps:$4 sm:$0xff]   ;;  %v4705_v13 = vld [vmem:[#allocation19 + $0xf4] ss:$8 sps:$4 sm:$0xff]   ;;  %v4747_v22 = vld [vmem:[#allocation16 + $0x114] ss:$8 sps:$4 sm:$0xff]  }
 0x88f   :  { %3335 = vmatprep.subr.bf16.mxu0 %v4639_v20  ;;  %v4700_v20 = vld [vmem:[#allocation19] ss:$8 sps:$4 sm:$0xff]  }
 0x890   :  { %4225 = vmatmul.mubr.msk.bf16.vlgmr.msra.gmra.mxu1 %vm2503_vm1, %v2549_v11  ;;  %v4745_v11 = vld [vmem:[#allocation16 + $0x110] ss:$8 sps:$4 sm:$0xff]  }
 0x891   :  { %3373 = vmatpush1.bf16.msra.mxu1 %v4727_v40  ;;  %v4772_v40 = vld [vmem:[#allocation16 + $0x180] ss:$8 sps:$4 sm:$0xff]  }
 0x892   :  { %3336 = vmatpush1.bf16.msra.mxu0 %v4637_v7  ;;  %3374 = vmatprep.subr.bf16.mxu1 %v4732_v36  ;;  %v4703_v7 = vld [vmem:[#allocation19 + $0xf0] ss:$8 sps:$4 sm:$0xff]  }
 0x893   :  { %3337 = vmatprep.subr.bf16.mxu0 %v4642_v47  ;;  %v4708_v47 = vld [vmem:[#allocation19 + $0xe4] ss:$8 sps:$4 sm:$0xff]  }
 0x895   :  { %3375 = vmatpush1.bf16.msra.mxu1 %v4730_v57  ;;  %v2670_v57 = vsub.s32 3, %v5421_v24 }
 0x896   :  { %3338 = vmatpush1.bf16.msra.mxu0 %v4640_v44  ;;  %3376 = vmatprep.subr.bf16.mxu1 %v4735_v46  ;;  %v4750_v44 = vld [vmem:[#allocation16 + $0x104] ss:$8 sps:$4 sm:$0xff]   ;;  %v4951_v46 = vld [vmem:[%s6098_s18] ss:$2 sm:$0xf] }
 0x897   :  { %3339 = vmatprep.subr.bf16.mxu0 %v4645_v48  ;;  %v4748_v48 = vld [vmem:[#allocation16 + $0x100] ss:$8 sps:$4 sm:$0xff]  }
 0x899   :  { %3377 = vmatpush1.bf16.msra.mxu1 %v4733_v33 }
 0x89a   :  { %3340 = vmatpush1.bf16.msra.mxu0 %v4643_v38  ;;  %3378 = vmatprep.subr.bf16.mxu1 %v4738_v3  ;;  %v4706_v38 = vld [vmem:[#allocation19 + $0xe0] ss:$8 sps:$4 sm:$0xff]  }
 0x89b   :  { %3341 = vmatprep.subr.bf16.mxu0 %v4648_v27  ;;  %v4711_v27 = vld [vmem:[#allocation19 + $0xd4] ss:$8 sps:$4 sm:$0xff]  }
 0x89d   :  { %3379 = vmatpush1.bf16.msra.mxu1 %v4736_v21 }
 0x89e   :  { %3342 = vmatpush1.bf16.msra.mxu0 %v4646_v8  ;;  %3380 = vmatprep.subr.bf16.mxu1 %v4741_v62  ;;  %v4753_v8 = vld [vmem:[#allocation16 + $0x1f4] ss:$8 sps:$4 sm:$0xff]  }
 0x89f   :  { %3343 = vmatprep.subr.bf16.mxu0 %v4651_v34  ;;  %v4751_v34 = vld [vmem:[#allocation16 + $0x1f0] ss:$8 sps:$4 sm:$0xff]  }
 0x8a1   :  { %3381 = vmatpush1.bf16.msra.mxu1 %v4739_v63 }
 0x8a2   :  { %3344 = vmatpush1.bf16.msra.mxu0 %v4649_v12  ;;  %3382 = vmatprep.subr.bf16.mxu1 %v4744_v58  ;;  %v4709_v12 = vld [vmem:[#allocation19 + $0xd0] ss:$8 sps:$4 sm:$0xff]  }
 0x8a3   :  { %3345 = vmatprep.subr.bf16.mxu0 %v4654_v37  ;;  %v4714_v37 = vld [vmem:[#allocation19 + $0xc4] ss:$8 sps:$4 sm:$0xff]  }
 0x8a5   :  { %3383 = vmatpush1.bf16.msra.mxu1 %v4742_v43 }
 0x8a6   :  { %3346 = vmatpush1.bf16.msra.mxu0 %v4652_v35  ;;  %3384 = vmatprep.subr.bf16.mxu1 %v4747_v22  ;;  %v4756_v35 = vld [vmem:[#allocation16 + $0x1e4] ss:$8 sps:$4 sm:$0xff]  }
 0x8a7   :  { %3347 = vmatprep.subr.bf16.mxu0 %v4657_v50  ;;  %v4754_v50 = vld [vmem:[#allocation16 + $0x1e0] ss:$8 sps:$4 sm:$0xff]  }
 0x8a9   :  { %3385 = vmatpush1.bf16.msra.mxu1 %v4745_v11 }
 0x8aa   :  { %3348 = vmatpush2.bf16.msra.mxu0 %v4655_v26  ;;  %3386 = vmatprep.subr.bf16.mxu1 %v4750_v44  ;;  %v4712_v26 = vld [vmem:[#allocation19 + $0xc0] ss:$8 sps:$4 sm:$0xff]  }
 0x8ab   :  { %3349 = vmatprep.subr.bf16.mxu0 %v4660_v28  ;;  %v4717_v28 = vld [vmem:[#allocation19 + $0xb4] ss:$8 sps:$4 sm:$0xff]  }
 0x8ad   :  { %3387 = vmatpush1.bf16.msra.mxu1 %v4748_v48 }
 0x8ae   :  { %3350 = vmatpush2.bf16.msra.mxu0 %v4658_v2  ;;  %3388 = vmatprep.subr.bf16.mxu1 %v4753_v8  ;;  %v4759_v2 = vld [vmem:[#allocation16 + $0x1d4] ss:$8 sps:$4 sm:$0xff]  }
 0x8af   :  { %3351 = vmatprep.subr.bf16.mxu0 %v4663_v23  ;;  %v4757_v23 = vld [vmem:[#allocation16 + $0x1d0] ss:$8 sps:$4 sm:$0xff]  }
 0x8b1   :  { %3389 = vmatpush2.bf16.msra.mxu1 %v4751_v34 }
 0x8b2   :  { %3352 = vmatpush2.bf16.msra.mxu0 %v4661_v53  ;;  %3390 = vmatprep.subr.bf16.mxu1 %v4756_v35  ;;  %v4715_v53 = vld [vmem:[#allocation19 + $0xb0] ss:$8 sps:$4 sm:$0xff]  }
 0x8b3   :  { %3353 = vmatprep.subr.bf16.mxu0 %v4666_v42  ;;  %v4720_v42 = vld [vmem:[#allocation19 + $0xa4] ss:$8 sps:$4 sm:$0xff]  }
 0x8b5   :  { %3391 = vmatpush2.bf16.msra.mxu1 %v4754_v50 }
 0x8b6   :  { %3354 = vmatpush2.bf16.msra.mxu0 %v4664_v6  ;;  %3392 = vmatprep.subr.bf16.mxu1 %v4759_v2  ;;  %v4762_v6 = vld [vmem:[#allocation16 + $0x1c4] ss:$8 sps:$4 sm:$0xff]  }
 0x8b7   :  { %3355 = vmatprep.subr.bf16.mxu0 %v4669_v18  ;;  %v4760_v18 = vld [vmem:[#allocation16 + $0x1c0] ss:$8 sps:$4 sm:$0xff]  }
 0x8b9   :  { %3393 = vmatpush2.bf16.msra.mxu1 %v4757_v23 }
 0x8ba   :  { %3356 = vmatpush2.bf16.msra.mxu0 %v4667_v10  ;;  %v4718_v10 = vld [vmem:[#allocation19 + $0xa0] ss:$8 sps:$4 sm:$0xff]   ;;  %3394 = vmatprep.subr.bf16.mxu1 %v4762_v6 }
 0x8bb   :  { %3357 = vmatprep.subr.bf16.mxu0 %v4672_v41  ;;  %v4765_v41 = vld [vmem:[#allocation16 + $0x1b4] ss:$8 sps:$4 sm:$0xff]  }
 0x8bd   :  { %3395 = vmatpush2.bf16.msra.mxu1 %v4760_v18 }
 0x8be   :  { %3358 = vmatpush2.bf16.msra.mxu0 %v4670_v9  ;;  %v4723_v9 = vld [vmem:[#allocation19 + $0x94] ss:$8 sps:$4 sm:$0xff]   ;;  %3396 = vmatprep.subr.bf16.mxu1 %v4765_v41 }
 0x8bf   :  { %3359 = vmatprep.subr.bf16.mxu0 %v4675_v60  ;;  %v4763_v60 = vld [vmem:[#allocation16 + $0x1b0] ss:$8 sps:$4 sm:$0xff]  }
 0x8c1   :  { %3397 = vmatpush2.bf16.msra.mxu1 %v4763_v60 }
 0x8c2   :  { %3360 = vmatpush2.bf16.msra.mxu0 %v4673_v54  ;;  %v4768_v54 = vld [vmem:[#allocation16 + $0x1a4] ss:$8 sps:$4 sm:$0xff]  }
 0x8c3   :  { %3361 = vmatprep.subr.bf16.mxu0 %v4678_v52  ;;  %v4721_v52 = vld [vmem:[#allocation19 + $0x90] ss:$8 sps:$4 sm:$0xff]   ;;  %3398 = vmatprep.subr.bf16.mxu1 %v4768_v54 }
 0x8c6   :  { %3362 = vmatpush2.bf16.msra.mxu0 %v4676_v61  ;;  %v4726_v61 = vld [vmem:[#allocation19 + $0x84] ss:$8 sps:$4 sm:$0xff]  }
 0x8c7   :  { %3849 = vmatprep.subr.bf16.mxu0 %v4681_v19  ;;  %v4766_v19 = vld [vmem:[#allocation16 + $0x1a0] ss:$8 sps:$4 sm:$0xff]  }
 0x8c8   :  { %3399 = vmatpush2.bf16.msra.mxu1 %v4766_v19 }
 0x8c9   :  { %3364 = vmatmul.mubr.bf16.vlgmr.msra.gmra.mxu0 %v6028_v51 }
 0x8ca   :  { %3850 = vmatpush1.bf16.msra.mxu0 %v4679_v30  ;;  %3881 = vmatprep.mubr.bf16.mxu0 %v6021_v17  ;;  %v4697_v17 = vld [vmem:[#allocation19 + $0x10] ss:$8 sps:$4 sm:$0xff]  }
 0x8cb   :  { %3851 = vmatprep.subr.bf16.mxu0 %v4684_v5  ;;  %v4771_v30 = vld [vmem:[#allocation16 + $0x194] ss:$8 sps:$4 sm:$0xff]   ;;  %v4724_v5 = vld [vmem:[#allocation19 + $0x80] ss:$8 sps:$4 sm:$0xff]  }
 0x8cc   :  { %3400 = vmatprep.subr.bf16.mxu1 %v4771_v30 }
 0x8ce   :  { %3852 = vmatpush1.bf16.msra.mxu0 %v4682_v45  ;;  %v4769_v45 = vld [vmem:[#allocation16 + $0x190] ss:$8 sps:$4 sm:$0xff]  }
 0x8cf   :  { %3853 = vmatprep.subr.bf16.mxu0 %v4687_v25  ;;  %3401 = vmatpush2.bf16.msra.mxu1 %v4769_v45  ;;  %v4774_v25 = vld [vmem:[#allocation16 + $0x184] ss:$8 sps:$4 sm:$0xff]  }
 0x8d0   :  { %3402 = vmatprep.subr.bf16.mxu1 %v4774_v25 }
 0x8d2   :  { %3854 = vmatpush1.bf16.msra.mxu0 %v4685_v1 }
 0x8d3   :  { %3855 = vmatprep.subr.bf16.mxu0 %v4690_v4  ;;  %3403 = vmatpush2.bf16.msra.mxu1 %v4772_v40  ;;  %v2666_v4 = vsub.s32 2, %v5421_v24 }
 0x8d4   :  { %3890 = vmatprep.subr.bf16.mxu1 %v4777_v55 }
 0x8d5   :  { %v2667_v33 = vrot.slane %v4951_v46, %v2666_v4 }
 0x8d6   :  { %3856 = vmatpush1.bf16.msra.mxu0 %v4688_v56 }
 0x8d7   :  { %3857 = vmatprep.subr.bf16.mxu0 %v4693_v59 }
 0x8da   :  { %3858 = vmatpush1.bf16.msra.mxu0 %v4691_v14 }
 0x8db   :  { %3859 = vmatprep.subr.bf16.mxu0 %v4696_v49 }
 0x8de   :  { %3860 = vmatpush1.bf16.msra.mxu0 %v4694_v16 }
 0x8df   :  { %3861 = vmatprep.subr.bf16.mxu0 %v4699_v32  ;;  %v2671_v32 = vrot.slane %v4951_v46, %v2670_v57 }
 0x8e2   :  { %3862 = vmatpush1.bf16.msra.mxu0 %v4697_v17 }
 0x8e3   :  { %3863 = vmatprep.subr.bf16.mxu0 %v4702_v0 }
 0x8e6   :  { %3864 = vmatpush1.bf16.msra.mxu0 %v4700_v20 }
 0x8e7   :  { %3865 = vmatprep.subr.bf16.mxu0 %v4705_v13 }
 0x8ea   :  { %3866 = vmatpush2.bf16.msra.mxu0 %v4703_v7 }
 0x8eb   :  { %3867 = vmatprep.subr.bf16.mxu0 %v4708_v47 }
 0x8ee   :  { %3868 = vmatpush2.bf16.msra.mxu0 %v4706_v38 }
 0x8ef   :  { %3869 = vmatprep.subr.bf16.mxu0 %v4711_v27 }
 0x8f2   :  { %3870 = vmatpush2.bf16.msra.mxu0 %v4709_v12 }
 0x8f3   :  { %3871 = vmatprep.subr.bf16.mxu0 %v4714_v37 }
 0x8f6   :  { %3872 = vmatpush2.bf16.msra.mxu0 %v4712_v26 }
 0x8f7   :  { %3873 = vmatprep.subr.bf16.mxu0 %v4717_v28 }
 0x8fa   :  { %3874 = vmatpush2.bf16.msra.mxu0 %v4715_v53 }
 0x8fb   :  { %3875 = vmatprep.subr.bf16.mxu0 %v4720_v42 }
 0x8fe   :  { %3876 = vmatpush2.bf16.msra.mxu0 %v4718_v10 }
 0x8ff   :  { %3877 = vmatprep.subr.bf16.mxu0 %v4723_v9 }
 0x902   :  { %3878 = vmatpush2.bf16.msra.mxu0 %v4721_v52 }
 0x903   :  { %3879 = vmatprep.subr.bf16.mxu0 %v4726_v61 }
 0x906   :  { %3880 = vmatpush2.bf16.msra.mxu0 %v4724_v5 }
 0x909   :  { %3882 = vmatmul.mubr.bf16.vlgmr.msra.gmra.mxu0 %v6028_v51  ;;  %v4952_v51 = vld [vmem:[%s6098_s18 + $0x1] ss:$2 sm:$0xf]  ;;  %s5206_s18 = smov 1  }
 0x90a   :  { %v2706_v14 = vrot.slane %v4952_v51, %v2666_v4  ;;  %v2710_v20 = vrot.slane %v4952_v51, %v2670_v57 }
 0x949   :  { %v2587_v1 = vpop.f32.mrf.mxu0 }
 0x94b   :  { %v2589_v36 = vpop.f32.mrf.mxu0 }
 0x94d   :  { %v2591_v56 = vpop.f32.mrf.mxu0 }
 0x94e   :  { %v2642_v59 = vpack.c.bf16 %v2591_v56, %v2587_v1 }
 0x94f   :  { %v2593_v49 = vpop.f32.mrf.mxu0 }
 0x950   :  { %v2647_v3 = vunpack.c.l.bf16 %v2642_v59  ;;  %v2649_v21 = vunpack.c.h.bf16 %v2642_v59  ;;  %v2643_v16 = vpack.c.bf16 %v2593_v49, %v2589_v36  ;;  %v2633_v62 = vpop.f32.mrf.mxu1 }
 0x952   :  { %v2678_v63 = vmul.f32 %v2667_v33, %v2647_v3  ;;  %v2682_v17 = vmul.f32 %v2667_v33, %v2649_v21  ;;  %v2648_v0 = vunpack.c.l.bf16 %v2643_v16  ;;  %v2650_v58 = vunpack.c.h.bf16 %v2643_v16  ;;  %v2635_v43 = vpop.f32.mrf.mxu1 }
 0x954   :  { %v2717_v13 = vadd.f32 %v2706_v14, %v2678_v63  ;;  %v2721_v22 = vadd.f32 %v2706_v14, %v2682_v17  ;;  %v2679_v11 = vmul.f32 %v2671_v32, %v2648_v0  ;;  %v2683_v7 = vmul.f32 %v2671_v32, %v2650_v58  ;;  %v2637_v47 = vpop.f32.mrf.mxu1 }
 0x955   :  { %v2644_v44 = vpack.c.bf16 %v2637_v47, %v2633_v62 }
 0x956   :  { %v2749_v48 = vmin.f32 %v2717_v13, 0.0  ;;  %v2753_v38 = vmin.f32 %v2721_v22, 0.0  ;;  %v2639_v27 = vpop.f32.mrf.mxu1  ;;  %v2718_v8 = vadd.f32 %v2710_v20, %v2679_v11  ;;  %v2722_v34 = vadd.f32 %v2710_v20, %v2683_v7 }
 0x957   :  { %v2651_v12 = vunpack.c.l.bf16 %v2644_v44  ;;  %v2653_v37 = vunpack.c.h.bf16 %v2644_v44  ;;  %v2645_v26 = vpack.c.bf16 %v2639_v27, %v2635_v43  ;;  %vm2733_vm12 = vcmp.gt.f32.partialorder %v2717_v13, 0.0 }
 0x958   :  { %v2767_v35 = vmul.f32 1.442695, %v2749_v48  ;;  %v2775_v50 = vmul.f32 1.442695, %v2753_v38  ;;  %v2750_v28 = vmin.f32 %v2718_v8, 0.0  ;;  %v2754_v2 = vmin.f32 %v2722_v34, 0.0 }
 0x959   :  { %v2686_v23 = vmul.f32 %v2667_v33, %v2651_v12  ;;  %v2690_v53 = vmul.f32 %v2667_v33, %v2653_v37  ;;  %v2652_v42 = vunpack.c.l.bf16 %v2645_v26  ;;  %v2654_v10 = vunpack.c.h.bf16 %v2645_v26 }
 0x95a   :  { %4919 = vpow2.f32 %v2767_v35  ;;  %v2769_v6 = vmul.f32 1.442695, %v2750_v28  ;;  %v2777_v18 = vmul.f32 1.442695, %v2754_v2  ;;  %vm2737_vm9 = vcmp.gt.f32.partialorder %v2721_v22, 0.0 }
 0x95b   :  { %4921 = vpow2.f32 %v2775_v50  ;;  %v2725_v41 = vadd.f32 %v2706_v14, %v2686_v23  ;;  %v2729_v9 = vadd.f32 %v2706_v14, %v2690_v53  ;;  %v2687_v60 = vmul.f32 %v2671_v32, %v2652_v42 }
 0x95c   :  { %4923 = vpow2.f32 %v2769_v6  ;;  %v2691_v54 = vmul.f32 %v2671_v32, %v2654_v10  ;;  %vm2734_vm0 = vcmp.gt.f32.partialorder %v2718_v8, 0.0  ;;  %vm2738_vm10 = vcmp.gt.f32.partialorder %v2722_v34, 0.0 }
 0x95d   :  { %4925 = vpow2.f32 %v2777_v18  ;;  %v2757_v52 = vmin.f32 %v2725_v41, 0.0  ;;  %v2761_v61 = vmin.f32 %v2729_v9, 0.0  ;;  %v2726_v19 = vadd.f32 %v2710_v20, %v2687_v60 }
 0x95e   :  { %v2730_v30 = vadd.f32 %v2710_v20, %v2691_v54  ;;  %vm2741_vm6 = vcmp.gt.f32.partialorder %v2725_v41, 0.0  ;;  %vm2745_vm7 = vcmp.gt.f32.partialorder %v2729_v9, 0.0 }
 0x95f   :  { %v2783_v5 = vmul.f32 1.442695, %v2757_v52  ;;  %v2791_v45 = vmul.f32 1.442695, %v2761_v61  ;;  %v2758_v25 = vmin.f32 %v2726_v19, 0.0  ;;  %vm2742_vm13 = vcmp.gt.f32.partialorder %v2726_v19, 0.0 }
 0x960   :  { %v2762_v40 = vmin.f32 %v2730_v30, 0.0  ;;  %vm2746_vm14 = vcmp.gt.f32.partialorder %v2730_v30, 0.0 }
 0x961   :  { %4927 = vpow2.f32 %v2783_v5  ;;  %v2785_v55 = vmul.f32 1.442695, %v2758_v25 }
 0x962   :  { %4929 = vpow2.f32 %v2791_v45  ;;  %v2793_v1 = vmul.f32 1.442695, %v2762_v40 }
 0x963   :  { %4931 = vpow2.f32 %v2785_v55 }
 0x964   :  { %4933 = vpow2.f32 %v2793_v1 }
 0x967   :  { %v4920_v4 = vpop.eup %4919 }
 0x968   :  { %v4922_v36 = vpop.eup %4921  ;;  %v4229_v57 = vadd.f32 -1.0, %v4920_v4 }
 0x969   :  { %v4233_v56 = vadd.f32 -1.0, %v4922_v36  ;;  %v4924_v59 = vpop.eup %4923 }
 0x96a   :  { %v2813_v46 = vsel %vm2733_vm12, %v2717_v13, %v4229_v57  ;;  %v4926_v33 = vpop.eup %4925  ;;  %v4230_v49 = vadd.f32 -1.0, %v4924_v59 }
 0x96b   :  { %v2817_v51 = vsel %vm2737_vm9, %v2721_v22, %v4233_v56  ;;  %v2829_v14 = vmul.f32 %v2813_v46, %v5526_v39  ;;  %v4234_v21 = vadd.f32 -1.0, %v4926_v33 }
 0x96c   :  { %v2833_v3 = vmul.f32 %v2817_v51, %v5526_v39  ;;  %v2814_v16 = vsel %vm2734_vm0, %v2718_v8, %v4230_v49 }
 0x96d   :  { %v2818_v62 = vsel %vm2738_vm10, %v2722_v34, %v4234_v21  ;;  %v2830_v63 = vmul.f32 %v2814_v16, %v5526_v39  ;;  %v4775_v16 = vld [vmem:[#allocation19 + $0x170] ss:$8 sps:$4 sm:$0xff]  }
 0x96e   :  { %v2857_v32 = vmax.f32 %v2829_v14, %v2833_v3  ;;  %v4928_v17 = vpop.eup %4927  ;;  %v2834_v0 = vmul.f32 %v2818_v62, %v5526_v39 }
 0x96f   :  { %v4930_v58 = vpop.eup %4929  ;;  %v4237_v20 = vadd.f32 -1.0, %v4928_v17 }
 0x970   :  { %v2858_v43 = vrot.slane %v2857_v32, 4  ;;  %v2864_v13 = vmax.f32 %v2830_v63, %v2834_v0  ;;  %v4241_v22 = vadd.f32 -1.0, %v4930_v58  ;;  %v4932_v11 = vpop.eup %4931  ;;  %v4780_v63 = vld [vmem:[#allocation19 + $0x164] ss:$8 sps:$4 sm:$0xff]   ;;  %v4778_v0 = vld [vmem:[#allocation19 + $0x160] ss:$8 sps:$4 sm:$0xff]  }
 0x971   :  { %v2821_v47 = vsel %vm2741_vm6, %v2725_v41, %v4237_v20  ;;  %v4934_v44 = vpop.eup %4933  ;;  %v4238_v27 = vadd.f32 -1.0, %v4932_v11  ;;  %v4783_v58 = vld [vmem:[#allocation19 + $0x154] ss:$8 sps:$4 sm:$0xff]   ;;  %v4786_v20 = vld [vmem:[#allocation19 + $0x144] ss:$8 sps:$4 sm:$0xff]  }
 0x972   :  { %v2859_v7 = vmax.f32 %v2857_v32, %v2858_v43  ;;  %v2825_v48 = vsel %vm2745_vm7, %v2729_v9, %v4241_v22  ;;  %v2837_v38 = vmul.f32 %v2821_v47, %v5522_v31  ;;  %v2865_v8 = vrot.slane %v2864_v13, 4  ;;  %v4781_v43 = vld [vmem:[#allocation19 + $0x150] ss:$8 sps:$4 sm:$0xff]   ;;  %v4789_v22 = vld [vmem:[#allocation19 + $0x134] ss:$8 sps:$4 sm:$0xff]  }
 0x973   :  { %v2841_v34 = vmul.f32 %v2825_v48, %v5522_v31  ;;  %v4242_v39 = vadd.f32 -1.0, %v4934_v44  ;;  %v2822_v37 = vsel %vm2742_vm13, %v2726_v19, %v4238_v27  ;;  %v4787_v11 = vld [vmem:[#allocation19 + $0x130] ss:$8 sps:$4 sm:$0xff]   ;;  %v4790_v47 = vld [vmem:[#allocation19 + $0x120] ss:$8 sps:$4 sm:$0xff]  }
 0x974   :  { %v2860_v12 = vrot.slane %v2859_v7, 2  ;;  %v2866_v35 = vmax.f32 %v2864_v13, %v2865_v8  ;;  %v2838_v28 = vmul.f32 %v2822_v37, %v5522_v31  ;;  %v4784_v13 = vld [vmem:[#allocation19 + $0x140] ss:$8 sps:$4 sm:$0xff]   ;;  %v4795_v44 = vld [vmem:[#allocation19 + $0x114] ss:$8 sps:$4 sm:$0xff]  }
 0x975   :  { %v2885_v50 = vmax.f32 %v2837_v38, %v2841_v34  ;;  %v2826_v26 = vsel %vm2746_vm14, %v2730_v30, %v4242_v39  ;;  %v4793_v48 = vld [vmem:[#allocation19 + $0x110] ss:$8 sps:$4 sm:$0xff]   ;;  %v4798_v38 = vld [vmem:[#allocation19 + $0x104] ss:$8 sps:$4 sm:$0xff]   ;;  %v4796_v27 = vld [vmem:[#allocation19 + $0x100] ss:$8 sps:$4 sm:$0xff]  }
 0x976   :  { %v2842_v2 = vmul.f32 %v2826_v26, %v5522_v31  ;;  %v2867_v23 = vrot.slane %v2866_v35, 2  ;;  %v2861_v42 = vmax.f32 %v2859_v7, %v2860_v12  ;;  %v4792_v7 = vld [vmem:[#allocation19 + $0x124] ss:$8 sps:$4 sm:$0xff]   ;;  %v4801_v8 = vld [vmem:[#allocation19 + $0x1f4] ss:$8 sps:$4 sm:$0xff]  }
 0x977   :  { %v2886_v53 = vrot.slane %v2885_v50, 4  ;;  %v4799_v34 = vld [vmem:[#allocation19 + $0x1f0] ss:$8 sps:$4 sm:$0xff]   ;;  %v4804_v39 = vld [vmem:[#allocation19 + $0x1e4] ss:$8 sps:$4 sm:$0xff]  }
 0x978   :  { %v2892_v6 = vmax.f32 %v2838_v28, %v2842_v2  ;;  %v2868_v18 = vmax.f32 %v2866_v35, %v2867_v23  ;;  %v2862_v9 = vrot.slane %v2861_v42, 1  ;;  %v4802_v12 = vld [vmem:[#allocation19 + $0x1e0] ss:$8 sps:$4 sm:$0xff]   ;;  %v4807_v37 = vld [vmem:[#allocation19 + $0x1d4] ss:$8 sps:$4 sm:$0xff]  }
 0x979   :  { %v2887_v10 = vmax.f32 %v2885_v50, %v2886_v53  ;;  %v4805_v35 = vld [vmem:[#allocation19 + $0x1d0] ss:$8 sps:$4 sm:$0xff]   ;;  %v4810_v50 = vld [vmem:[#allocation19 + $0x1c4] ss:$8 sps:$4 sm:$0xff]   ;;  %v4808_v26 = vld [vmem:[#allocation19 + $0x1c0] ss:$8 sps:$4 sm:$0xff]  }
 0x97a   :  { %v2893_v41 = vrot.slane %v2892_v6, 4  ;;  %v2869_v54 = vrot.slane %v2868_v18, 1  ;;  %v2863_v5 = vmax.f32 %v2861_v42, %v2862_v9  ;;  %v4813_v28 = vld [vmem:[#allocation19 + $0x1b4] ss:$8 sps:$4 sm:$0xff]   ;;  %v4811_v2 = vld [vmem:[#allocation19 + $0x1b0] ss:$8 sps:$4 sm:$0xff]  }
 0x97b   :  { %v2888_v60 = vrot.slane %v2887_v10, 2  ;;  %v4816_v23 = vld [vmem:[#allocation19 + $0x1a4] ss:$8 sps:$4 sm:$0xff]   ;;  %v4814_v53 = vld [vmem:[#allocation19 + $0x1a0] ss:$8 sps:$4 sm:$0xff]  }
 0x97c   :  { %v2894_v52 = vmax.f32 %v2892_v6, %v2893_v41  ;;  %v2870_v30 = vmax.f32 %v2868_v18, %v2869_v54  ;;  %v2901_v31 = vpack.c.bf16 %v2863_v5, %v2863_v5  ;;  %v4819_v42 = vld [vmem:[#allocation19 + $0x194] ss:$8 sps:$4 sm:$0xff]   ;;  %v4817_v6 = vld [vmem:[#allocation19 + $0x190] ss:$8 sps:$4 sm:$0xff]   ;;  %v4822_v18 = vld [vmem:[#allocation19 + $0x184] ss:$8 sps:$4 sm:$0xff]  }
 0x97d   :  { %v2889_v61 = vmax.f32 %v2887_v10, %v2888_v60  ;;  %v4820_v10 = vld [vmem:[#allocation19 + $0x180] ss:$8 sps:$4 sm:$0xff]  }
 0x97e   :  { %v2895_v19 = vrot.slane %v2894_v52, 2  ;;  %v2902_v36 = vpack.c.bf16 %v2870_v30, %v2870_v30  ;;  %v2993_v59 = vunpack.c.l.b16 %v2901_v31 }
 0x97f   :  { %v2890_v45 = vrot.slane %v2889_v61, 1 }
 0x980   :  { %v2896_v25 = vmax.f32 %v2894_v52, %v2895_v19  ;;  %v2994_v33 = vunpack.c.l.b16 %v2902_v36  ;;  %v2971_v52 = vld [vmem:[#allocation18] ss:$2 sm:$0x3] }
 0x981   :  { %v2891_v40 = vmax.f32 %v2889_v61, %v2890_v45  ;;  %v2976_v61 = vrot.slane %v2971_v52, %v5436_v29  ;;  %v2980_v19 = vrot.slane %v2971_v52, %v5704_v15 }
 0x982   :  { %v2897_v55 = vrot.slane %v2896_v25, 1 }
 0x983   :  { %v2905_v1 = vpack.c.bf16 %v2891_v40, %v2891_v40 }
 0x984   :  { %v2898_v4 = vmax.f32 %v2896_v25, %v2897_v55 }
 0x985   :  { %v2997_v57 = vunpack.c.l.b16 %v2905_v1 }
 0x986   :  { %v2906_v56 = vpack.c.bf16 %v2898_v4, %v2898_v4 }
 0x987   :  { %v3001_v14 = vsel %vm2403_vm8, %v2997_v57, %v2993_v59  ;;  %v3426_v59 = vld [vmem:[#allocation18 + $0x1] ss:$2 sm:$0x3] }
 0x988   :  { %v2998_v51 = vunpack.c.l.b16 %v2906_v56  ;;  %v6055_v62 = vpack.c.b16 %v3001_v14, %v3001_v14 }
 0x989   :  { %v6049_v46 = vpop.f32.mrf.mxu0 }
 0x98a   :  { %v3002_v3 = vsel %vm2403_vm8, %v2998_v51, %v2994_v33  ;;  %v3366_v5 = vadd.f32 %v6049_v46, %v2976_v61  ;;  %v3431_v51 = vrot.slane %v3426_v59, %v5436_v29 }
 0x98b   :  { %v6052_v49 = vpop.f32.mrf.mxu0  ;;  %v3006_v21 = vpack.c.b16 %v3002_v3, %v3002_v3 }
 0x98c   :  { %v3368_v30 = vadd.f32 %v6052_v49, %v2980_v19  ;;  %v3435_v49 = vrot.slane %v3426_v59, %v5704_v15  ;;  %v5207_v19 = vmov 1966171168  }
 0x98d   :  { %v3369_v32 = vpop.f32.mrf.mxu0  ;;  %3404 = vmatprep.mubr.bf16.mxu1 %v3006_v21 }
 0x98e   :  { %3405 = vmatmul.mubr.bf16.vlgmr.msra.gmra.mxu1 %v6055_v62 }
 0x98f   :  { %v3370_v17 = vpop.f32.mrf.mxu0  ;;  %3891 = vmatpush1.bf16.msra.mxu1 %v4775_v16  ;;  %3922 = vmatprep.mubr.bf16.mxu1 %v3006_v21 }
 0x990   :  { %3892 = vmatprep.subr.bf16.mxu1 %v4780_v63 }
 0x993   :  { %3893 = vmatpush1.bf16.msra.mxu1 %v4778_v0 }
 0x994   :  { %3894 = vmatprep.subr.bf16.mxu1 %v4783_v58  ;;  %v3517_v58 = vld [vmem:[#allocation21] ss:$2 sm:$0x3] }
 0x997   :  { %3895 = vmatpush1.bf16.msra.mxu1 %v4781_v43  ;;  %v3522_v43 = vrot.slane %v3517_v58, %v5436_v29 }
 0x998   :  { %3896 = vmatprep.subr.bf16.mxu1 %v4786_v20  ;;  %v3526_v20 = vrot.slane %v3517_v58, %v5704_v15 }
 0x99b   :  { %3897 = vmatpush1.bf16.msra.mxu1 %v4784_v13 }
 0x99c   :  { %3898 = vmatprep.subr.bf16.mxu1 %v4789_v22 }
 0x99f   :  { %3899 = vmatpush1.bf16.msra.mxu1 %v4787_v11 }
 0x9a0   :  { %3900 = vmatprep.subr.bf16.mxu1 %v4792_v7 }
 0x9a3   :  { %3901 = vmatpush1.bf16.msra.mxu1 %v4790_v47 }
 0x9a4   :  { %3902 = vmatprep.subr.bf16.mxu1 %v4795_v44 }
 0x9a7   :  { %3903 = vmatpush1.bf16.msra.mxu1 %v4793_v48 }
 0x9a8   :  { %3904 = vmatprep.subr.bf16.mxu1 %v4798_v38 }
 0x9ab   :  { %3905 = vmatpush1.bf16.msra.mxu1 %v4796_v27 }
 0x9ac   :  { %3906 = vmatprep.subr.bf16.mxu1 %v4801_v8 }
 0x9af   :  { %3907 = vmatpush2.bf16.msra.mxu1 %v4799_v34 }
 0x9b0   :  { %3908 = vmatprep.subr.bf16.mxu1 %v4804_v39 }
 0x9b3   :  { %3909 = vmatpush2.bf16.msra.mxu1 %v4802_v12  ;;  %v3944_v12 = vld [vmem:[#allocation21 + $0x1] ss:$2 sm:$0x3] }
 0x9b4   :  { %3910 = vmatprep.subr.bf16.mxu1 %v4807_v37 }
 0x9b7   :  { %3911 = vmatpush2.bf16.msra.mxu1 %v4805_v35  ;;  %v3949_v35 = vrot.slane %v3944_v12, %v5436_v29 }
 0x9b8   :  { %3912 = vmatprep.subr.bf16.mxu1 %v4810_v50 }
 0x9bb   :  { %3913 = vmatpush2.bf16.msra.mxu1 %v4808_v26 }
 0x9bc   :  { %3914 = vmatprep.subr.bf16.mxu1 %v4813_v28  ;;  %v3953_v28 = vrot.slane %v3944_v12, %v5704_v15 }
 0x9bf   :  { %3915 = vmatpush2.bf16.msra.mxu1 %v4811_v2 }
 0x9c0   :  { %3916 = vmatprep.subr.bf16.mxu1 %v4816_v23 }
 0x9c3   :  { %3917 = vmatpush2.bf16.msra.mxu1 %v4814_v53 }
 0x9c4   :  { %3918 = vmatprep.subr.bf16.mxu1 %v4819_v42 }
 0x9c7   :  { %3919 = vmatpush2.bf16.msra.mxu1 %v4817_v6 }
 0x9c8   :  { %3920 = vmatprep.subr.bf16.mxu1 %v4822_v18 }
 0x9c9   :  { %v3883_v41 = vpop.f32.mrf.mxu0 }
 0x9ca   :  { %v3884_v13 = vadd.f32 %v3883_v41, %v3522_v43 }
 0x9cb   :  { %v3885_v9 = vpop.f32.mrf.mxu0  ;;  %3921 = vmatpush2.bf16.msra.mxu1 %v4820_v10 }
 0x9cc   :  { %v3886_v11 = vadd.f32 %v3885_v9, %v3526_v20  ;;  %v4376_v9 = vld [vmem:[#allocation4] ss:$0 sm:$0xff] }
 0x9cd   :  { %v3887_v60 = vpop.f32.mrf.mxu0 }
 0x9ce   :  { %3923 = vmatmul.mubr.bf16.vlgmr.msra.gmra.mxu1 %v6055_v62 }
 0x9cf   :  { %v3888_v54 = vpop.f32.mrf.mxu0 }
 0xa4e   :  { %v3406_v45 = vpop.f32.mrf.mxu1 }
 0xa4f   :  { %v3407_v25 = vadd.f32 %v3406_v45, %v3366_v5  ;;  %v3985_v5 = vunpack.c.l.s4 %v5207_v19 }
 0xa50   :  { %v3408_v40 = vpop.f32.mrf.mxu1 }
 0xa51   :  { %v3415_v55 = vmin.f32 %v3407_v25, 0.0  ;;  %v3409_v31 = vadd.f32 %v3408_v40, %v3368_v30  ;;  %vm3413_vm8 = vcmp.gt.f32.partialorder %v3407_v25, 0.0  ;;  %v3986_v45 = vunpack.c.0.s8 %v3985_v5  ;;  %v4309_v30 = vld [vmem:[#allocation3] ss:$0 sm:$0xff] }
 0xa52   :  { %v3410_v1 = vpop.f32.mrf.mxu1 }
 0xa53   :  { %v3417_v4 = vmul.f32 1.442695, %v3415_v55  ;;  %v3416_v36 = vmin.f32 %v3409_v31, 0.0  ;;  %vm3414_vm15 = vcmp.gt.f32.partialorder %v3409_v31, 0.0  ;;  %v3989_v40 = vsub.s32 %v3986_v45, %v5421_v24 }
 0xa54   :  { %v3411_v57 = vpop.f32.mrf.mxu1 }
 0xa55   :  { %4935 = vpow2.f32 %v3417_v4  ;;  %v3419_v56 = vmul.f32 1.442695, %v3416_v36 }
 0xa57   :  { %4937 = vpow2.f32 %v3419_v56 }
 0xa62   :  { %v4936_v33 = vpop.eup %4935 }
 0xa63   :  { %v4307_v14 = vadd.f32 -1.0, %v4936_v33 }
 0xa64   :  { %v4938_v46 = vpop.eup %4937 }
 0xa65   :  { %v3423_v3 = vsel %vm3413_vm8, %v3407_v25, %v4307_v14  ;;  %v4308_v21 = vadd.f32 -1.0, %v4938_v46 }
 0xa66   :  { %v3438_v16 = vmul.f32 %v3431_v51, %v3423_v3 }
 0xa67   :  { %v3424_v32 = vsel %vm3414_vm15, %v3409_v31, %v4308_v21 }
 0xa68   :  { %v3439_v62 = vmul.f32 %v3435_v49, %v3424_v32  ;;  %v3440_v63 = vsel %vm702_vm4, %v3438_v16, 0.0 }
 0xa6a   :  { %v3441_v17 = vsel %vm702_vm4, %v3439_v62, 0.0 }
 0xa6b   :  { %v3442_v0 = vadd.f32 %v3441_v17, %v3440_v63 }
 0xa6d   :  { %3443 = vadd.xlane.f32.xlu0 %v3442_v0 }
 0xa8e   :  { %v3924_v22 = vpop.f32.mrf.mxu1 }
 0xa8f   :  { %v3925_v7 = vadd.f32 %v3924_v22, %v3884_v13 }
 0xa90   :  { %v3926_v47 = vpop.f32.mrf.mxu1 }
 0xa91   :  { %v3933_v44 = vmin.f32 %v3925_v7, 0.0  ;;  %v3927_v48 = vadd.f32 %v3926_v47, %v3886_v11  ;;  %vm3931_vm1 = vcmp.gt.f32.partialorder %v3925_v7, 0.0 }
 0xa92   :  { %v3928_v38 = vpop.f32.mrf.mxu1 }
 0xa93   :  { %v3935_v27 = vmul.f32 1.442695, %v3933_v44  ;;  %v3934_v8 = vmin.f32 %v3927_v48, 0.0  ;;  %vm3932_vm2 = vcmp.gt.f32.partialorder %v3927_v48, 0.0 }
 0xa94   :  { %v3929_v34 = vpop.f32.mrf.mxu1 }
 0xa95   :  { %4939 = vpow2.f32 %v3935_v27  ;;  %v3937_v39 = vmul.f32 1.442695, %v3934_v8 }
 0xa97   :  { %4941 = vpow2.f32 %v3937_v39 }
 0xaa2   :  { %v4940_v37 = vpop.eup %4939 }
 0xaa3   :  { %v4374_v50 = vadd.f32 -1.0, %v4940_v37 }
 0xaa4   :  { %v4942_v26 = vpop.eup %4941 }
 0xaa5   :  { %v3941_v2 = vsel %vm3931_vm1, %v3925_v7, %v4374_v50  ;;  %v4375_v23 = vadd.f32 -1.0, %v4942_v26 }
 0xaa6   :  { %v3956_v53 = vmul.f32 %v3949_v35, %v3941_v2 }
 0xaa7   :  { %v3942_v42 = vsel %vm3932_vm2, %v3927_v48, %v4375_v23 }
 0xaa8   :  { %v3957_v6 = vmul.f32 %v3953_v28, %v3942_v42  ;;  %v3958_v18 = vsel %vm702_vm4, %v3956_v53, 0.0 }
 0xaaa   :  { %v3959_v10 = vsel %vm702_vm4, %v3957_v6, 0.0  ;;  %vm4008_vm4 = vcmask 8192  }
 0xaab   :  { %v3960_v41 = vadd.f32 %v3959_v10, %v3958_v18 }
 0xaad   :  { %3961 = vadd.xlane.f32.xlu1 %v3960_v41 }
 0xaf6   :  { %v3444_v25 = vpop.xlane.xlu0 %3443 }
 0xaf7   :  { %v3452_v55 = vadd.f32 %v4309_v30, %v3444_v25 }
 0xb36   :  { %v3962_v60 = vpop.xlane.xlu1 %3961 }
 0xb37   :  { %v3970_v29 = vadd.f32 %v4376_v9, %v3962_v60 }
 0xb39   :  { %v4377_v54 = vmul.f32 -1.442695, %v3970_v29 }
 0xb3b   :  { %4943 = vpow2.f32 %v4377_v54 }
 0xb48   :  { %v4944_v52 = vpop.eup %4943 }
 0xb49   :  { %v3974_v61 = vadd.f32 1.0, %v4944_v52 }
 0xb4b   :  { %4945 = vrcp.f32 %v3974_v61 }
 0xb58   :  { %v4946_v15 = vpop.eup %4945 }
 0xb59   :  { %3978 = vrot.lane.b32.xlu1 %v4946_v15, %s5206_s18 }
 0xbcb   :  { %v3979_v31 = vpop.permute.xlu1 %3978 }
 0xbcc   :  { %v3982_v1 = vsel %vm3981_vm3, %v3452_v55, %v3979_v31 }
 0xbcd   :  { %v3990_v4 = vrot.slane %v3982_v1, %v3989_v40 }
 0xbcf   :  { %v3991_v36 = vcombine.high %v3990_v4, %v3990_v4  ;;  %v3998_v57 = vrot.slane %v3990_v4, %v3989_v40 }
 0xbd1   :  { %v4005_v56 = vrot.slane %v3991_v36, %v3989_v40  ;;  %4009 = vst.msk [vmem:[%s6103_s25] sm:$0x1] %vm4008_vm4, %v3998_v57 }
 0xbd3   :  { %4010 = vst.msk [vmem:[%s6103_s25 + $0x1] sm:$0x1] %vm4008_vm4, %v4005_v56 }
 0xbd4   :  { %4015 = vsyncpa [#allocation6], 1 }
 0xbd5   :  { %4016 = vsyncpa [#allocation8], 1 }
 0xbd6   :  { %4017 = vsyncpa [#allocation11], 1 }
 0xbd7   :  { %4018 = vsyncpa [#allocation14], 1 }
 0xbd8   :  { %4019 = vsyncpa [#allocation17], 1 }
 0xbd9   :  { %4020 = vsyncpa [#allocation20], 1 }

</bundles_post_ra>
